<compile_context>
chip_gen: v7x
topology: tpu7x:2x2x1
jax: 0.10.0
libtpu: 0.0.40
codegen_flags: <defaults>
</compile_context>

<pallas_src>
import functools
import math

import jax
import jax.numpy as jnp
from jax.experimental import pallas as pl
from jax.experimental.pallas import tpu as pltpu

_VMEM_LIMIT_BYTES = 64 * 1024 * 1024   # <= physical VMEM on v5e/v6e/v7x
_TIME_CHUNK_CAP = 32                   # review: 32-64 (v5e/v6e), 16-32 (v7x)


def _round_up(n, m):
    return ((n + m - 1) // m) * m


# ----------------------------------------------------------------------------
# Shared per-chunk GRU recurrence
# ----------------------------------------------------------------------------
def _gru_chunk(x_ref, wih_ref, whh_ref, bi_ref, bhn_ref, h_ref, out_ref, *,
               tc, b, t_valid):
    """Run `tc` GRU timesteps on one time-chunk.

    x_ref:   (tc*b, in_dim)   bf16 - chunk of inputs (time-major, batch padded)
    wih_ref: (in_dim, 3*Hp)   bf16 - concatenated [r|z|n] input weights (transposed)
    whh_ref: (Hp, 3*Hp)       bf16 - concatenated [r|z|n] hidden weights (transposed)
    bi_ref:  (1, 3*Hp)        f32  - [b_ih_r+b_hh_r | b_ih_z+b_hh_z | b_ih_n]
    bhn_ref: (1, Hp)          f32  - b_hh_n (kept separate: scaled by r)
    h_ref:   (b, Hp)          f32  - carried hidden state (VMEM scratch)
    out_ref: (tc*b, Hp) or None    - per-step hidden states (time-major)
    t_valid: static int            - number of valid (unpadded) timesteps
    """
    Hp = h_ref.shape[-1]
    c = pl.program_id(0)
    mask_tail = (t_valid % tc) != 0          # static: emit masking only if needed

    # Batched input projection for the whole chunk (single MXU matmul with
    # M = tc*b, N = 3*Hp), computed once per chunk; input biases folded in.
    x2 = x_ref[...].astype(jnp.bfloat16)
    gi = jnp.dot(x2, wih_ref[...], preferred_element_type=jnp.float32) + bi_ref[...]

    # Hoist the (1,Hp)->(b,Hp) bias broadcast out of the per-step loop.
    bhn = jnp.broadcast_to(bhn_ref[...], (b, Hp))

    h = h_ref[...]
    for i in range(tc):                      # static unroll over the chunk
        s = i * b
        hb = h.astype(jnp.bfloat16)
        # ONE matmul per timestep on the serial path; gate slices below are
        # 128-lane-aligned (vreg-aligned -> free).
        gh = jnp.dot(hb, whh_ref[...], preferred_element_type=jnp.float32)
        gi_i = gi[s:s + b]
        r = jax.nn.sigmoid(gi_i[:, 0:Hp] + gh[:, 0:Hp])
        z = jax.nn.sigmoid(gi_i[:, Hp:2 * Hp] + gh[:, Hp:2 * Hp])
        n = jnp.tanh(gi_i[:, 2 * Hp:3 * Hp] + r * (gh[:, 2 * Hp:3 * Hp] + bhn))
        h_new = n + z * (h - n)              # == (1-z)*n + z*h_prev
        if mask_tail:
            valid = (c * tc + i) < t_valid   # ragged tail: keep h unchanged
            h = jnp.where(valid, h_new, h)
        else:
            h = h_new
        if out_ref is not None:
            out_ref[s:s + b, :] = h.astype(out_ref.dtype)
    h_ref[...] = h
    return h


# ----------------------------------------------------------------------------
# Kernels: intermediate layer (emits full sequence) / last layer (fused Linear)
# ----------------------------------------------------------------------------
def _gru_seq_kernel(x_ref, wih_ref, whh_ref, bi_ref, bhn_ref, out_ref, h_ref,
                    *, tc, b, t_valid):
    @pl.when(pl.program_id(0) == 0)
    def _():
        h_ref[...] = jnp.zeros_like(h_ref)   # h0 = 0, like torch.zeros(...)

    _gru_chunk(x_ref, wih_ref, whh_ref, bi_ref, bhn_ref, h_ref, out_ref,
               tc=tc, b=b, t_valid=t_valid)


def _gru_fc_kernel(x_ref, wih_ref, whh_ref, bi_ref, bhn_ref, fcw_ref, fcb_ref,
                   logits_ref, h_ref, *, tc, b, t_valid):
    @pl.when(pl.program_id(0) == 0)
    def _():
        h_ref[...] = jnp.zeros_like(h_ref)

    h = _gru_chunk(x_ref, wih_ref, whh_ref, bi_ref, bhn_ref, h_ref, None,
                   tc=tc, b=b, t_valid=t_valid)

    # Fused final Linear on the last hidden state, written once on the last
    # time chunk (out block index is constant -> flushed once at the end).
    @pl.when(pl.program_id(0) == pl.num_programs(0) - 1)
    def _():
        logits_ref[...] = (jnp.dot(h.astype(jnp.bfloat16), fcw_ref[...],
                                   preferred_element_type=jnp.float32)
                           + fcb_ref[...]).astype(logits_ref.dtype)


# ----------------------------------------------------------------------------
# pallas_call wrappers
# ----------------------------------------------------------------------------
def gru_seq_layer(seq, wih, whh, bi, bhn, tc, b, t_valid):
    """seq: (Tp*b, in_dim) time-major flattened. Returns (Tp*b, Hp) bf16."""
    TB, IN = seq.shape
    Hp = whh.shape[0]
    G = whh.shape[1]                         # 3*Hp
    chunk = tc * b
    kernel = functools.partial(_gru_seq_kernel, tc=tc, b=b, t_valid=t_valid)
    return pl.pallas_call(
        kernel,
        out_shape=jax.ShapeDtypeStruct((TB, Hp), jnp.bfloat16),
        grid=(TB // chunk,),
        in_specs=[
            pl.BlockSpec((chunk, IN), lambda c: (c, 0)),   # x chunk
            pl.BlockSpec((IN, G), lambda c: (0, 0)),       # W_ih [r|z|n]
            pl.BlockSpec((Hp, G), lambda c: (0, 0)),       # W_hh [r|z|n]
            pl.BlockSpec((1, G), lambda c: (0, 0)),        # folded biases
            pl.BlockSpec((1, Hp), lambda c: (0, 0)),       # b_hh_n
        ],
        out_specs=pl.BlockSpec((chunk, Hp), lambda c: (c, 0)),
        scratch_shapes=[pltpu.VMEM((b, Hp), jnp.float32)],  # carried h
        compiler_params=pltpu.CompilerParams(
            dimension_semantics=("arbitrary",),             # serial recurrence
            vmem_limit_bytes=_VMEM_LIMIT_BYTES),
    )(seq, wih, whh, bi, bhn)


def gru_fc_layer(seq, wih, whh, bi, bhn, fcw, fcb, tc, b, t_valid):
    """Last GRU layer with the final Linear fused. Returns (b, Cp) f32 logits."""
    TB, IN = seq.shape
    Hp = whh.shape[0]
    G = whh.shape[1]
    Cp = fcw.shape[-1]
    chunk = tc * b
    kernel = functools.partial(_gru_fc_kernel, tc=tc, b=b, t_valid=t_valid)
    return pl.pallas_call(
        kernel,
        out_shape=jax.ShapeDtypeStruct((b, Cp), jnp.float32),
        grid=(TB // chunk,),
        in_specs=[
            pl.BlockSpec((chunk, IN), lambda c: (c, 0)),
            pl.BlockSpec((IN, G), lambda c: (0, 0)),
            pl.BlockSpec((Hp, G), lambda c: (0, 0)),
            pl.BlockSpec((1, G), lambda c: (0, 0)),
            pl.BlockSpec((1, Hp), lambda c: (0, 0)),
            pl.BlockSpec((Hp, Cp), lambda c: (0, 0)),       # fc weight^T
            pl.BlockSpec((1, Cp), lambda c: (0, 0)),        # fc bias
        ],
        out_specs=pl.BlockSpec((b, Cp), lambda c: (0, 0)),
        scratch_shapes=[pltpu.VMEM((b, Hp), jnp.float32)],
        compiler_params=pltpu.CompilerParams(
            dimension_semantics=("arbitrary",),
            vmem_limit_bytes=_VMEM_LIMIT_BYTES),
    )(seq, wih, whh, bi, bhn, fcw, fcb)


# ----------------------------------------------------------------------------
# Full module forward
# ----------------------------------------------------------------------------
def gru_model_forward(x, params, num_classes):
    """x: (B, T, input_size), batch_first=True — same as the PyTorch module."""
    B, T, IN = x.shape
    Bp = _round_up(B, 16)                 # bf16 sublane packing -> tile-aligned
    tc = min(_TIME_CHUNK_CAP, T)          # ragged T handled in-kernel via mask
    Tp = _round_up(T, tc)

    # Pad batch & time with zeros, go time-major ONCE, flatten to (Tp*Bp, IN).
    xp = jnp.zeros((Bp, Tp, IN), jnp.float32).at[:B, :T].set(x.astype(jnp.float32))
    seq = jnp.transpose(xp, (1, 0, 2)).reshape(Tp * Bp, IN).astype(jnp.bfloat16)

    layers = params["layers"]
    # TODO(synk): when Tp*Bp*Hp*2 bytes fits VMEM, fuse this layer loop into a
    # single pallas_call keeping the intermediate sequence in a VMEM scratch
    # (removes one full HBM write+read of the sequence per layer boundary).
    for layer in layers[:-1]:
        seq = gru_seq_layer(seq, layer["wih"], layer["whh"],
                            layer["bi"], layer["bhn"], tc, Bp, T)
    last = layers[-1]
    logits = gru_fc_layer(seq, last["wih"], last["whh"], last["bi"], last["bhn"],
                          params["fcw"], params["fcb"], tc, Bp, T)
    return logits[:B, :num_classes]


# ----------------------------------------------------------------------------
# Parameter init (PyTorch-style uniform(-1/sqrt(H), 1/sqrt(H))), explicit padding
# ----------------------------------------------------------------------------
def init_params(key, input_size, hidden_size, num_layers, num_classes):
    H = hidden_size
    Hp = _round_up(H, 128)                # lane-aligned per-gate hidden width
    Cp = _round_up(num_classes, 128)
    k = 1.0 / math.sqrt(H)
    layers = []
    for li in range(num_layers):
        in_dim = input_size if li == 0 else H
        in_pad = input_size if li == 0 else Hp   # layer>0 consumes padded H
        key, k1, k2, k3, k4 = jax.random.split(key, 5)
        w_ih = jax.random.uniform(k1, (3 * H, in_dim), jnp.float32, -k, k)
        w_hh = jax.random.uniform(k2, (3 * H, H), jnp.float32, -k, k)
        b_ih = jax.random.uniform(k3, (3 * H,), jnp.float32, -k, k)
        b_hh = jax.random.uniform(k4, (3 * H,), jnp.float32, -k, k)

        # Gates concatenated along the lane axis ([r|z|n], each padded to Hp),
        # transposed for right-multiplication, zero-padded columns.
        wih = jnp.zeros((in_pad, 3 * Hp), jnp.float32)
        whh = jnp.zeros((Hp, 3 * Hp), jnp.float32)
        bi = jnp.zeros((1, 3 * Hp), jnp.float32)
        bhn = jnp.zeros((1, Hp), jnp.float32)
        for g in range(3):
            wih = wih.at[:in_dim, g * Hp:g * Hp + H].set(w_ih[g * H:(g + 1) * H, :].T)
            whh = whh.at[:H, g * Hp:g * Hp + H].set(w_hh[g * H:(g + 1) * H, :].T)
        bi = bi.at[0, 0 * Hp:0 * Hp + H].set(b_ih[0:H] + b_hh[0:H])           # r
        bi = bi.at[0, 1 * Hp:1 * Hp + H].set(b_ih[H:2 * H] + b_hh[H:2 * H])   # z
        bi = bi.at[0, 2 * Hp:2 * Hp + H].set(b_ih[2 * H:3 * H])               # n (ih)
        bhn = bhn.at[0, :H].set(b_hh[2 * H:3 * H])                            # n (hh, x r)
        layers.append(dict(wih=wih.astype(jnp.bfloat16),
                           whh=whh.astype(jnp.bfloat16),
                           bi=bi, bhn=bhn))

    key, k5, k6 = jax.random.split(key, 3)
    fc_w = jax.random.uniform(k5, (num_classes, H), jnp.float32, -k, k)
    fc_b = jax.random.uniform(k6, (num_classes,), jnp.float32, -k, k)
    fcw = jnp.zeros((Hp, Cp), jnp.float32).at[:H, :num_classes].set(fc_w.T)
    fcb = jnp.zeros((1, Cp), jnp.float32).at[0, :num_classes].set(fc_b)
    return dict(layers=layers, fcw=fcw.astype(jnp.bfloat16), fcb=fcb)


if __name__ == "__main__":
    # Small shapes consistent with the module's forward:
    batch, seq_len = 2, 8
    input_size, hidden_size, num_layers, num_classes = 16, 32, 2, 5

    root = jax.random.PRNGKey(0)
    pkey, xkey = jax.random.split(root)
    params = init_params(pkey, input_size, hidden_size, num_layers, num_classes)
    x = jax.random.normal(xkey, (batch, seq_len, input_size), jnp.float32)

    fwd = jax.jit(functools.partial(gru_model_forward, num_classes=num_classes))
    out = fwd(x, params)
    jax.block_until_ready(out)
    assert out.shape == (batch, num_classes)
    assert bool(jnp.all(jnp.isfinite(out)))
    print("KERNEL_OK")
</pallas_src>

<mosaic_0001>
module attributes {stable_mosaic.version = 11 : i64} {
  func.func @_gru_seq_kernel(%arg0: i32, %arg1: memref<128x16xbf16, #tpu.memory_space<vmem>>, %arg2: memref<16x384xbf16, #tpu.memory_space<vmem>>, %arg3: memref<128x384xbf16, #tpu.memory_space<vmem>>, %arg4: memref<1x384xf32, #tpu.memory_space<vmem>>, %arg5: memref<1x128xf32, #tpu.memory_space<vmem>>, %arg6: memref<128x128xbf16, #tpu.memory_space<vmem>>, %arg7: memref<16x128xf32, #tpu.memory_space<vmem>>) attributes {dimension_semantics = [#tpu.dimension_semantics<arbitrary>], iteration_bounds = array<i64: 1>, scalar_prefetch = 0 : i64, scratch_operands = 1 : i64, tpu.core_type = #tpu.core_type<tc>, window_params = [{transform_indices = @transform_0, window_bounds = array<i64: 128, 16>}, {pipeline_mode = #tpu.pipeline_mode<synchronous>, transform_indices = @transform_1, window_bounds = array<i64: 16, 384>}, {pipeline_mode = #tpu.pipeline_mode<synchronous>, transform_indices = @transform_2, window_bounds = array<i64: 128, 384>}, {pipeline_mode = #tpu.pipeline_mode<synchronous>, transform_indices = @transform_3, window_bounds = array<i64: 1, 384>}, {pipeline_mode = #tpu.pipeline_mode<synchronous>, transform_indices = @transform_4, window_bounds = array<i64: 1, 128>}, {transform_indices = @transform_5, window_bounds = array<i64: 128, 128>}]} {
    %c0_i32 = arith.constant 0 : i32
    %0 = arith.cmpi eq, %arg0, %c0_i32 : i32
    %1 = arith.extui %0 : i1 to i32
    %c0_i32_0 = arith.constant 0 : i32
    %2 = arith.cmpi ne, %1, %c0_i32_0 : i32
    scf.if %2 {
      %cst_61 = arith.constant 0.000000e+00 : f32
      %262 = vector.broadcast %cst_61 : f32 to vector<16x128xf32>
      %c0_62 = arith.constant 0 : index
      %c0_63 = arith.constant 0 : index
      %263 = vector.load %arg7[%c0_62, %c0_63] : memref<16x128xf32, #tpu.memory_space<vmem>>, vector<16x128xf32>
      tpu.vector_store %arg7[%c0_62, %c0_63], %262 {strides = array<i32>} : memref<16x128xf32, #tpu.memory_space<vmem>>, vector<16x128xf32>,
    } else {
    }
    %c0 = arith.constant 0 : index
    %c0_1 = arith.constant 0 : index
    %3 = vector.load %arg1[%c0, %c0_1] : memref<128x16xbf16, #tpu.memory_space<vmem>>, vector<128x16xbf16>
    %c0_2 = arith.constant 0 : index
    %c0_3 = arith.constant 0 : index
    %4 = vector.load %arg2[%c0_2, %c0_3] : memref<16x384xbf16, #tpu.memory_space<vmem>>, vector<16x384xbf16>
    %cst = arith.constant dense<0.000000e+00> : vector<128x384xf32>
    %5 = tpu.matmul %3, %4, %cst {dimension_numbers = #tpu.dot_dimension_numbers<[1], [0], [0], [1], [0, 0, 1, 1], [], []>} : vector<128x16xbf16>, vector<16x384xbf16>, vector<128x384xf32> -> vector<128x384xf32>
    %c0_4 = arith.constant 0 : index
    %c0_5 = arith.constant 0 : index
    %6 = vector.load %arg4[%c0_4, %c0_5] : memref<1x384xf32, #tpu.memory_space<vmem>>, vector<1x384xf32>
    %7 = vector.broadcast %6 : vector<1x384xf32> to vector<128x384xf32>
    %8 = arith.addf %5, %7 : vector<128x384xf32>
    %c0_6 = arith.constant 0 : index
    %c0_7 = arith.constant 0 : index
    %9 = vector.load %arg5[%c0_6, %c0_7] : memref<1x128xf32, #tpu.memory_space<vmem>>, vector<1x128xf32>
    %10 = vector.shape_cast %9 : vector<1x128xf32> to vector<1x128xf32>
    %11 = vector.broadcast %10 : vector<1x128xf32> to vector<16x128xf32>
    %c0_8 = arith.constant 0 : index
    %c0_9 = arith.constant 0 : index
    %12 = vector.load %arg7[%c0_8, %c0_9] : memref<16x128xf32, #tpu.memory_space<vmem>>, vector<16x128xf32>
    %13 = arith.truncf %12 : vector<16x128xf32> to vector<16x128xbf16>
    %c0_10 = arith.constant 0 : index
    %c0_11 = arith.constant 0 : index
    %14 = vector.load %arg3[%c0_10, %c0_11] : memref<128x384xbf16, #tpu.memory_space<vmem>>, vector<128x384xbf16>
    %cst_12 = arith.constant dense<0.000000e+00> : vector<16x384xf32>
    %15 = tpu.matmul %13, %14, %cst_12 {dimension_numbers = #tpu.dot_dimension_numbers<[1], [0], [0], [1], [0, 0, 1, 1], [], []>} : vector<16x128xbf16>, vector<128x384xbf16>, vector<16x384xf32> -> vector<16x384xf32>
    %16 = vector.extract_strided_slice %8 {offsets = [0, 0], sizes = [16, 384], strides = [1, 1]} : vector<128x384xf32> to vector<16x384xf32>
    %17 = vector.extract_strided_slice %16 {offsets = [0, 0], sizes = [16, 128], strides = [1, 1]} : vector<16x384xf32> to vector<16x128xf32>
    %18 = vector.extract_strided_slice %15 {offsets = [0, 0], sizes = [16, 128], strides = [1, 1]} : vector<16x384xf32> to vector<16x128xf32>
    %19 = arith.addf %17, %18 : vector<16x128xf32>
    %20 = arith.negf %19 : vector<16x128xf32>
    %21 = math.exp %20 : vector<16x128xf32>
    %cst_13 = arith.constant 1.000000e+00 : f32
    %22 = vector.broadcast %cst_13 : f32 to vector<16x128xf32>
    %23 = arith.addf %22, %21 : vector<16x128xf32>
    %24 = arith.divf %22, %23 : vector<16x128xf32>
    %25 = vector.extract_strided_slice %16 {offsets = [0, 128], sizes = [16, 128], strides = [1, 1]} : vector<16x384xf32> to vector<16x128xf32>
    %26 = vector.extract_strided_slice %15 {offsets = [0, 128], sizes = [16, 128], strides = [1, 1]} : vector<16x384xf32> to vector<16x128xf32>
    %27 = arith.addf %25, %26 : vector<16x128xf32>
    %28 = arith.negf %27 : vector<16x128xf32>
    %29 = math.exp %28 : vector<16x128xf32>
    %cst_14 = arith.constant 1.000000e+00 : f32
    %30 = vector.broadcast %cst_14 : f32 to vector<16x128xf32>
    %31 = arith.addf %30, %29 : vector<16x128xf32>
    %32 = arith.divf %30, %31 : vector<16x128xf32>
    %33 = vector.extract_strided_slice %16 {offsets = [0, 256], sizes = [16, 128], strides = [1, 1]} : vector<16x384xf32> to vector<16x128xf32>
    %34 = vector.extract_strided_slice %15 {offsets = [0, 256], sizes = [16, 128], strides = [1, 1]} : vector<16x384xf32> to vector<16x128xf32>
    %35 = arith.addf %34, %11 : vector<16x128xf32>
    %36 = arith.mulf %24, %35 : vector<16x128xf32>
    %37 = arith.addf %33, %36 : vector<16x128xf32>
    %38 = math.tanh %37 : vector<16x128xf32>
    %39 = arith.subf %12, %38 : vector<16x128xf32>
    %40 = arith.mulf %32, %39 : vector<16x128xf32>
    %41 = arith.addf %38, %40 : vector<16x128xf32>
    %42 = arith.truncf %41 : vector<16x128xf32> to vector<16x128xbf16>
    %c0_15 = arith.constant 0 : index
    %c0_16 = arith.constant 0 : index
    %43 = vector.load %arg6[%c0_15, %c0_16] : memref<128x128xbf16, #tpu.memory_space<vmem>>, vector<16x128xbf16>
    tpu.vector_store %arg6[%c0_15, %c0_16], %42 {strides = array<i32>} : memref<128x128xbf16, #tpu.memory_space<vmem>>, vector<16x128xbf16>,
    %44 = arith.truncf %41 : vector<16x128xf32> to vector<16x128xbf16>
    %c0_17 = arith.constant 0 : index
    %c0_18 = arith.constant 0 : index
    %45 = vector.load %arg3[%c0_17, %c0_18] : memref<128x384xbf16, #tpu.memory_space<vmem>>, vector<128x384xbf16>
    %cst_19 = arith.constant dense<0.000000e+00> : vector<16x384xf32>
    %46 = tpu.matmul %44, %45, %cst_19 {dimension_numbers = #tpu.dot_dimension_numbers<[1], [0], [0], [1], [0, 0, 1, 1], [], []>} : vector<16x128xbf16>, vector<128x384xbf16>, vector<16x384xf32> -> vector<16x384xf32>
    %47 = vector.extract_strided_slice %8 {offsets = [16, 0], sizes = [16, 384], strides = [1, 1]} : vector<128x384xf32> to vector<16x384xf32>
    %48 = vector.extract_strided_slice %47 {offsets = [0, 0], sizes = [16, 128], strides = [1, 1]} : vector<16x384xf32> to vector<16x128xf32>
    %49 = vector.extract_strided_slice %46 {offsets = [0, 0], sizes = [16, 128], strides = [1, 1]} : vector<16x384xf32> to vector<16x128xf32>
    %50 = arith.addf %48, %49 : vector<16x128xf32>
    %51 = arith.negf %50 : vector<16x128xf32>
    %52 = math.exp %51 : vector<16x128xf32>
    %cst_20 = arith.constant 1.000000e+00 : f32
    %53 = vector.broadcast %cst_20 : f32 to vector<16x128xf32>
    %54 = arith.addf %53, %52 : vector<16x128xf32>
    %55 = arith.divf %53, %54 : vector<16x128xf32>
    %56 = vector.extract_strided_slice %47 {offsets = [0, 128], sizes = [16, 128], strides = [1, 1]} : vector<16x384xf32> to vector<16x128xf32>
    %57 = vector.extract_strided_slice %46 {offsets = [0, 128], sizes = [16, 128], strides = [1, 1]} : vector<16x384xf32> to vector<16x128xf32>
    %58 = arith.addf %56, %57 : vector<16x128xf32>
    %59 = arith.negf %58 : vector<16x128xf32>
    %60 = math.exp %59 : vector<16x128xf32>
    %cst_21 = arith.constant 1.000000e+00 : f32
    %61 = vector.broadcast %cst_21 : f32 to vector<16x128xf32>
    %62 = arith.addf %61, %60 : vector<16x128xf32>
    %63 = arith.divf %61, %62 : vector<16x128xf32>
    %64 = vector.extract_strided_slice %47 {offsets = [0, 256], sizes = [16, 128], strides = [1, 1]} : vector<16x384xf32> to vector<16x128xf32>
    %65 = vector.extract_strided_slice %46 {offsets = [0, 256], sizes = [16, 128], strides = [1, 1]} : vector<16x384xf32> to vector<16x128xf32>
    %66 = arith.addf %65, %11 : vector<16x128xf32>
    %67 = arith.mulf %55, %66 : vector<16x128xf32>
    %68 = arith.addf %64, %67 : vector<16x128xf32>
    %69 = math.tanh %68 : vector<16x128xf32>
    %70 = arith.subf %41, %69 : vector<16x128xf32>
    %71 = arith.mulf %63, %70 : vector<16x128xf32>
    %72 = arith.addf %69, %71 : vector<16x128xf32>
    %73 = arith.truncf %72 : vector<16x128xf32> to vector<16x128xbf16>
    %c16 = arith.constant 16 : index
    %c0_22 = arith.constant 0 : index
    %74 = vector.load %arg6[%c16, %c0_22] : memref<128x128xbf16, #tpu.memory_space<vmem>>, vector<16x128xbf16>
    tpu.vector_store %arg6[%c16, %c0_22], %73 {strides = array<i32>} : memref<128x128xbf16, #tpu.memory_space<vmem>>, vector<16x128xbf16>,
    %75 = arith.truncf %72 : vector<16x128xf32> to vector<16x128xbf16>
    %c0_23 = arith.constant 0 : index
    %c0_24 = arith.constant 0 : index
    %76 = vector.load %arg3[%c0_23, %c0_24] : memref<128x384xbf16, #tpu.memory_space<vmem>>, vector<128x384xbf16>
    %cst_25 = arith.constant dense<0.000000e+00> : vector<16x384xf32>
    %77 = tpu.matmul %75, %76, %cst_25 {dimension_numbers = #tpu.dot_dimension_numbers<[1], [0], [0], [1], [0, 0, 1, 1], [], []>} : vector<16x128xbf16>, vector<128x384xbf16>, vector<16x384xf32> -> vector<16x384xf32>
    %78 = vector.extract_strided_slice %8 {offsets = [32, 0], sizes = [16, 384], strides = [1, 1]} : vector<128x384xf32> to vector<16x384xf32>
    %79 = vector.extract_strided_slice %78 {offsets = [0, 0], sizes = [16, 128], strides = [1, 1]} : vector<16x384xf32> to vector<16x128xf32>
    %80 = vector.extract_strided_slice %77 {offsets = [0, 0], sizes = [16, 128], strides = [1, 1]} : vector<16x384xf32> to vector<16x128xf32>
    %81 = arith.addf %79, %80 : vector<16x128xf32>
    %82 = arith.negf %81 : vector<16x128xf32>
    %83 = math.exp %82 : vector<16x128xf32>
    %cst_26 = arith.constant 1.000000e+00 : f32
    %84 = vector.broadcast %cst_26 : f32 to vector<16x128xf32>
    %85 = arith.addf %84, %83 : vector<16x128xf32>
    %86 = arith.divf %84, %85 : vector<16x128xf32>
    %87 = vector.extract_strided_slice %78 {offsets = [0, 128], sizes = [16, 128], strides = [1, 1]} : vector<16x384xf32> to vector<16x128xf32>
    %88 = vector.extract_strided_slice %77 {offsets = [0, 128], sizes = [16, 128], strides = [1, 1]} : vector<16x384xf32> to vector<16x128xf32>
    %89 = arith.addf %87, %88 : vector<16x128xf32>
    %90 = arith.negf %89 : vector<16x128xf32>
    %91 = math.exp %90 : vector<16x128xf32>
    %cst_27 = arith.constant 1.000000e+00 : f32
    %92 = vector.broadcast %cst_27 : f32 to vector<16x128xf32>
    %93 = arith.addf %92, %91 : vector<16x128xf32>
    %94 = arith.divf %92, %93 : vector<16x128xf32>
    %95 = vector.extract_strided_slice %78 {offsets = [0, 256], sizes = [16, 128], strides = [1, 1]} : vector<16x384xf32> to vector<16x128xf32>
    %96 = vector.extract_strided_slice %77 {offsets = [0, 256], sizes = [16, 128], strides = [1, 1]} : vector<16x384xf32> to vector<16x128xf32>
    %97 = arith.addf %96, %11 : vector<16x128xf32>
    %98 = arith.mulf %86, %97 : vector<16x128xf32>
    %99 = arith.addf %95, %98 : vector<16x128xf32>
    %100 = math.tanh %99 : vector<16x128xf32>
    %101 = arith.subf %72, %100 : vector<16x128xf32>
    %102 = arith.mulf %94, %101 : vector<16x128xf32>
    %103 = arith.addf %100, %102 : vector<16x128xf32>
    %104 = arith.truncf %103 : vector<16x128xf32> to vector<16x128xbf16>
    %c32 = arith.constant 32 : index
    %c0_28 = arith.constant 0 : index
    %105 = vector.load %arg6[%c32, %c0_28] : memref<128x128xbf16, #tpu.memory_space<vmem>>, vector<16x128xbf16>
    tpu.vector_store %arg6[%c32, %c0_28], %104 {strides = array<i32>} : memref<128x128xbf16, #tpu.memory_space<vmem>>, vector<16x128xbf16>,
    %106 = arith.truncf %103 : vector<16x128xf32> to vector<16x128xbf16>
    %c0_29 = arith.constant 0 : index
    %c0_30 = arith.constant 0 : index
    %107 = vector.load %arg3[%c0_29, %c0_30] : memref<128x384xbf16, #tpu.memory_space<vmem>>, vector<128x384xbf16>
    %cst_31 = arith.constant dense<0.000000e+00> : vector<16x384xf32>
    %108 = tpu.matmul %106, %107, %cst_31 {dimension_numbers = #tpu.dot_dimension_numbers<[1], [0], [0], [1], [0, 0, 1, 1], [], []>} : vector<16x128xbf16>, vector<128x384xbf16>, vector<16x384xf32> -> vector<16x384xf32>
    %109 = vector.extract_strided_slice %8 {offsets = [48, 0], sizes = [16, 384], strides = [1, 1]} : vector<128x384xf32> to vector<16x384xf32>
    %110 = vector.extract_strided_slice %109 {offsets = [0, 0], sizes = [16, 128], strides = [1, 1]} : vector<16x384xf32> to vector<16x128xf32>
    %111 = vector.extract_strided_slice %108 {offsets = [0, 0], sizes = [16, 128], strides = [1, 1]} : vector<16x384xf32> to vector<16x128xf32>
    %112 = arith.addf %110, %111 : vector<16x128xf32>
    %113 = arith.negf %112 : vector<16x128xf32>
    %114 = math.exp %113 : vector<16x128xf32>
    %cst_32 = arith.constant 1.000000e+00 : f32
    %115 = vector.broadcast %cst_32 : f32 to vector<16x128xf32>
    %116 = arith.addf %115, %114 : vector<16x128xf32>
    %117 = arith.divf %115, %116 : vector<16x128xf32>
    %118 = vector.extract_strided_slice %109 {offsets = [0, 128], sizes = [16, 128], strides = [1, 1]} : vector<16x384xf32> to vector<16x128xf32>
    %119 = vector.extract_strided_slice %108 {offsets = [0, 128], sizes = [16, 128], strides = [1, 1]} : vector<16x384xf32> to vector<16x128xf32>
    %120 = arith.addf %118, %119 : vector<16x128xf32>
    %121 = arith.negf %120 : vector<16x128xf32>
    %122 = math.exp %121 : vector<16x128xf32>
    %cst_33 = arith.constant 1.000000e+00 : f32
    %123 = vector.broadcast %cst_33 : f32 to vector<16x128xf32>
    %124 = arith.addf %123, %122 : vector<16x128xf32>
    %125 = arith.divf %123, %124 : vector<16x128xf32>
    %126 = vector.extract_strided_slice %109 {offsets = [0, 256], sizes = [16, 128], strides = [1, 1]} : vector<16x384xf32> to vector<16x128xf32>
    %127 = vector.extract_strided_slice %108 {offsets = [0, 256], sizes = [16, 128], strides = [1, 1]} : vector<16x384xf32> to vector<16x128xf32>
    %128 = arith.addf %127, %11 : vector<16x128xf32>
    %129 = arith.mulf %117, %128 : vector<16x128xf32>
    %130 = arith.addf %126, %129 : vector<16x128xf32>
    %131 = math.tanh %130 : vector<16x128xf32>
    %132 = arith.subf %103, %131 : vector<16x128xf32>
    %133 = arith.mulf %125, %132 : vector<16x128xf32>
    %134 = arith.addf %131, %133 : vector<16x128xf32>
    %135 = arith.truncf %134 : vector<16x128xf32> to vector<16x128xbf16>
    %c48 = arith.constant 48 : index
    %c0_34 = arith.constant 0 : index
    %136 = vector.load %arg6[%c48, %c0_34] : memref<128x128xbf16, #tpu.memory_space<vmem>>, vector<16x128xbf16>
    tpu.vector_store %arg6[%c48, %c0_34], %135 {strides = array<i32>} : memref<128x128xbf16, #tpu.memory_space<vmem>>, vector<16x128xbf16>,
    %137 = arith.truncf %134 : vector<16x128xf32> to vector<16x128xbf16>
    %c0_35 = arith.constant 0 : index
    %c0_36 = arith.constant 0 : index
    %138 = vector.load %arg3[%c0_35, %c0_36] : memref<128x384xbf16, #tpu.memory_space<vmem>>, vector<128x384xbf16>
    %cst_37 = arith.constant dense<0.000000e+00> : vector<16x384xf32>
    %139 = tpu.matmul %137, %138, %cst_37 {dimension_numbers = #tpu.dot_dimension_numbers<[1], [0], [0], [1], [0, 0, 1, 1], [], []>} : vector<16x128xbf16>, vector<128x384xbf16>, vector<16x384xf32> -> vector<16x384xf32>
    %140 = vector.extract_strided_slice %8 {offsets = [64, 0], sizes = [16, 384], strides = [1, 1]} : vector<128x384xf32> to vector<16x384xf32>
    %141 = vector.extract_strided_slice %140 {offsets = [0, 0], sizes = [16, 128], strides = [1, 1]} : vector<16x384xf32> to vector<16x128xf32>
    %142 = vector.extract_strided_slice %139 {offsets = [0, 0], sizes = [16, 128], strides = [1, 1]} : vector<16x384xf32> to vector<16x128xf32>
    %143 = arith.addf %141, %142 : vector<16x128xf32>
    %144 = arith.negf %143 : vector<16x128xf32>
    %145 = math.exp %144 : vector<16x128xf32>
    %cst_38 = arith.constant 1.000000e+00 : f32
    %146 = vector.broadcast %cst_38 : f32 to vector<16x128xf32>
    %147 = arith.addf %146, %145 : vector<16x128xf32>
    %148 = arith.divf %146, %147 : vector<16x128xf32>
    %149 = vector.extract_strided_slice %140 {offsets = [0, 128], sizes = [16, 128], strides = [1, 1]} : vector<16x384xf32> to vector<16x128xf32>
    %150 = vector.extract_strided_slice %139 {offsets = [0, 128], sizes = [16, 128], strides = [1, 1]} : vector<16x384xf32> to vector<16x128xf32>
    %151 = arith.addf %149, %150 : vector<16x128xf32>
    %152 = arith.negf %151 : vector<16x128xf32>
    %153 = math.exp %152 : vector<16x128xf32>
    %cst_39 = arith.constant 1.000000e+00 : f32
    %154 = vector.broadcast %cst_39 : f32 to vector<16x128xf32>
    %155 = arith.addf %154, %153 : vector<16x128xf32>
    %156 = arith.divf %154, %155 : vector<16x128xf32>
    %157 = vector.extract_strided_slice %140 {offsets = [0, 256], sizes = [16, 128], strides = [1, 1]} : vector<16x384xf32> to vector<16x128xf32>
    %158 = vector.extract_strided_slice %139 {offsets = [0, 256], sizes = [16, 128], strides = [1, 1]} : vector<16x384xf32> to vector<16x128xf32>
    %159 = arith.addf %158, %11 : vector<16x128xf32>
    %160 = arith.mulf %148, %159 : vector<16x128xf32>
    %161 = arith.addf %157, %160 : vector<16x128xf32>
    %162 = math.tanh %161 : vector<16x128xf32>
    %163 = arith.subf %134, %162 : vector<16x128xf32>
    %164 = arith.mulf %156, %163 : vector<16x128xf32>
    %165 = arith.addf %162, %164 : vector<16x128xf32>
    %166 = arith.truncf %165 : vector<16x128xf32> to vector<16x128xbf16>
    %c64 = arith.constant 64 : index
    %c0_40 = arith.constant 0 : index
    %167 = vector.load %arg6[%c64, %c0_40] : memref<128x128xbf16, #tpu.memory_space<vmem>>, vector<16x128xbf16>
    tpu.vector_store %arg6[%c64, %c0_40], %166 {strides = array<i32>} : memref<128x128xbf16, #tpu.memory_space<vmem>>, vector<16x128xbf16>,
    %168 = arith.truncf %165 : vector<16x128xf32> to vector<16x128xbf16>
    %c0_41 = arith.constant 0 : index
    %c0_42 = arith.constant 0 : index
    %169 = vector.load %arg3[%c0_41, %c0_42] : memref<128x384xbf16, #tpu.memory_space<vmem>>, vector<128x384xbf16>
    %cst_43 = arith.constant dense<0.000000e+00> : vector<16x384xf32>
    %170 = tpu.matmul %168, %169, %cst_43 {dimension_numbers = #tpu.dot_dimension_numbers<[1], [0], [0], [1], [0, 0, 1, 1], [], []>} : vector<16x128xbf16>, vector<128x384xbf16>, vector<16x384xf32> -> vector<16x384xf32>
    %171 = vector.extract_strided_slice %8 {offsets = [80, 0], sizes = [16, 384], strides = [1, 1]} : vector<128x384xf32> to vector<16x384xf32>
    %172 = vector.extract_strided_slice %171 {offsets = [0, 0], sizes = [16, 128], strides = [1, 1]} : vector<16x384xf32> to vector<16x128xf32>
    %173 = vector.extract_strided_slice %170 {offsets = [0, 0], sizes = [16, 128], strides = [1, 1]} : vector<16x384xf32> to vector<16x128xf32>
    %174 = arith.addf %172, %173 : vector<16x128xf32>
    %175 = arith.negf %174 : vector<16x128xf32>
    %176 = math.exp %175 : vector<16x128xf32>
    %cst_44 = arith.constant 1.000000e+00 : f32
    %177 = vector.broadcast %cst_44 : f32 to vector<16x128xf32>
    %178 = arith.addf %177, %176 : vector<16x128xf32>
    %179 = arith.divf %177, %178 : vector<16x128xf32>
    %180 = vector.extract_strided_slice %171 {offsets = [0, 128], sizes = [16, 128], strides = [1, 1]} : vector<16x384xf32> to vector<16x128xf32>
    %181 = vector.extract_strided_slice %170 {offsets = [0, 128], sizes = [16, 128], strides = [1, 1]} : vector<16x384xf32> to vector<16x128xf32>
    %182 = arith.addf %180, %181 : vector<16x128xf32>
    %183 = arith.negf %182 : vector<16x128xf32>
    %184 = math.exp %183 : vector<16x128xf32>
    %cst_45 = arith.constant 1.000000e+00 : f32
    %185 = vector.broadcast %cst_45 : f32 to vector<16x128xf32>
    %186 = arith.addf %185, %184 : vector<16x128xf32>
    %187 = arith.divf %185, %186 : vector<16x128xf32>
    %188 = vector.extract_strided_slice %171 {offsets = [0, 256], sizes = [16, 128], strides = [1, 1]} : vector<16x384xf32> to vector<16x128xf32>
    %189 = vector.extract_strided_slice %170 {offsets = [0, 256], sizes = [16, 128], strides = [1, 1]} : vector<16x384xf32> to vector<16x128xf32>
    %190 = arith.addf %189, %11 : vector<16x128xf32>
    %191 = arith.mulf %179, %190 : vector<16x128xf32>
    %192 = arith.addf %188, %191 : vector<16x128xf32>
    %193 = math.tanh %192 : vector<16x128xf32>
    %194 = arith.subf %165, %193 : vector<16x128xf32>
    %195 = arith.mulf %187, %194 : vector<16x128xf32>
    %196 = arith.addf %193, %195 : vector<16x128xf32>
    %197 = arith.truncf %196 : vector<16x128xf32> to vector<16x128xbf16>
    %c80 = arith.constant 80 : index
    %c0_46 = arith.constant 0 : index
    %198 = vector.load %arg6[%c80, %c0_46] : memref<128x128xbf16, #tpu.memory_space<vmem>>, vector<16x128xbf16>
    tpu.vector_store %arg6[%c80, %c0_46], %197 {strides = array<i32>} : memref<128x128xbf16, #tpu.memory_space<vmem>>, vector<16x128xbf16>,
    %199 = arith.truncf %196 : vector<16x128xf32> to vector<16x128xbf16>
    %c0_47 = arith.constant 0 : index
    %c0_48 = arith.constant 0 : index
    %200 = vector.load %arg3[%c0_47, %c0_48] : memref<128x384xbf16, #tpu.memory_space<vmem>>, vector<128x384xbf16>
    %cst_49 = arith.constant dense<0.000000e+00> : vector<16x384xf32>
    %201 = tpu.matmul %199, %200, %cst_49 {dimension_numbers = #tpu.dot_dimension_numbers<[1], [0], [0], [1], [0, 0, 1, 1], [], []>} : vector<16x128xbf16>, vector<128x384xbf16>, vector<16x384xf32> -> vector<16x384xf32>
    %202 = vector.extract_strided_slice %8 {offsets = [96, 0], sizes = [16, 384], strides = [1, 1]} : vector<128x384xf32> to vector<16x384xf32>
    %203 = vector.extract_strided_slice %202 {offsets = [0, 0], sizes = [16, 128], strides = [1, 1]} : vector<16x384xf32> to vector<16x128xf32>
    %204 = vector.extract_strided_slice %201 {offsets = [0, 0], sizes = [16, 128], strides = [1, 1]} : vector<16x384xf32> to vector<16x128xf32>
    %205 = arith.addf %203, %204 : vector<16x128xf32>
    %206 = arith.negf %205 : vector<16x128xf32>
    %207 = math.exp %206 : vector<16x128xf32>
    %cst_50 = arith.constant 1.000000e+00 : f32
    %208 = vector.broadcast %cst_50 : f32 to vector<16x128xf32>
    %209 = arith.addf %208, %207 : vector<16x128xf32>
    %210 = arith.divf %208, %209 : vector<16x128xf32>
    %211 = vector.extract_strided_slice %202 {offsets = [0, 128], sizes = [16, 128], strides = [1, 1]} : vector<16x384xf32> to vector<16x128xf32>
    %212 = vector.extract_strided_slice %201 {offsets = [0, 128], sizes = [16, 128], strides = [1, 1]} : vector<16x384xf32> to vector<16x128xf32>
    %213 = arith.addf %211, %212 : vector<16x128xf32>
    %214 = arith.negf %213 : vector<16x128xf32>
    %215 = math.exp %214 : vector<16x128xf32>
    %cst_51 = arith.constant 1.000000e+00 : f32
    %216 = vector.broadcast %cst_51 : f32 to vector<16x128xf32>
    %217 = arith.addf %216, %215 : vector<16x128xf32>
    %218 = arith.divf %216, %217 : vector<16x128xf32>
    %219 = vector.extract_strided_slice %202 {offsets = [0, 256], sizes = [16, 128], strides = [1, 1]} : vector<16x384xf32> to vector<16x128xf32>
    %220 = vector.extract_strided_slice %201 {offsets = [0, 256], sizes = [16, 128], strides = [1, 1]} : vector<16x384xf32> to vector<16x128xf32>
    %221 = arith.addf %220, %11 : vector<16x128xf32>
    %222 = arith.mulf %210, %221 : vector<16x128xf32>
    %223 = arith.addf %219, %222 : vector<16x128xf32>
    %224 = math.tanh %223 : vector<16x128xf32>
    %225 = arith.subf %196, %224 : vector<16x128xf32>
    %226 = arith.mulf %218, %225 : vector<16x128xf32>
    %227 = arith.addf %224, %226 : vector<16x128xf32>
    %228 = arith.truncf %227 : vector<16x128xf32> to vector<16x128xbf16>
    %c96 = arith.constant 96 : index
    %c0_52 = arith.constant 0 : index
    %229 = vector.load %arg6[%c96, %c0_52] : memref<128x128xbf16, #tpu.memory_space<vmem>>, vector<16x128xbf16>
    tpu.vector_store %arg6[%c96, %c0_52], %228 {strides = array<i32>} : memref<128x128xbf16, #tpu.memory_space<vmem>>, vector<16x128xbf16>,
    %230 = arith.truncf %227 : vector<16x128xf32> to vector<16x128xbf16>
    %c0_53 = arith.constant 0 : index
    %c0_54 = arith.constant 0 : index
    %231 = vector.load %arg3[%c0_53, %c0_54] : memref<128x384xbf16, #tpu.memory_space<vmem>>, vector<128x384xbf16>
    %cst_55 = arith.constant dense<0.000000e+00> : vector<16x384xf32>
    %232 = tpu.matmul %230, %231, %cst_55 {dimension_numbers = #tpu.dot_dimension_numbers<[1], [0], [0], [1], [0, 0, 1, 1], [], []>} : vector<16x128xbf16>, vector<128x384xbf16>, vector<16x384xf32> -> vector<16x384xf32>
    %233 = vector.extract_strided_slice %8 {offsets = [112, 0], sizes = [16, 384], strides = [1, 1]} : vector<128x384xf32> to vector<16x384xf32>
    %234 = vector.extract_strided_slice %233 {offsets = [0, 0], sizes = [16, 128], strides = [1, 1]} : vector<16x384xf32> to vector<16x128xf32>
    %235 = vector.extract_strided_slice %232 {offsets = [0, 0], sizes = [16, 128], strides = [1, 1]} : vector<16x384xf32> to vector<16x128xf32>
    %236 = arith.addf %234, %235 : vector<16x128xf32>
    %237 = arith.negf %236 : vector<16x128xf32>
    %238 = math.exp %237 : vector<16x128xf32>
    %cst_56 = arith.constant 1.000000e+00 : f32
    %239 = vector.broadcast %cst_56 : f32 to vector<16x128xf32>
    %240 = arith.addf %239, %238 : vector<16x128xf32>
    %241 = arith.divf %239, %240 : vector<16x128xf32>
    %242 = vector.extract_strided_slice %233 {offsets = [0, 128], sizes = [16, 128], strides = [1, 1]} : vector<16x384xf32> to vector<16x128xf32>
    %243 = vector.extract_strided_slice %232 {offsets = [0, 128], sizes = [16, 128], strides = [1, 1]} : vector<16x384xf32> to vector<16x128xf32>
    %244 = arith.addf %242, %243 : vector<16x128xf32>
    %245 = arith.negf %244 : vector<16x128xf32>
    %246 = math.exp %245 : vector<16x128xf32>
    %cst_57 = arith.constant 1.000000e+00 : f32
    %247 = vector.broadcast %cst_57 : f32 to vector<16x128xf32>
    %248 = arith.addf %247, %246 : vector<16x128xf32>
    %249 = arith.divf %247, %248 : vector<16x128xf32>
    %250 = vector.extract_strided_slice %233 {offsets = [0, 256], sizes = [16, 128], strides = [1, 1]} : vector<16x384xf32> to vector<16x128xf32>
    %251 = vector.extract_strided_slice %232 {offsets = [0, 256], sizes = [16, 128], strides = [1, 1]} : vector<16x384xf32> to vector<16x128xf32>
    %252 = arith.addf %251, %11 : vector<16x128xf32>
    %253 = arith.mulf %241, %252 : vector<16x128xf32>
    %254 = arith.addf %250, %253 : vector<16x128xf32>
    %255 = math.tanh %254 : vector<16x128xf32>
    %256 = arith.subf %227, %255 : vector<16x128xf32>
    %257 = arith.mulf %249, %256 : vector<16x128xf32>
    %258 = arith.addf %255, %257 : vector<16x128xf32>
    %259 = arith.truncf %258 : vector<16x128xf32> to vector<16x128xbf16>
    %c112 = arith.constant 112 : index
    %c0_58 = arith.constant 0 : index
    %260 = vector.load %arg6[%c112, %c0_58] : memref<128x128xbf16, #tpu.memory_space<vmem>>, vector<16x128xbf16>
    tpu.vector_store %arg6[%c112, %c0_58], %259 {strides = array<i32>} : memref<128x128xbf16, #tpu.memory_space<vmem>>, vector<16x128xbf16>,
    %c0_59 = arith.constant 0 : index
    %c0_60 = arith.constant 0 : index
    %261 = vector.load %arg7[%c0_59, %c0_60] : memref<16x128xf32, #tpu.memory_space<vmem>>, vector<16x128xf32>
    tpu.vector_store %arg7[%c0_59, %c0_60], %258 {strides = array<i32>} : memref<16x128xf32, #tpu.memory_space<vmem>>, vector<16x128xf32>,
    return
  }
  func.func @transform_0(%arg0: i32) -> (i32, i32) {
    %c0_i32 = arith.constant 0 : i32
    %c0_i32_0 = arith.constant 0 : i32
    return %arg0, %c0_i32 : i32, i32
  }
  func.func @transform_1(%arg0: i32) -> (i32, i32) {
    %c0_i32 = arith.constant 0 : i32
    %c0_i32_0 = arith.constant 0 : i32
    %c0_i32_1 = arith.constant 0 : i32
    return %c0_i32, %c0_i32_0 : i32, i32
  }
  func.func @transform_2(%arg0: i32) -> (i32, i32) {
    %c0_i32 = arith.constant 0 : i32
    %c0_i32_0 = arith.constant 0 : i32
    %c0_i32_1 = arith.constant 0 : i32
    return %c0_i32, %c0_i32_0 : i32, i32
  }
  func.func @transform_3(%arg0: i32) -> (i32, i32) {
    %c0_i32 = arith.constant 0 : i32
    %c0_i32_0 = arith.constant 0 : i32
    %c0_i32_1 = arith.constant 0 : i32
    return %c0_i32, %c0_i32_0 : i32, i32
  }
  func.func @transform_4(%arg0: i32) -> (i32, i32) {
    %c0_i32 = arith.constant 0 : i32
    %c0_i32_0 = arith.constant 0 : i32
    %c0_i32_1 = arith.constant 0 : i32
    return %c0_i32, %c0_i32_0 : i32, i32
  }
  func.func @transform_5(%arg0: i32) -> (i32, i32) {
    %c0_i32 = arith.constant 0 : i32
    %c0_i32_0 = arith.constant 0 : i32
    return %arg0, %c0_i32 : i32, i32
  }
}

module attributes {stable_mosaic.version = 11 : i64} {
  func.func @_gru_fc_kernel(%arg0: i32, %arg1: memref<128x128xbf16, #tpu.memory_space<vmem>>, %arg2: memref<128x384xbf16, #tpu.memory_space<vmem>>, %arg3: memref<128x384xbf16, #tpu.memory_space<vmem>>, %arg4: memref<1x384xf32, #tpu.memory_space<vmem>>, %arg5: memref<1x128xf32, #tpu.memory_space<vmem>>, %arg6: memref<128x128xbf16, #tpu.memory_space<vmem>>, %arg7: memref<1x128xf32, #tpu.memory_space<vmem>>, %arg8: memref<16x128xf32, #tpu.memory_space<vmem>>, %arg9: memref<16x128xf32, #tpu.memory_space<vmem>>) attributes {dimension_semantics = [#tpu.dimension_semantics<arbitrary>], iteration_bounds = array<i64: 1>, scalar_prefetch = 0 : i64, scratch_operands = 1 : i64, tpu.core_type = #tpu.core_type<tc>, window_params = [{transform_indices = @transform_0, window_bounds = array<i64: 128, 128>}, {pipeline_mode = #tpu.pipeline_mode<synchronous>, transform_indices = @transform_1, window_bounds = array<i64: 128, 384>}, {pipeline_mode = #tpu.pipeline_mode<synchronous>, transform_indices = @transform_2, window_bounds = array<i64: 128, 384>}, {pipeline_mode = #tpu.pipeline_mode<synchronous>, transform_indices = @transform_3, window_bounds = array<i64: 1, 384>}, {pipeline_mode = #tpu.pipeline_mode<synchronous>, transform_indices = @transform_4, window_bounds = array<i64: 1, 128>}, {pipeline_mode = #tpu.pipeline_mode<synchronous>, transform_indices = @transform_5, window_bounds = array<i64: 128, 128>}, {pipeline_mode = #tpu.pipeline_mode<synchronous>, transform_indices = @transform_6, window_bounds = array<i64: 1, 128>}, {pipeline_mode = #tpu.pipeline_mode<synchronous>, transform_indices = @transform_7, window_bounds = array<i64: 16, 128>}]} {
    %c0_i32 = arith.constant 0 : i32
    %0 = arith.cmpi eq, %arg0, %c0_i32 : i32
    %1 = arith.extui %0 : i1 to i32
    %c0_i32_0 = arith.constant 0 : i32
    %2 = arith.cmpi ne, %1, %c0_i32_0 : i32
    scf.if %2 {
      %cst_54 = arith.constant 0.000000e+00 : f32
      %249 = vector.broadcast %cst_54 : f32 to vector<16x128xf32>
      %c0_55 = arith.constant 0 : index
      %c0_56 = arith.constant 0 : index
      %250 = vector.load %arg9[%c0_55, %c0_56] : memref<16x128xf32, #tpu.memory_space<vmem>>, vector<16x128xf32>
      tpu.vector_store %arg9[%c0_55, %c0_56], %249 {strides = array<i32>} : memref<16x128xf32, #tpu.memory_space<vmem>>, vector<16x128xf32>,
    } else {
    }
    %c0 = arith.constant 0 : index
    %c0_1 = arith.constant 0 : index
    %3 = vector.load %arg1[%c0, %c0_1] : memref<128x128xbf16, #tpu.memory_space<vmem>>, vector<128x128xbf16>
    %c0_2 = arith.constant 0 : index
    %c0_3 = arith.constant 0 : index
    %4 = vector.load %arg2[%c0_2, %c0_3] : memref<128x384xbf16, #tpu.memory_space<vmem>>, vector<128x384xbf16>
    %cst = arith.constant dense<0.000000e+00> : vector<128x384xf32>
    %5 = tpu.matmul %3, %4, %cst {dimension_numbers = #tpu.dot_dimension_numbers<[1], [0], [0], [1], [0, 0, 1, 1], [], []>} : vector<128x128xbf16>, vector<128x384xbf16>, vector<128x384xf32> -> vector<128x384xf32>
    %c0_4 = arith.constant 0 : index
    %c0_5 = arith.constant 0 : index
    %6 = vector.load %arg4[%c0_4, %c0_5] : memref<1x384xf32, #tpu.memory_space<vmem>>, vector<1x384xf32>
    %7 = vector.broadcast %6 : vector<1x384xf32> to vector<128x384xf32>
    %8 = arith.addf %5, %7 : vector<128x384xf32>
    %c0_6 = arith.constant 0 : index
    %c0_7 = arith.constant 0 : index
    %9 = vector.load %arg5[%c0_6, %c0_7] : memref<1x128xf32, #tpu.memory_space<vmem>>, vector<1x128xf32>
    %10 = vector.shape_cast %9 : vector<1x128xf32> to vector<1x128xf32>
    %11 = vector.broadcast %10 : vector<1x128xf32> to vector<16x128xf32>
    %c0_8 = arith.constant 0 : index
    %c0_9 = arith.constant 0 : index
    %12 = vector.load %arg9[%c0_8, %c0_9] : memref<16x128xf32, #tpu.memory_space<vmem>>, vector<16x128xf32>
    %13 = arith.truncf %12 : vector<16x128xf32> to vector<16x128xbf16>
    %c0_10 = arith.constant 0 : index
    %c0_11 = arith.constant 0 : index
    %14 = vector.load %arg3[%c0_10, %c0_11] : memref<128x384xbf16, #tpu.memory_space<vmem>>, vector<128x384xbf16>
    %cst_12 = arith.constant dense<0.000000e+00> : vector<16x384xf32>
    %15 = tpu.matmul %13, %14, %cst_12 {dimension_numbers = #tpu.dot_dimension_numbers<[1], [0], [0], [1], [0, 0, 1, 1], [], []>} : vector<16x128xbf16>, vector<128x384xbf16>, vector<16x384xf32> -> vector<16x384xf32>
    %16 = vector.extract_strided_slice %8 {offsets = [0, 0], sizes = [16, 384], strides = [1, 1]} : vector<128x384xf32> to vector<16x384xf32>
    %17 = vector.extract_strided_slice %16 {offsets = [0, 0], sizes = [16, 128], strides = [1, 1]} : vector<16x384xf32> to vector<16x128xf32>
    %18 = vector.extract_strided_slice %15 {offsets = [0, 0], sizes = [16, 128], strides = [1, 1]} : vector<16x384xf32> to vector<16x128xf32>
    %19 = arith.addf %17, %18 : vector<16x128xf32>
    %20 = arith.negf %19 : vector<16x128xf32>
    %21 = math.exp %20 : vector<16x128xf32>
    %cst_13 = arith.constant 1.000000e+00 : f32
    %22 = vector.broadcast %cst_13 : f32 to vector<16x128xf32>
    %23 = arith.addf %22, %21 : vector<16x128xf32>
    %24 = arith.divf %22, %23 : vector<16x128xf32>
    %25 = vector.extract_strided_slice %16 {offsets = [0, 128], sizes = [16, 128], strides = [1, 1]} : vector<16x384xf32> to vector<16x128xf32>
    %26 = vector.extract_strided_slice %15 {offsets = [0, 128], sizes = [16, 128], strides = [1, 1]} : vector<16x384xf32> to vector<16x128xf32>
    %27 = arith.addf %25, %26 : vector<16x128xf32>
    %28 = arith.negf %27 : vector<16x128xf32>
    %29 = math.exp %28 : vector<16x128xf32>
    %cst_14 = arith.constant 1.000000e+00 : f32
    %30 = vector.broadcast %cst_14 : f32 to vector<16x128xf32>
    %31 = arith.addf %30, %29 : vector<16x128xf32>
    %32 = arith.divf %30, %31 : vector<16x128xf32>
    %33 = vector.extract_strided_slice %16 {offsets = [0, 256], sizes = [16, 128], strides = [1, 1]} : vector<16x384xf32> to vector<16x128xf32>
    %34 = vector.extract_strided_slice %15 {offsets = [0, 256], sizes = [16, 128], strides = [1, 1]} : vector<16x384xf32> to vector<16x128xf32>
    %35 = arith.addf %34, %11 : vector<16x128xf32>
    %36 = arith.mulf %24, %35 : vector<16x128xf32>
    %37 = arith.addf %33, %36 : vector<16x128xf32>
    %38 = math.tanh %37 : vector<16x128xf32>
    %39 = arith.subf %12, %38 : vector<16x128xf32>
    %40 = arith.mulf %32, %39 : vector<16x128xf32>
    %41 = arith.addf %38, %40 : vector<16x128xf32>
    %42 = arith.truncf %41 : vector<16x128xf32> to vector<16x128xbf16>
    %c0_15 = arith.constant 0 : index
    %c0_16 = arith.constant 0 : index
    %43 = vector.load %arg3[%c0_15, %c0_16] : memref<128x384xbf16, #tpu.memory_space<vmem>>, vector<128x384xbf16>
    %cst_17 = arith.constant dense<0.000000e+00> : vector<16x384xf32>
    %44 = tpu.matmul %42, %43, %cst_17 {dimension_numbers = #tpu.dot_dimension_numbers<[1], [0], [0], [1], [0, 0, 1, 1], [], []>} : vector<16x128xbf16>, vector<128x384xbf16>, vector<16x384xf32> -> vector<16x384xf32>
    %45 = vector.extract_strided_slice %8 {offsets = [16, 0], sizes = [16, 384], strides = [1, 1]} : vector<128x384xf32> to vector<16x384xf32>
    %46 = vector.extract_strided_slice %45 {offsets = [0, 0], sizes = [16, 128], strides = [1, 1]} : vector<16x384xf32> to vector<16x128xf32>
    %47 = vector.extract_strided_slice %44 {offsets = [0, 0], sizes = [16, 128], strides = [1, 1]} : vector<16x384xf32> to vector<16x128xf32>
    %48 = arith.addf %46, %47 : vector<16x128xf32>
    %49 = arith.negf %48 : vector<16x128xf32>
    %50 = math.exp %49 : vector<16x128xf32>
    %cst_18 = arith.constant 1.000000e+00 : f32
    %51 = vector.broadcast %cst_18 : f32 to vector<16x128xf32>
    %52 = arith.addf %51, %50 : vector<16x128xf32>
    %53 = arith.divf %51, %52 : vector<16x128xf32>
    %54 = vector.extract_strided_slice %45 {offsets = [0, 128], sizes = [16, 128], strides = [1, 1]} : vector<16x384xf32> to vector<16x128xf32>
    %55 = vector.extract_strided_slice %44 {offsets = [0, 128], sizes = [16, 128], strides = [1, 1]} : vector<16x384xf32> to vector<16x128xf32>
    %56 = arith.addf %54, %55 : vector<16x128xf32>
    %57 = arith.negf %56 : vector<16x128xf32>
    %58 = math.exp %57 : vector<16x128xf32>
    %cst_19 = arith.constant 1.000000e+00 : f32
    %59 = vector.broadcast %cst_19 : f32 to vector<16x128xf32>
    %60 = arith.addf %59, %58 : vector<16x128xf32>
    %61 = arith.divf %59, %60 : vector<16x128xf32>
    %62 = vector.extract_strided_slice %45 {offsets = [0, 256], sizes = [16, 128], strides = [1, 1]} : vector<16x384xf32> to vector<16x128xf32>
    %63 = vector.extract_strided_slice %44 {offsets = [0, 256], sizes = [16, 128], strides = [1, 1]} : vector<16x384xf32> to vector<16x128xf32>
    %64 = arith.addf %63, %11 : vector<16x128xf32>
    %65 = arith.mulf %53, %64 : vector<16x128xf32>
    %66 = arith.addf %62, %65 : vector<16x128xf32>
    %67 = math.tanh %66 : vector<16x128xf32>
    %68 = arith.subf %41, %67 : vector<16x128xf32>
    %69 = arith.mulf %61, %68 : vector<16x128xf32>
    %70 = arith.addf %67, %69 : vector<16x128xf32>
    %71 = arith.truncf %70 : vector<16x128xf32> to vector<16x128xbf16>
    %c0_20 = arith.constant 0 : index
    %c0_21 = arith.constant 0 : index
    %72 = vector.load %arg3[%c0_20, %c0_21] : memref<128x384xbf16, #tpu.memory_space<vmem>>, vector<128x384xbf16>
    %cst_22 = arith.constant dense<0.000000e+00> : vector<16x384xf32>
    %73 = tpu.matmul %71, %72, %cst_22 {dimension_numbers = #tpu.dot_dimension_numbers<[1], [0], [0], [1], [0, 0, 1, 1], [], []>} : vector<16x128xbf16>, vector<128x384xbf16>, vector<16x384xf32> -> vector<16x384xf32>
    %74 = vector.extract_strided_slice %8 {offsets = [32, 0], sizes = [16, 384], strides = [1, 1]} : vector<128x384xf32> to vector<16x384xf32>
    %75 = vector.extract_strided_slice %74 {offsets = [0, 0], sizes = [16, 128], strides = [1, 1]} : vector<16x384xf32> to vector<16x128xf32>
    %76 = vector.extract_strided_slice %73 {offsets = [0, 0], sizes = [16, 128], strides = [1, 1]} : vector<16x384xf32> to vector<16x128xf32>
    %77 = arith.addf %75, %76 : vector<16x128xf32>
    %78 = arith.negf %77 : vector<16x128xf32>
    %79 = math.exp %78 : vector<16x128xf32>
    %cst_23 = arith.constant 1.000000e+00 : f32
    %80 = vector.broadcast %cst_23 : f32 to vector<16x128xf32>
    %81 = arith.addf %80, %79 : vector<16x128xf32>
    %82 = arith.divf %80, %81 : vector<16x128xf32>
    %83 = vector.extract_strided_slice %74 {offsets = [0, 128], sizes = [16, 128], strides = [1, 1]} : vector<16x384xf32> to vector<16x128xf32>
    %84 = vector.extract_strided_slice %73 {offsets = [0, 128], sizes = [16, 128], strides = [1, 1]} : vector<16x384xf32> to vector<16x128xf32>
    %85 = arith.addf %83, %84 : vector<16x128xf32>
    %86 = arith.negf %85 : vector<16x128xf32>
    %87 = math.exp %86 : vector<16x128xf32>
    %cst_24 = arith.constant 1.000000e+00 : f32
    %88 = vector.broadcast %cst_24 : f32 to vector<16x128xf32>
    %89 = arith.addf %88, %87 : vector<16x128xf32>
    %90 = arith.divf %88, %89 : vector<16x128xf32>
    %91 = vector.extract_strided_slice %74 {offsets = [0, 256], sizes = [16, 128], strides = [1, 1]} : vector<16x384xf32> to vector<16x128xf32>
    %92 = vector.extract_strided_slice %73 {offsets = [0, 256], sizes = [16, 128], strides = [1, 1]} : vector<16x384xf32> to vector<16x128xf32>
    %93 = arith.addf %92, %11 : vector<16x128xf32>
    %94 = arith.mulf %82, %93 : vector<16x128xf32>
    %95 = arith.addf %91, %94 : vector<16x128xf32>
    %96 = math.tanh %95 : vector<16x128xf32>
    %97 = arith.subf %70, %96 : vector<16x128xf32>
    %98 = arith.mulf %90, %97 : vector<16x128xf32>
    %99 = arith.addf %96, %98 : vector<16x128xf32>
    %100 = arith.truncf %99 : vector<16x128xf32> to vector<16x128xbf16>
    %c0_25 = arith.constant 0 : index
    %c0_26 = arith.constant 0 : index
    %101 = vector.load %arg3[%c0_25, %c0_26] : memref<128x384xbf16, #tpu.memory_space<vmem>>, vector<128x384xbf16>
    %cst_27 = arith.constant dense<0.000000e+00> : vector<16x384xf32>
    %102 = tpu.matmul %100, %101, %cst_27 {dimension_numbers = #tpu.dot_dimension_numbers<[1], [0], [0], [1], [0, 0, 1, 1], [], []>} : vector<16x128xbf16>, vector<128x384xbf16>, vector<16x384xf32> -> vector<16x384xf32>
    %103 = vector.extract_strided_slice %8 {offsets = [48, 0], sizes = [16, 384], strides = [1, 1]} : vector<128x384xf32> to vector<16x384xf32>
    %104 = vector.extract_strided_slice %103 {offsets = [0, 0], sizes = [16, 128], strides = [1, 1]} : vector<16x384xf32> to vector<16x128xf32>
    %105 = vector.extract_strided_slice %102 {offsets = [0, 0], sizes = [16, 128], strides = [1, 1]} : vector<16x384xf32> to vector<16x128xf32>
    %106 = arith.addf %104, %105 : vector<16x128xf32>
    %107 = arith.negf %106 : vector<16x128xf32>
    %108 = math.exp %107 : vector<16x128xf32>
    %cst_28 = arith.constant 1.000000e+00 : f32
    %109 = vector.broadcast %cst_28 : f32 to vector<16x128xf32>
    %110 = arith.addf %109, %108 : vector<16x128xf32>
    %111 = arith.divf %109, %110 : vector<16x128xf32>
    %112 = vector.extract_strided_slice %103 {offsets = [0, 128], sizes = [16, 128], strides = [1, 1]} : vector<16x384xf32> to vector<16x128xf32>
    %113 = vector.extract_strided_slice %102 {offsets = [0, 128], sizes = [16, 128], strides = [1, 1]} : vector<16x384xf32> to vector<16x128xf32>
    %114 = arith.addf %112, %113 : vector<16x128xf32>
    %115 = arith.negf %114 : vector<16x128xf32>
    %116 = math.exp %115 : vector<16x128xf32>
    %cst_29 = arith.constant 1.000000e+00 : f32
    %117 = vector.broadcast %cst_29 : f32 to vector<16x128xf32>
    %118 = arith.addf %117, %116 : vector<16x128xf32>
    %119 = arith.divf %117, %118 : vector<16x128xf32>
    %120 = vector.extract_strided_slice %103 {offsets = [0, 256], sizes = [16, 128], strides = [1, 1]} : vector<16x384xf32> to vector<16x128xf32>
    %121 = vector.extract_strided_slice %102 {offsets = [0, 256], sizes = [16, 128], strides = [1, 1]} : vector<16x384xf32> to vector<16x128xf32>
    %122 = arith.addf %121, %11 : vector<16x128xf32>
    %123 = arith.mulf %111, %122 : vector<16x128xf32>
    %124 = arith.addf %120, %123 : vector<16x128xf32>
    %125 = math.tanh %124 : vector<16x128xf32>
    %126 = arith.subf %99, %125 : vector<16x128xf32>
    %127 = arith.mulf %119, %126 : vector<16x128xf32>
    %128 = arith.addf %125, %127 : vector<16x128xf32>
    %129 = arith.truncf %128 : vector<16x128xf32> to vector<16x128xbf16>
    %c0_30 = arith.constant 0 : index
    %c0_31 = arith.constant 0 : index
    %130 = vector.load %arg3[%c0_30, %c0_31] : memref<128x384xbf16, #tpu.memory_space<vmem>>, vector<128x384xbf16>
    %cst_32 = arith.constant dense<0.000000e+00> : vector<16x384xf32>
    %131 = tpu.matmul %129, %130, %cst_32 {dimension_numbers = #tpu.dot_dimension_numbers<[1], [0], [0], [1], [0, 0, 1, 1], [], []>} : vector<16x128xbf16>, vector<128x384xbf16>, vector<16x384xf32> -> vector<16x384xf32>
    %132 = vector.extract_strided_slice %8 {offsets = [64, 0], sizes = [16, 384], strides = [1, 1]} : vector<128x384xf32> to vector<16x384xf32>
    %133 = vector.extract_strided_slice %132 {offsets = [0, 0], sizes = [16, 128], strides = [1, 1]} : vector<16x384xf32> to vector<16x128xf32>
    %134 = vector.extract_strided_slice %131 {offsets = [0, 0], sizes = [16, 128], strides = [1, 1]} : vector<16x384xf32> to vector<16x128xf32>
    %135 = arith.addf %133, %134 : vector<16x128xf32>
    %136 = arith.negf %135 : vector<16x128xf32>
    %137 = math.exp %136 : vector<16x128xf32>
    %cst_33 = arith.constant 1.000000e+00 : f32
    %138 = vector.broadcast %cst_33 : f32 to vector<16x128xf32>
    %139 = arith.addf %138, %137 : vector<16x128xf32>
    %140 = arith.divf %138, %139 : vector<16x128xf32>
    %141 = vector.extract_strided_slice %132 {offsets = [0, 128], sizes = [16, 128], strides = [1, 1]} : vector<16x384xf32> to vector<16x128xf32>
    %142 = vector.extract_strided_slice %131 {offsets = [0, 128], sizes = [16, 128], strides = [1, 1]} : vector<16x384xf32> to vector<16x128xf32>
    %143 = arith.addf %141, %142 : vector<16x128xf32>
    %144 = arith.negf %143 : vector<16x128xf32>
    %145 = math.exp %144 : vector<16x128xf32>
    %cst_34 = arith.constant 1.000000e+00 : f32
    %146 = vector.broadcast %cst_34 : f32 to vector<16x128xf32>
    %147 = arith.addf %146, %145 : vector<16x128xf32>
    %148 = arith.divf %146, %147 : vector<16x128xf32>
    %149 = vector.extract_strided_slice %132 {offsets = [0, 256], sizes = [16, 128], strides = [1, 1]} : vector<16x384xf32> to vector<16x128xf32>
    %150 = vector.extract_strided_slice %131 {offsets = [0, 256], sizes = [16, 128], strides = [1, 1]} : vector<16x384xf32> to vector<16x128xf32>
    %151 = arith.addf %150, %11 : vector<16x128xf32>
    %152 = arith.mulf %140, %151 : vector<16x128xf32>
    %153 = arith.addf %149, %152 : vector<16x128xf32>
    %154 = math.tanh %153 : vector<16x128xf32>
    %155 = arith.subf %128, %154 : vector<16x128xf32>
    %156 = arith.mulf %148, %155 : vector<16x128xf32>
    %157 = arith.addf %154, %156 : vector<16x128xf32>
    %158 = arith.truncf %157 : vector<16x128xf32> to vector<16x128xbf16>
    %c0_35 = arith.constant 0 : index
    %c0_36 = arith.constant 0 : index
    %159 = vector.load %arg3[%c0_35, %c0_36] : memref<128x384xbf16, #tpu.memory_space<vmem>>, vector<128x384xbf16>
    %cst_37 = arith.constant dense<0.000000e+00> : vector<16x384xf32>
    %160 = tpu.matmul %158, %159, %cst_37 {dimension_numbers = #tpu.dot_dimension_numbers<[1], [0], [0], [1], [0, 0, 1, 1], [], []>} : vector<16x128xbf16>, vector<128x384xbf16>, vector<16x384xf32> -> vector<16x384xf32>
    %161 = vector.extract_strided_slice %8 {offsets = [80, 0], sizes = [16, 384], strides = [1, 1]} : vector<128x384xf32> to vector<16x384xf32>
    %162 = vector.extract_strided_slice %161 {offsets = [0, 0], sizes = [16, 128], strides = [1, 1]} : vector<16x384xf32> to vector<16x128xf32>
    %163 = vector.extract_strided_slice %160 {offsets = [0, 0], sizes = [16, 128], strides = [1, 1]} : vector<16x384xf32> to vector<16x128xf32>
    %164 = arith.addf %162, %163 : vector<16x128xf32>
    %165 = arith.negf %164 : vector<16x128xf32>
    %166 = math.exp %165 : vector<16x128xf32>
    %cst_38 = arith.constant 1.000000e+00 : f32
    %167 = vector.broadcast %cst_38 : f32 to vector<16x128xf32>
    %168 = arith.addf %167, %166 : vector<16x128xf32>
    %169 = arith.divf %167, %168 : vector<16x128xf32>
    %170 = vector.extract_strided_slice %161 {offsets = [0, 128], sizes = [16, 128], strides = [1, 1]} : vector<16x384xf32> to vector<16x128xf32>
    %171 = vector.extract_strided_slice %160 {offsets = [0, 128], sizes = [16, 128], strides = [1, 1]} : vector<16x384xf32> to vector<16x128xf32>
    %172 = arith.addf %170, %171 : vector<16x128xf32>
    %173 = arith.negf %172 : vector<16x128xf32>
    %174 = math.exp %173 : vector<16x128xf32>
    %cst_39 = arith.constant 1.000000e+00 : f32
    %175 = vector.broadcast %cst_39 : f32 to vector<16x128xf32>
    %176 = arith.addf %175, %174 : vector<16x128xf32>
    %177 = arith.divf %175, %176 : vector<16x128xf32>
    %178 = vector.extract_strided_slice %161 {offsets = [0, 256], sizes = [16, 128], strides = [1, 1]} : vector<16x384xf32> to vector<16x128xf32>
    %179 = vector.extract_strided_slice %160 {offsets = [0, 256], sizes = [16, 128], strides = [1, 1]} : vector<16x384xf32> to vector<16x128xf32>
    %180 = arith.addf %179, %11 : vector<16x128xf32>
    %181 = arith.mulf %169, %180 : vector<16x128xf32>
    %182 = arith.addf %178, %181 : vector<16x128xf32>
    %183 = math.tanh %182 : vector<16x128xf32>
    %184 = arith.subf %157, %183 : vector<16x128xf32>
    %185 = arith.mulf %177, %184 : vector<16x128xf32>
    %186 = arith.addf %183, %185 : vector<16x128xf32>
    %187 = arith.truncf %186 : vector<16x128xf32> to vector<16x128xbf16>
    %c0_40 = arith.constant 0 : index
    %c0_41 = arith.constant 0 : index
    %188 = vector.load %arg3[%c0_40, %c0_41] : memref<128x384xbf16, #tpu.memory_space<vmem>>, vector<128x384xbf16>
    %cst_42 = arith.constant dense<0.000000e+00> : vector<16x384xf32>
    %189 = tpu.matmul %187, %188, %cst_42 {dimension_numbers = #tpu.dot_dimension_numbers<[1], [0], [0], [1], [0, 0, 1, 1], [], []>} : vector<16x128xbf16>, vector<128x384xbf16>, vector<16x384xf32> -> vector<16x384xf32>
    %190 = vector.extract_strided_slice %8 {offsets = [96, 0], sizes = [16, 384], strides = [1, 1]} : vector<128x384xf32> to vector<16x384xf32>
    %191 = vector.extract_strided_slice %190 {offsets = [0, 0], sizes = [16, 128], strides = [1, 1]} : vector<16x384xf32> to vector<16x128xf32>
    %192 = vector.extract_strided_slice %189 {offsets = [0, 0], sizes = [16, 128], strides = [1, 1]} : vector<16x384xf32> to vector<16x128xf32>
    %193 = arith.addf %191, %192 : vector<16x128xf32>
    %194 = arith.negf %193 : vector<16x128xf32>
    %195 = math.exp %194 : vector<16x128xf32>
    %cst_43 = arith.constant 1.000000e+00 : f32
    %196 = vector.broadcast %cst_43 : f32 to vector<16x128xf32>
    %197 = arith.addf %196, %195 : vector<16x128xf32>
    %198 = arith.divf %196, %197 : vector<16x128xf32>
    %199 = vector.extract_strided_slice %190 {offsets = [0, 128], sizes = [16, 128], strides = [1, 1]} : vector<16x384xf32> to vector<16x128xf32>
    %200 = vector.extract_strided_slice %189 {offsets = [0, 128], sizes = [16, 128], strides = [1, 1]} : vector<16x384xf32> to vector<16x128xf32>
    %201 = arith.addf %199, %200 : vector<16x128xf32>
    %202 = arith.negf %201 : vector<16x128xf32>
    %203 = math.exp %202 : vector<16x128xf32>
    %cst_44 = arith.constant 1.000000e+00 : f32
    %204 = vector.broadcast %cst_44 : f32 to vector<16x128xf32>
    %205 = arith.addf %204, %203 : vector<16x128xf32>
    %206 = arith.divf %204, %205 : vector<16x128xf32>
    %207 = vector.extract_strided_slice %190 {offsets = [0, 256], sizes = [16, 128], strides = [1, 1]} : vector<16x384xf32> to vector<16x128xf32>
    %208 = vector.extract_strided_slice %189 {offsets = [0, 256], sizes = [16, 128], strides = [1, 1]} : vector<16x384xf32> to vector<16x128xf32>
    %209 = arith.addf %208, %11 : vector<16x128xf32>
    %210 = arith.mulf %198, %209 : vector<16x128xf32>
    %211 = arith.addf %207, %210 : vector<16x128xf32>
    %212 = math.tanh %211 : vector<16x128xf32>
    %213 = arith.subf %186, %212 : vector<16x128xf32>
    %214 = arith.mulf %206, %213 : vector<16x128xf32>
    %215 = arith.addf %212, %214 : vector<16x128xf32>
    %216 = arith.truncf %215 : vector<16x128xf32> to vector<16x128xbf16>
    %c0_45 = arith.constant 0 : index
    %c0_46 = arith.constant 0 : index
    %217 = vector.load %arg3[%c0_45, %c0_46] : memref<128x384xbf16, #tpu.memory_space<vmem>>, vector<128x384xbf16>
    %cst_47 = arith.constant dense<0.000000e+00> : vector<16x384xf32>
    %218 = tpu.matmul %216, %217, %cst_47 {dimension_numbers = #tpu.dot_dimension_numbers<[1], [0], [0], [1], [0, 0, 1, 1], [], []>} : vector<16x128xbf16>, vector<128x384xbf16>, vector<16x384xf32> -> vector<16x384xf32>
    %219 = vector.extract_strided_slice %8 {offsets = [112, 0], sizes = [16, 384], strides = [1, 1]} : vector<128x384xf32> to vector<16x384xf32>
    %220 = vector.extract_strided_slice %219 {offsets = [0, 0], sizes = [16, 128], strides = [1, 1]} : vector<16x384xf32> to vector<16x128xf32>
    %221 = vector.extract_strided_slice %218 {offsets = [0, 0], sizes = [16, 128], strides = [1, 1]} : vector<16x384xf32> to vector<16x128xf32>
    %222 = arith.addf %220, %221 : vector<16x128xf32>
    %223 = arith.negf %222 : vector<16x128xf32>
    %224 = math.exp %223 : vector<16x128xf32>
    %cst_48 = arith.constant 1.000000e+00 : f32
    %225 = vector.broadcast %cst_48 : f32 to vector<16x128xf32>
    %226 = arith.addf %225, %224 : vector<16x128xf32>
    %227 = arith.divf %225, %226 : vector<16x128xf32>
    %228 = vector.extract_strided_slice %219 {offsets = [0, 128], sizes = [16, 128], strides = [1, 1]} : vector<16x384xf32> to vector<16x128xf32>
    %229 = vector.extract_strided_slice %218 {offsets = [0, 128], sizes = [16, 128], strides = [1, 1]} : vector<16x384xf32> to vector<16x128xf32>
    %230 = arith.addf %228, %229 : vector<16x128xf32>
    %231 = arith.negf %230 : vector<16x128xf32>
    %232 = math.exp %231 : vector<16x128xf32>
    %cst_49 = arith.constant 1.000000e+00 : f32
    %233 = vector.broadcast %cst_49 : f32 to vector<16x128xf32>
    %234 = arith.addf %233, %232 : vector<16x128xf32>
    %235 = arith.divf %233, %234 : vector<16x128xf32>
    %236 = vector.extract_strided_slice %219 {offsets = [0, 256], sizes = [16, 128], strides = [1, 1]} : vector<16x384xf32> to vector<16x128xf32>
    %237 = vector.extract_strided_slice %218 {offsets = [0, 256], sizes = [16, 128], strides = [1, 1]} : vector<16x384xf32> to vector<16x128xf32>
    %238 = arith.addf %237, %11 : vector<16x128xf32>
    %239 = arith.mulf %227, %238 : vector<16x128xf32>
    %240 = arith.addf %236, %239 : vector<16x128xf32>
    %241 = math.tanh %240 : vector<16x128xf32>
    %242 = arith.subf %215, %241 : vector<16x128xf32>
    %243 = arith.mulf %235, %242 : vector<16x128xf32>
    %244 = arith.addf %241, %243 : vector<16x128xf32>
    %c0_50 = arith.constant 0 : index
    %c0_51 = arith.constant 0 : index
    %245 = vector.load %arg9[%c0_50, %c0_51] : memref<16x128xf32, #tpu.memory_space<vmem>>, vector<16x128xf32>
    tpu.vector_store %arg9[%c0_50, %c0_51], %244 {strides = array<i32>} : memref<16x128xf32, #tpu.memory_space<vmem>>, vector<16x128xf32>,
    %c0_i32_52 = arith.constant 0 : i32
    %246 = arith.cmpi eq, %arg0, %c0_i32_52 : i32
    %247 = arith.extui %246 : i1 to i32
    %c0_i32_53 = arith.constant 0 : i32
    %248 = arith.cmpi ne, %247, %c0_i32_53 : i32
    scf.if %248 {
      %249 = arith.truncf %244 : vector<16x128xf32> to vector<16x128xbf16>
      %c0_54 = arith.constant 0 : index
      %c0_55 = arith.constant 0 : index
      %250 = vector.load %arg6[%c0_54, %c0_55] : memref<128x128xbf16, #tpu.memory_space<vmem>>, vector<128x128xbf16>
      %cst_56 = arith.constant dense<0.000000e+00> : vector<16x128xf32>
      %251 = tpu.matmul %249, %250, %cst_56 {dimension_numbers = #tpu.dot_dimension_numbers<[1], [0], [0], [1], [0, 0, 1, 1], [], []>} : vector<16x128xbf16>, vector<128x128xbf16>, vector<16x128xf32> -> vector<16x128xf32>
      %c0_57 = arith.constant 0 : index
      %c0_58 = arith.constant 0 : index
      %252 = vector.load %arg7[%c0_57, %c0_58] : memref<1x128xf32, #tpu.memory_space<vmem>>, vector<1x128xf32>
      %253 = vector.broadcast %252 : vector<1x128xf32> to vector<16x128xf32>
      %254 = arith.addf %251, %253 : vector<16x128xf32>
      %c0_59 = arith.constant 0 : index
      %c0_60 = arith.constant 0 : index
      %255 = vector.load %arg8[%c0_59, %c0_60] : memref<16x128xf32, #tpu.memory_space<vmem>>, vector<16x128xf32>
      tpu.vector_store %arg8[%c0_59, %c0_60], %254 {strides = array<i32>} : memref<16x128xf32, #tpu.memory_space<vmem>>, vector<16x128xf32>,
    } else {
    }
    return
  }
  func.func @transform_0(%arg0: i32) -> (i32, i32) {
    %c0_i32 = arith.constant 0 : i32
    %c0_i32_0 = arith.constant 0 : i32
    return %arg0, %c0_i32 : i32, i32
  }
  func.func @transform_1(%arg0: i32) -> (i32, i32) {
    %c0_i32 = arith.constant 0 : i32
    %c0_i32_0 = arith.constant 0 : i32
    %c0_i32_1 = arith.constant 0 : i32
    return %c0_i32, %c0_i32_0 : i32, i32
  }
  func.func @transform_2(%arg0: i32) -> (i32, i32) {
    %c0_i32 = arith.constant 0 : i32
    %c0_i32_0 = arith.constant 0 : i32
    %c0_i32_1 = arith.constant 0 : i32
    return %c0_i32, %c0_i32_0 : i32, i32
  }
  func.func @transform_3(%arg0: i32) -> (i32, i32) {
    %c0_i32 = arith.constant 0 : i32
    %c0_i32_0 = arith.constant 0 : i32
    %c0_i32_1 = arith.constant 0 : i32
    return %c0_i32, %c0_i32_0 : i32, i32
  }
  func.func @transform_4(%arg0: i32) -> (i32, i32) {
    %c0_i32 = arith.constant 0 : i32
    %c0_i32_0 = arith.constant 0 : i32
    %c0_i32_1 = arith.constant 0 : i32
    return %c0_i32, %c0_i32_0 : i32, i32
  }
  func.func @transform_5(%arg0: i32) -> (i32, i32) {
    %c0_i32 = arith.constant 0 : i32
    %c0_i32_0 = arith.constant 0 : i32
    %c0_i32_1 = arith.constant 0 : i32
    return %c0_i32, %c0_i32_0 : i32, i32
  }
  func.func @transform_6(%arg0: i32) -> (i32, i32) {
    %c0_i32 = arith.constant 0 : i32
    %c0_i32_0 = arith.constant 0 : i32
    %c0_i32_1 = arith.constant 0 : i32
    return %c0_i32, %c0_i32_0 : i32, i32
  }
  func.func @transform_7(%arg0: i32) -> (i32, i32) {
    %c0_i32 = arith.constant 0 : i32
    %c0_i32_0 = arith.constant 0 : i32
    %c0_i32_1 = arith.constant 0 : i32
    return %c0_i32, %c0_i32_0 : i32, i32
  }
}

</mosaic_0001>

<bundles_post_ra>
// kernel: gru_model_forward.3
= control target key start
LH: loop header
LB: loop body
LE: loop exit
PB: predicated region body
PF: predicated region fallthrough
CT: control target
= control target key end

     0   :  { %12 = vsyncpa [#allocation4], 0  ;;  %s3578_s0 = inlined_call_operand.hbm [shape: bf16[128,128], index: 0, kind: input, shape index: {}]   ;;  %s3579_s1 = inlined_call_operand.hbm [shape: bf16[128,384], index: 1, kind: input, shape index: {}]   ;;  %s3580_s2 = inlined_call_operand.hbm [shape: bf16[128,384], index: 2, kind: input, shape index: {}]   ;;  %s3581_s3 = inlined_call_operand.hbm [shape: f32[1,384], index: 3, kind: input, shape index: {}]   ;;  %s3582_s4 = inlined_call_operand.hbm [shape: f32[1,128], index: 4, kind: input, shape index: {}]   ;;  %s3583_s5 = inlined_call_operand.hbm [shape: bf16[128,128], index: 5, kind: input, shape index: {}]   ;;  %s3584_s6 = inlined_call_operand.hbm [shape: f32[1,128], index: 6, kind: input, shape index: {}]   ;;  %s3585_s7 = inlined_call_operand.hbm [shape: f32[16,128], index: 7, kind: output, shape index: {}]  }
   0x1   :  { %13 = vsyncpa [#allocation7], 0 }
   0x2   :  { %14 = vsyncpa [#allocation10], 0 }
   0x3   :  { %15 = vsyncpa [#allocation13], 0 }
   0x4   :  { %16 = vsyncpa [#allocation5], 0  ;;  %s2839_s24 = smov [#allocation6]   ;;  %s2653_s28 = scalar_lea.hbm %s3579_s1, 3072 }
   0x5   :  { %s34_s25 = sshll.u32 %s2839_s24, 4  ;;  %p2654_p0 = scmp.ne.s32.totalorder %s3579_s1, %s2653_s28  ;;  %s35_s25 = int_to_ptr.vmem [resolvable:$true] %s34_s25 }
   0x6   :  { %p2657_p1 = scmp.lt.u32.totalorder %s2653_s28, %s3579_s1 }
   0x8   :  { %p2659_p2 = pnand %p2657_p1, %p2654_p0 }
   0xa   :  { %2662 = shalt.err (!%p2659_p2)
}
   0xb   :  { %s2663_s10 = scalar_lea.vmem %s35_s25, 3072  ;;  %p2668_p4 = scmp.lt.s32.totalorder %s35_s25, %s35_s25 }
   0xc   :  { %p2664_p3 = scmp.ne.s32.totalorder %s35_s25, %s2663_s10  ;;  %p2669_p5 = scmp.lt.s32.totalorder %s2663_s10, %s2663_s10 }
   0xe   :  { %p2670_p6 = por %p2669_p5, %p2668_p4 }
  0x10   :  { %p2671_p7 = pnand %p2670_p6, %p2664_p3 }
  0x12   :  { %2674 = shalt.err (!%p2671_p7)
}
  0x13   :  { %s2840_s11 = smov 192   ;;  %s2841_s12 = smov 12  }
  0x14   :  { %40 = dma.hbm_to_vmem [thread:$0]  %s3579_s1, 3072, %s35_s25, [#allocation7], %s2840_s11, %s2840_s11, %s2841_s12  }
  0x15   :  { %s2842_s15 = smov [#allocation9]   ;;  %s2675_s19 = scalar_lea.hbm %s3581_s3, 48 }
  0x16   :  { %s59_s16 = sshll.u32 %s2842_s15, 4  ;;  %p2676_p8 = scmp.ne.s32.totalorder %s3581_s3, %s2675_s19  ;;  %s60_s16 = int_to_ptr.vmem [resolvable:$true] %s59_s16 }
  0x17   :  { %p2679_p9 = scmp.lt.u32.totalorder %s2675_s19, %s3581_s3 }
  0x19   :  { %p2681_p10 = pnand %p2679_p9, %p2676_p8 }
  0x1b   :  { %2684 = shalt.err (!%p2681_p10)
}
  0x1c   :  { %s2685_s24 = scalar_lea.vmem %s60_s16, 48  ;;  %s2689_s1 = scalar_lea.vmem %s60_s16, 64 }
  0x1d   :  { %p2686_p11 = scmp.ne.s32.totalorder %s60_s16, %s2685_s24  ;;  %p2690_p12 = scmp.lt.s32.totalorder %s60_s16, %s60_s16 }
  0x1e   :  { %p2691_p13 = scmp.lt.s32.totalorder %s2689_s1, %s2685_s24 }
  0x20   :  { %p2692_p0 = por %p2691_p13, %p2690_p12 }
  0x22   :  { %p2693_p1 = pnand %p2692_p0, %p2686_p11 }
  0x24   :  { %2696 = shalt.err (!%p2693_p1)
}
  0x25   :  { %62 = dma.hbm_to_vmem [thread:$0]  %s3581_s3, 48, %s60_s16, [#allocation10]  }
  0x26   :  { %s2843_s27 = smov [#allocation12]   ;;  %s2844_s29 = smov [#allocation3]  }
  0x27   :  { %s78_s28 = sshll.u32 %s2843_s27, 4  ;;  %s22_s30 = sshll.u32 %s2844_s29, 4  ;;  %s79_s28 = int_to_ptr.vmem [resolvable:$true] %s78_s28  ;;  %s2924_s30 = int_to_ptr.vmem [resolvable:$true] %s22_s30 }
  0x28   :  { %s2697_s10 = scalar_lea.hbm %s3583_s5, 1024 }
  0x29   :  { %p2698_p2 = scmp.ne.s32.totalorder %s3583_s5, %s2697_s10  ;;  %p2701_p3 = scmp.lt.u32.totalorder %s2697_s10, %s3583_s5 }
  0x2b   :  { %p2703_p4 = pnand %p2701_p3, %p2698_p2 }
  0x2d   :  { %2706 = shalt.err (!%p2703_p4)
}
  0x2e   :  { %s2707_s3 = scalar_lea.vmem %s79_s28, 1024  ;;  %p2712_p6 = scmp.lt.s32.totalorder %s79_s28, %s79_s28 }
  0x2f   :  { %p2708_p5 = scmp.ne.s32.totalorder %s79_s28, %s2707_s3  ;;  %p2713_p7 = scmp.lt.s32.totalorder %s2707_s3, %s2707_s3 }
  0x31   :  { %p2714_p8 = por %p2713_p7, %p2712_p6 }
  0x33   :  { %p2715_p9 = pnand %p2714_p8, %p2708_p5 }
  0x35   :  { %2718 = shalt.err (!%p2715_p9)
}
  0x36   :  { %s2845_s16 = smov 64   ;;  %s2846_s18 = smov 4  }
  0x37   :  { %84 = dma.hbm_to_vmem [thread:$0]  %s3583_s5, 1024, %s79_s28, [#allocation13], %s2845_s16, %s2845_s16, %s2846_s18  }
  0x38   :  { %s2719_s23 = scalar_lea.hbm %s3578_s0, 1024 }
  0x39   :  { %p2720_p10 = scmp.ne.s32.totalorder %s3578_s0, %s2719_s23  ;;  %p2723_p11 = scmp.lt.u32.totalorder %s2719_s23, %s3578_s0 }
  0x3b   :  { %p2725_p12 = pnand %p2723_p11, %p2720_p10 }
  0x3d   :  { %2728 = shalt.err (!%p2725_p12)
}
  0x3e   :  { %s2729_s27 = scalar_lea.vmem %s2924_s30, 1024  ;;  %p2734_p0 = scmp.lt.s32.totalorder %s2924_s30, %s2924_s30 }
  0x3f   :  { %p2730_p13 = scmp.ne.s32.totalorder %s2924_s30, %s2729_s27  ;;  %p2735_p1 = scmp.lt.s32.totalorder %s2729_s27, %s2729_s27 }
  0x41   :  { %p2736_p2 = por %p2735_p1, %p2734_p0 }
  0x43   :  { %p2737_p3 = pnand %p2736_p2, %p2730_p13 }
  0x45   :  { %2740 = shalt.err (!%p2737_p3)
}
  0x46   :  { %28 = dma.hbm_to_vmem [thread:$0]  %s3578_s0, 1024, %s2924_s30, [#allocation4], %s2845_s16, %s2845_s16, %s2846_s18  }
  0x47   :  { %s2847_s29 = smov [#allocation8]   ;;  %s2848_s9 = smov [#allocation11]  }
  0x48   :  { %s46_s8 = sshll.u32 %s2847_s29, 4  ;;  %s69_s10 = sshll.u32 %s2848_s9, 4  ;;  %s47_s8 = int_to_ptr.vmem [resolvable:$true] %s46_s8  ;;  %s70_s10 = int_to_ptr.vmem [resolvable:$true] %s69_s10 }
  0x49   :  { %s2741_s15 = scalar_lea.hbm %s3580_s2, 3072 }
  0x4a   :  { %p2742_p4 = scmp.ne.s32.totalorder %s3580_s2, %s2741_s15  ;;  %p2745_p5 = scmp.lt.u32.totalorder %s2741_s15, %s3580_s2 }
  0x4c   :  { %p2747_p6 = pnand %p2745_p5, %p2742_p4 }
  0x4e   :  { %2750 = shalt.err (!%p2747_p6)
}
  0x4f   :  { %s2751_s0 = scalar_lea.vmem %s47_s8, 3072  ;;  %p2756_p8 = scmp.lt.s32.totalorder %s47_s8, %s47_s8 }
  0x50   :  { %p2752_p7 = scmp.ne.s32.totalorder %s47_s8, %s2751_s0  ;;  %p2757_p9 = scmp.lt.s32.totalorder %s2751_s0, %s2751_s0 }
  0x52   :  { %p2758_p10 = por %p2757_p9, %p2756_p8 }
  0x54   :  { %p2759_p11 = pnand %p2758_p10, %p2752_p7 }
  0x56   :  { %2762 = shalt.err (!%p2759_p11)
}
  0x57   :  { %52 = dma.hbm_to_vmem [thread:$0]  %s3580_s2, 3072, %s47_s8, [#allocation7], %s2840_s11, %s2840_s11, %s2841_s12  }
  0x58   :  { %s2763_s22 = scalar_lea.hbm %s3582_s4, 16 }
  0x59   :  { %p2764_p12 = scmp.ne.s32.totalorder %s3582_s4, %s2763_s22  ;;  %p2767_p13 = scmp.lt.u32.totalorder %s2763_s22, %s3582_s4 }
  0x5b   :  { %p2769_p0 = pnand %p2767_p13, %p2764_p12 }
  0x5d   :  { %2772 = shalt.err (!%p2769_p0)
}
  0x5e   :  { %s2773_s26 = scalar_lea.vmem %s70_s10, 16  ;;  %s2777_s27 = scalar_lea.vmem %s70_s10, 32 }
  0x5f   :  { %p2774_p1 = scmp.ne.s32.totalorder %s70_s10, %s2773_s26  ;;  %p2778_p2 = scmp.lt.s32.totalorder %s70_s10, %s70_s10 }
  0x60   :  { %p2779_p3 = scmp.lt.s32.totalorder %s2777_s27, %s2773_s26 }
  0x62   :  { %p2780_p4 = por %p2779_p3, %p2778_p2 }
  0x64   :  { %p2781_p5 = pnand %p2780_p4, %p2774_p1 }
  0x66   :  { %2784 = shalt.err (!%p2781_p5)
}
  0x67   :  { %72 = dma.hbm_to_vmem [thread:$0]  %s3582_s4, 16, %s70_s10, [#allocation10]  }
  0x68   :  { %s2849_s12 = smov [#allocation14]   ;;  %s2785_s8 = scalar_lea.hbm %s3584_s6, 16 }
  0x69   :  { %s91_s5 = sshll.u32 %s2849_s12, 4  ;;  %p2786_p6 = scmp.ne.s32.totalorder %s3584_s6, %s2785_s8  ;;  %s92_s5 = int_to_ptr.vmem [resolvable:$true] %s91_s5 }
  0x6a   :  { %p2789_p7 = scmp.lt.u32.totalorder %s2785_s8, %s3584_s6 }
  0x6c   :  { %p2791_p8 = pnand %p2789_p7, %p2786_p6 }
  0x6e   :  { %2794 = shalt.err (!%p2791_p8)
}
  0x6f   :  { %s2795_s17 = scalar_lea.vmem %s92_s5, 16  ;;  %s2799_s4 = scalar_lea.vmem %s92_s5, 32 }
  0x70   :  { %p2796_p9 = scmp.ne.s32.totalorder %s92_s5, %s2795_s17  ;;  %p2800_p10 = scmp.lt.s32.totalorder %s92_s5, %s92_s5 }
  0x71   :  { %p2801_p11 = scmp.lt.s32.totalorder %s2799_s4, %s2795_s17 }
  0x73   :  { %p2802_p12 = por %p2801_p11, %p2800_p10 }
  0x75   :  { %p2803_p13 = pnand %p2802_p12, %p2796_p9 }
  0x77   :  { %2806 = shalt.err (!%p2803_p13)
}
  0x78   :  { %94 = dma.hbm_to_vmem [thread:$0]  %s3584_s6, 16, %s92_s5, [#allocation13]  }
  0x79   :  { %2829 = dma.done.wait [#allocation4], 1024  }
  0x7a   :  { %2830 = vsyncadd [#allocation4], 4294966272 }
  0x7b   :  { %2831 = dma.done.wait [#allocation7], 6144  }
  0x7c   :  { %2832 = vsyncadd [#allocation7], 4294961152 }
  0x7d   :  { %2833 = dma.done.wait [#allocation10], 64  }
  0x7e   :  { %2834 = vsyncadd [#allocation10], 4294967232 }
  0x7f   :  { %2835 = dma.done.wait [#allocation13], 1040  }
  0x80   :  { %2836 = vsyncadd [#allocation13], 4294966256  ;;  %v3586_v0 = vmov 0   ;;  %v2388_v1 = vld [vmem:[#allocation6 + $0x4] ss:$12 sps:$4 sm:$0xff]   ;;  %v2416_v29 = vld [vmem:[#allocation3 + $0x8] sm:$0xff]   ;;  %v173_v59 = vlaneseq }
  0x81   :  { %396 = vmatprep.mubr.bf16.mxu0 %v3586_v0  ;;  %v2390_v2 = vld [vmem:[#allocation6] ss:$12 sps:$4 sm:$0xff]   ;;  %364 = vmatprep.subr.bf16.mxu0 %v2388_v1  ;;  %v2391_v3 = vld [vmem:[#allocation6 + $0x1c] ss:$12 sps:$4 sm:$0xff]   ;;  %v2393_v4 = vld [vmem:[#allocation6 + $0x18] ss:$12 sps:$4 sm:$0xff]  }
  0x82   :  { %365 = vmatpush1.bf16.msra.mxu0 %v2390_v2  ;;  %v2394_v5 = vld [vmem:[#allocation6 + $0x34] ss:$12 sps:$4 sm:$0xff]   ;;  %v2396_v6 = vld [vmem:[#allocation6 + $0x30] ss:$12 sps:$4 sm:$0xff]   ;;  %v2397_v7 = vld [vmem:[#allocation6 + $0x4c] ss:$12 sps:$4 sm:$0xff]  }
  0x83   :  { %366 = vmatprep.subr.bf16.mxu0 %v2391_v3  ;;  %v2399_v8 = vld [vmem:[#allocation6 + $0x48] ss:$12 sps:$4 sm:$0xff]   ;;  %v2412_v9 = vld [vmem:[#allocation3] sm:$0xff]   ;;  %v2408_v17 = vld [vmem:[#allocation6 + $0x90] ss:$12 sps:$4 sm:$0xff]   ;;  %v3588_v42 = vmov 0.0  }
  0x84   :  { %v2400_v10 = vld [vmem:[#allocation6 + $0x64] ss:$12 sps:$4 sm:$0xff]   ;;  %2110 = vmatprep.mubr.bf16.mxu1 %v2412_v9  ;;  %v2402_v11 = vld [vmem:[#allocation6 + $0x60] ss:$12 sps:$4 sm:$0xff]   ;;  %v2403_v12 = vld [vmem:[#allocation6 + $0x7c] ss:$12 sps:$4 sm:$0xff]  }
  0x85   :  { %v2405_v13 = vld [vmem:[#allocation6 + $0x78] ss:$12 sps:$4 sm:$0xff]   ;;  %v2425_v14 = vld [vmem:[#allocation6 + $0x8] ss:$12 sps:$4 sm:$0xff]   ;;  %v2429_v16 = vld [vmem:[#allocation6 + $0x20] ss:$12 sps:$4 sm:$0xff]  }
  0x86   :  { %367 = vmatpush1.bf16.msra.mxu0 %v2393_v4  ;;  %v2406_v15 = vld [vmem:[#allocation6 + $0x94] ss:$12 sps:$4 sm:$0xff]   ;;  %2094 = vmatprep.subr.bf16.mxu1 %v2425_v14  ;;  %v2431_v18 = vld [vmem:[#allocation6 + $0x38] ss:$12 sps:$4 sm:$0xff]   ;;  %v2435_v21 = vld [vmem:[#allocation6 + $0x50] ss:$12 sps:$4 sm:$0xff]  }
  0x87   :  { %368 = vmatprep.subr.bf16.mxu0 %v2394_v5  ;;  %2095 = vmatpush3.bf16.msra.mxu1 %v2425_v14  ;;  %v2409_v19 = vld [vmem:[#allocation6 + $0xac] ss:$12 sps:$4 sm:$0xff]   ;;  %v2411_v20 = vld [vmem:[#allocation6 + $0xa8] ss:$12 sps:$4 sm:$0xff]   ;;  %v2995_v22 = vld [vmem:[#allocation8 + $0x4] ss:$12 sps:$4 sm:$0xff]  }
  0x88   :  { %2096 = vmatprep.subr.bf16.mxu1 %v2429_v16  ;;  %v2997_v23 = vld [vmem:[#allocation8] ss:$12 sps:$4 sm:$0xff]   ;;  %v2999_v24 = vld [vmem:[#allocation8 + $0x1c] ss:$12 sps:$4 sm:$0xff]   ;;  %v3002_v26 = vld [vmem:[#allocation8 + $0x18] ss:$12 sps:$4 sm:$0xff]  }
  0x89   :  { %v2437_v25 = vld [vmem:[#allocation6 + $0x68] ss:$12 sps:$4 sm:$0xff]   ;;  %v2441_v27 = vld [vmem:[#allocation6 + $0x80] ss:$12 sps:$4 sm:$0xff]   ;;  %v3009_v30 = vld [vmem:[#allocation8 + $0x30] ss:$12 sps:$4 sm:$0xff]  }
  0x8a   :  { %369 = vmatpush1.bf16.msra.mxu0 %v2396_v6  ;;  %v3007_v28 = vld [vmem:[#allocation8 + $0x34] ss:$12 sps:$4 sm:$0xff]   ;;  %v3012_v31 = vld [vmem:[#allocation8 + $0x4c] ss:$12 sps:$4 sm:$0xff]   ;;  %v2447_v34 = vld [vmem:[#allocation6 + $0xb0] ss:$12 sps:$4 sm:$0xff]  }
  0x8b   :  { %370 = vmatprep.subr.bf16.mxu0 %v2397_v7  ;;  %2097 = vmatpush3.bf16.msra.mxu1 %v2429_v16  ;;  %v2443_v32 = vld [vmem:[#allocation6 + $0x98] ss:$12 sps:$4 sm:$0xff]   ;;  %v3015_v33 = vld [vmem:[#allocation8 + $0x48] ss:$12 sps:$4 sm:$0xff]   ;;  %v3022_v37 = vld [vmem:[#allocation8 + $0x60] ss:$12 sps:$4 sm:$0xff]  }
  0x8c   :  { %2098 = vmatprep.subr.bf16.mxu1 %v2431_v18  ;;  %v3020_v35 = vld [vmem:[#allocation8 + $0x64] ss:$12 sps:$4 sm:$0xff]   ;;  %v3024_v38 = vld [vmem:[#allocation8 + $0x7c] ss:$12 sps:$4 sm:$0xff]   ;;  %v3035_v41 = vld [vmem:[#allocation8 + $0x94] ss:$12 sps:$4 sm:$0xff]  }
  0x8d   :  { %v2420_v36 = vld [vmem:[#allocation3 + $0x10] sm:$0xff]   ;;  %v3032_v40 = vld [vmem:[#allocation8 + $0x78] ss:$12 sps:$4 sm:$0xff]   ;;  %v3039_v44 = vld [vmem:[#allocation8 + $0x20] ss:$12 sps:$4 sm:$0xff]   ;;  %vm2852_vm0 = vmmov 0  }
  0x8e   :  { %371 = vmatpush1.bf16.msra.mxu0 %v2399_v8  ;;  %v3028_v39 = vld [vmem:[#allocation8 + $0x8] ss:$12 sps:$4 sm:$0xff]   ;;  %v2424_v43 = vld [vmem:[#allocation3 + $0x18] sm:$0xff]   ;;  %v2430_v49 = vld [vmem:[#allocation3 + $0x20] sm:$0xff]   ;;  %v2853_v58 = vmov 0.0|0.0   ;;  %v174_v60 = vshrl.u32 %v173_v59, 7 }
  0x8f   :  { %372 = vmatprep.subr.bf16.mxu0 %v2400_v10  ;;  %2099 = vmatpush3.bf16.msra.mxu1 %v2431_v18  ;;  %v3042_v45 = vld [vmem:[#allocation8 + $0x90] ss:$12 sps:$4 sm:$0xff]   ;;  %v3046_v46 = vld [vmem:[#allocation8 + $0xac] ss:$12 sps:$4 sm:$0xff]   ;;  %v3053_v48 = vld [vmem:[#allocation8 + $0xa8] ss:$12 sps:$4 sm:$0xff]  }
  0x90   :  { %2100 = vmatprep.subr.bf16.mxu1 %v2435_v21  ;;  %v3049_v47 = vld [vmem:[#allocation8 + $0x38] ss:$12 sps:$4 sm:$0xff]   ;;  %v3058_v50 = vld [vmem:[#allocation8 + $0x50] ss:$12 sps:$4 sm:$0xff]   ;;  %v3064_v51 = vld [vmem:[#allocation8 + $0x68] ss:$12 sps:$4 sm:$0xff]  }
  0x91   :  { %v2436_v52 = vld [vmem:[#allocation3 + $0x28] sm:$0xff]   ;;  %v2442_v53 = vld [vmem:[#allocation3 + $0x30] sm:$0xff]   ;;  %v3073_v55 = vld [vmem:[#allocation8 + $0x98] ss:$12 sps:$4 sm:$0xff]   ;;  %v183_v61 = vsub.s32 2, %v174_v60  ;;  %s2854_s6 = smov [#allocation15]  }
  0x92   :  { %373 = vmatpush1.bf16.msra.mxu0 %v2402_v11  ;;  %v3069_v54 = vld [vmem:[#allocation8 + $0x80] ss:$12 sps:$4 sm:$0xff]   ;;  %v2448_v56 = vld [vmem:[#allocation3 + $0x38] sm:$0xff]   ;;  %s1884_s19 = sshll.u32 %s2854_s6, 4  ;;  %s1885_s19 = int_to_ptr.vmem [resolvable:$true] %s1884_s19 }
  0x93   :  { %374 = vmatprep.subr.bf16.mxu0 %v2403_v12  ;;  %2101 = vmatpush3.bf16.msra.mxu1 %v2435_v21  ;;  %v3078_v57 = vld [vmem:[#allocation8 + $0xb0] ss:$12 sps:$4 sm:$0xff]   ;;  %v171_v62 = vld [vmem:[#allocation9] sm:$0x7]  ;;  %s2807_s20 = scalar_lea.vmem %s1885_s19, 256  ;;  %p2812_p1 = scmp.lt.s32.totalorder %s1885_s19, %s1885_s19 }
  0x94   :  { %2102 = vmatprep.subr.bf16.mxu1 %v2437_v25  ;;  %v3122_v63 = vrot.slane %v171_v62, %v183_v61  ;;  %v175_v61 = vsub.s32 0, %v174_v60  ;;  %p2808_p0 = scmp.ne.s32.totalorder %s1885_s19, %s2807_s20  ;;  %p2813_p2 = scmp.lt.s32.totalorder %s2807_s20, %s2807_s20 }
  0x96   :  { %375 = vmatpush1.bf16.msra.mxu0 %v2405_v13  ;;  %p2814_p3 = por %p2813_p2, %p2812_p1 }
  0x97   :  { %376 = vmatprep.subr.bf16.mxu0 %v2406_v15  ;;  %2103 = vmatpush3.bf16.msra.mxu1 %v2437_v25 }
  0x98   :  { %2104 = vmatprep.subr.bf16.mxu1 %v2441_v27  ;;  %p2815_p4 = pnand %p2814_p3, %p2808_p0 }
  0x9a   :  { %377 = vmatpush1.bf16.msra.mxu0 %v2408_v17 }
  0x9b   :  { %378 = vmatprep.subr.bf16.mxu0 %v2409_v19  ;;  %2105 = vmatpush3.bf16.msra.mxu1 %v2441_v27 }
  0x9c   :  { %2106 = vmatprep.subr.bf16.mxu1 %v2443_v32 }
  0x9e   :  { %379 = vmatpush1.bf16.msra.mxu0 %v2411_v20 }
  0x9f   :  { %744 = vmatprep.subr.bf16.mxu0 %v2995_v22  ;;  %2107 = vmatpush3.bf16.msra.mxu1 %v2443_v32 }
  0xa0   :  { %2108 = vmatprep.subr.bf16.mxu1 %v2447_v34 }
  0xa1   :  { %397 = vmatmul.mubr.bf16.vlgmr.msra.gmra.mrb[0].mxu0 %v2412_v9 }
  0xa2   :  { %745 = vmatpush1.bf16.msra.mxu0 %v2997_v23  ;;  %406 = vmatprep.mubr.bf16.mxu0 %v3586_v0 }
  0xa3   :  { %746 = vmatprep.subr.bf16.mxu0 %v2999_v24  ;;  %2109 = vmatpush3.bf16.msra.mxu1 %v2447_v34 }
  0xa4   :  { %2126 = vmatprep.subr.bf16.mxu1 %v3588_v42 }
  0xa6   :  { %747 = vmatpush1.bf16.msra.mxu0 %v3002_v26  ;;  %2111 = vmatmul.mubr.bf16.vlgmr.msra.gmra.mrb[0].mxu1 %v2416_v29 }
  0xa7   :  { %748 = vmatprep.subr.bf16.mxu0 %v3007_v28  ;;  %2127 = vmatpush3.bf16.msra.mxu1 %v3028_v39 }
  0xa8   :  { %2114 = vmatprep.mubr.bf16.mxu1 %v2420_v36  ;;  %2128 = vmatprep.subr.bf16.mxu1 %v3588_v42 }
  0xa9   :  { %407 = vmatmul.mubr.bf16.gmra.mrb[4].mxu0 %v2416_v29 }
  0xaa   :  { %416 = vmatprep.mubr.bf16.mxu0 %v3586_v0  ;;  %749 = vmatpush1.bf16.msra.mxu0 %v3009_v30 }
  0xab   :  { %750 = vmatprep.subr.bf16.mxu0 %v3012_v31  ;;  %2129 = vmatpush3.bf16.msra.mxu1 %v3039_v44 }
  0xac   :  { %2130 = vmatprep.subr.bf16.mxu1 %v3588_v42 }
  0xae   :  { %751 = vmatpush1.bf16.msra.mxu0 %v3015_v33  ;;  %2115 = vmatmul.mubr.bf16.gmra.mrb[4].mxu1 %v2424_v43 }
  0xaf   :  { %752 = vmatprep.subr.bf16.mxu0 %v3020_v35  ;;  %2131 = vmatpush3.bf16.msra.mxu1 %v3049_v47 }
  0xb0   :  { %2118 = vmatprep.mubr.bf16.mxu1 %v2430_v49  ;;  %2132 = vmatprep.subr.bf16.mxu1 %v3588_v42 }
  0xb1   :  { %417 = vmatmul.mubr.bf16.gmra.mrb[8].mxu0 %v2420_v36 }
  0xb2   :  { %426 = vmatprep.mubr.bf16.mxu0 %v3586_v0  ;;  %753 = vmatpush1.bf16.msra.mxu0 %v3022_v37 }
  0xb3   :  { %754 = vmatprep.subr.bf16.mxu0 %v3024_v38  ;;  %2133 = vmatpush3.bf16.msra.mxu1 %v3058_v50 }
  0xb4   :  { %2134 = vmatprep.subr.bf16.mxu1 %v3588_v42 }
  0xb6   :  { %755 = vmatpush1.bf16.msra.mxu0 %v3032_v40  ;;  %2119 = vmatmul.mubr.bf16.gmra.mrb[8].mxu1 %v2436_v52 }
  0xb7   :  { %756 = vmatprep.subr.bf16.mxu0 %v3035_v41  ;;  %2135 = vmatpush3.bf16.msra.mxu1 %v3064_v51 }
  0xb8   :  { %2122 = vmatprep.mubr.bf16.mxu1 %v2442_v53  ;;  %2136 = vmatprep.subr.bf16.mxu1 %v3588_v42 }
  0xb9   :  { %427 = vmatmul.mubr.bf16.gmra.mrb[12].mxu0 %v2424_v43 }
  0xba   :  { %436 = vmatprep.mubr.bf16.mxu0 %v3586_v0  ;;  %757 = vmatpush1.bf16.msra.mxu0 %v3042_v45 }
  0xbb   :  { %758 = vmatprep.subr.bf16.mxu0 %v3046_v46  ;;  %2137 = vmatpush3.bf16.msra.mxu1 %v3069_v54 }
  0xbc   :  { %2138 = vmatprep.subr.bf16.mxu1 %v3588_v42 }
  0xbe   :  { %759 = vmatpush1.bf16.msra.mxu0 %v3053_v48  ;;  %2123 = vmatmul.mubr.bf16.gmra.mrb[12].mxu1 %v2448_v56 }
  0xbf   :  { %871 = vmatprep.subr.bf16.mxu0 %v2995_v22  ;;  %2139 = vmatpush3.bf16.msra.mxu1 %v3073_v55 }
  0xc0   :  { %2142 = vmatprep.mubr.msk.bf16.mxu1 %vm2852_vm0, %v3588_v42  ;;  %2140 = vmatprep.subr.bf16.mxu1 %v3588_v42 }
  0xc1   :  { %437 = vmatmul.mubr.bf16.gmra.mrb[16].mxu0 %v2430_v49 }
  0xc2   :  { %446 = vmatprep.mubr.bf16.mxu0 %v3586_v0 }
  0xc3   :  { %2141 = vmatpush3.bf16.msra.mxu1 %v3078_v57 }
  0xc4   :  { %2146 = vmatprep.subr.bf16.mxu1 %v3588_v42 }
  0xc6   :  { %2143 = vmatmul.mubr.bf16.vlgmr.msra.gmra.mrb[16].mxu1 %v2853_v58 }
  0xc7   :  { %2147 = vmatpush3.bf16.msra.mxu1 %v3028_v39  ;;  %2162 = vmatprep.mubr.msk.bf16.mxu1 %vm2852_vm0, %v3588_v42 }
  0xc8   :  { %2148 = vmatprep.subr.bf16.mxu1 %v3588_v42 }
  0xc9   :  { %447 = vmatmul.mubr.bf16.gmra.mrb[20].mxu0 %v2436_v52 }
  0xca   :  { %456 = vmatprep.mubr.bf16.mxu0 %v3586_v0 }
  0xcb   :  { %2149 = vmatpush3.bf16.msra.mxu1 %v3039_v44 }
  0xcc   :  { %2150 = vmatprep.subr.bf16.mxu1 %v3588_v42 }
  0xcf   :  { %2151 = vmatpush3.bf16.msra.mxu1 %v3049_v47 }
  0xd0   :  { %2152 = vmatprep.subr.bf16.mxu1 %v3588_v42 }
  0xd1   :  { %457 = vmatmul.mubr.bf16.gmra.mrb[24].mxu0 %v2442_v53 }
  0xd2   :  { %466 = vmatprep.mubr.bf16.mxu0 %v3586_v0 }
  0xd3   :  { %2153 = vmatpush3.bf16.msra.mxu1 %v3058_v50 }
  0xd4   :  { %2154 = vmatprep.subr.bf16.mxu1 %v3588_v42 }
  0xd7   :  { %2155 = vmatpush3.bf16.msra.mxu1 %v3064_v51 }
  0xd8   :  { %2156 = vmatprep.subr.bf16.mxu1 %v3588_v42 }
  0xd9   :  { %467 = vmatmul.mubr.bf16.gmra.mrb[28].mxu0 %v2448_v56 }
  0xda   :  { %776 = vmatprep.mubr.bf16.mxu0 %v3586_v0 }
  0xdb   :  { %2157 = vmatpush3.bf16.msra.mxu1 %v3069_v54 }
  0xdc   :  { %2158 = vmatprep.subr.bf16.mxu1 %v3588_v42 }
  0xdf   :  { %2159 = vmatpush3.bf16.msra.mxu1 %v3073_v55 }
  0xe0   :  { %2160 = vmatprep.subr.bf16.mxu1 %v3588_v42 }
  0xe1   :  { %777 = vmatmul.mubr.bf16.vlgmr.msra.gmra.mrb[0].mxu0 %v2853_v58 }
  0xe2   :  { %872 = vmatpush1.bf16.msra.mxu0 %v2997_v23  ;;  %903 = vmatprep.mubr.bf16.mxu0 %v3586_v0 }
  0xe3   :  { %873 = vmatprep.subr.bf16.mxu0 %v2999_v24  ;;  %2161 = vmatpush3.bf16.msra.mxu1 %v3078_v57 }
  0xe4   :  { %2166 = vmatprep.subr.bf16.mxu1 %v3588_v42 }
  0xe6   :  { %874 = vmatpush1.bf16.msra.mxu0 %v3002_v26 }
  0xe7   :  { %875 = vmatprep.subr.bf16.mxu0 %v3007_v28 }
  0xea   :  { %876 = vmatpush1.bf16.msra.mxu0 %v3009_v30 }
  0xeb   :  { %877 = vmatprep.subr.bf16.mxu0 %v3012_v31 }
  0xee   :  { %878 = vmatpush1.bf16.msra.mxu0 %v3015_v33 }
  0xef   :  { %879 = vmatprep.subr.bf16.mxu0 %v3020_v35 }
  0xf2   :  { %880 = vmatpush1.bf16.msra.mxu0 %v3022_v37 }
  0xf3   :  { %881 = vmatprep.subr.bf16.mxu0 %v3024_v38 }
  0xf6   :  { %882 = vmatpush1.bf16.msra.mxu0 %v3032_v40 }
  0xf7   :  { %883 = vmatprep.subr.bf16.mxu0 %v3035_v41 }
  0xfa   :  { %884 = vmatpush1.bf16.msra.mxu0 %v3042_v45 }
  0xfb   :  { %885 = vmatprep.subr.bf16.mxu0 %v3046_v46 }
  0xfe   :  { %886 = vmatpush1.bf16.msra.mxu0 %v3053_v48 }
  0xff   :  { %998 = vmatprep.subr.bf16.mxu0 %v2995_v22 }
 0x179   :  { %v2112_v1 = vpop.f32.mrb[0].mxu1 }
 0x17a   :  { %v3125_v2 = vadd.f32 %v2112_v1, %v3122_v63  ;;  %v3127_v3 = vpop.f32.mrb[1].mxu1  ;;  %v3170_v1 = vrot.slane %v171_v62, %v175_v61 }
 0x17b   :  { %v2113_v4 = vpop.f32.mrb[2].mxu1 }
 0x17c   :  { %v3130_v5 = vadd.f32 %v2113_v4, %v3122_v63  ;;  %v3132_v6 = vpop.f32.mrb[3].mxu1 }
 0x181   :  { %v2116_v7 = vpop.f32.mrb[4].mxu1 }
 0x182   :  { %v3135_v8 = vadd.f32 %v2116_v7, %v3122_v63  ;;  %v527_v9 = vpop.f32.mrb[5].mxu1 }
 0x183   :  { %v3138_v10 = vadd.f32 %v527_v9, %v3122_v63  ;;  %v2117_v11 = vpop.f32.mrb[6].mxu1  ;;  %v179_v9 = vsub.s32 1, %v174_v60 }
 0x184   :  { %v3141_v12 = vadd.f32 %v2117_v11, %v3122_v63  ;;  %v530_v13 = vpop.f32.mrb[7].mxu1 }
 0x185   :  { %v3144_v14 = vadd.f32 %v530_v13, %v3122_v63 }
 0x189   :  { %v2120_v15 = vpop.f32.mrb[8].mxu1 }
 0x18a   :  { %v3147_v16 = vadd.f32 %v2120_v15, %v3122_v63  ;;  %v543_v17 = vpop.f32.mrb[9].mxu1 }
 0x18b   :  { %v3150_v18 = vadd.f32 %v543_v17, %v3122_v63  ;;  %v2121_v19 = vpop.f32.mrb[10].mxu1 }
 0x18c   :  { %v3153_v20 = vadd.f32 %v2121_v19, %v3122_v63  ;;  %v546_v21 = vpop.f32.mrb[11].mxu1 }
 0x18d   :  { %v3156_v25 = vadd.f32 %v546_v21, %v3122_v63  ;;  %v3174_v21 = vrot.slane %v171_v62, %v179_v9 }
 0x191   :  { %v2124_v27 = vpop.f32.mrb[12].mxu1 }
 0x192   :  { %v3159_v29 = vadd.f32 %v2124_v27, %v3122_v63  ;;  %v559_v32 = vpop.f32.mrb[13].mxu1 }
 0x193   :  { %v3162_v34 = vadd.f32 %v559_v32, %v3122_v63  ;;  %v2125_v36 = vpop.f32.mrb[14].mxu1 }
 0x194   :  { %v3165_v43 = vadd.f32 %v2125_v36, %v3122_v63  ;;  %v562_v49 = vpop.f32.mrb[15].mxu1 }
 0x195   :  { %v3168_v52 = vadd.f32 %v562_v49, %v3122_v63 }
 0x199   :  { %v821_v53 = vpop.f32.mrb[16].mxu1 }
 0x19a   :  { %v2144_v56 = vpop.f32.mrb[17].mxu1 }
 0x19b   :  { %v824_v58 = vpop.f32.mrb[18].mxu1 }
 0x19c   :  { %v2145_v59 = vpop.f32.mrb[19].mxu1 }
 0x1b4   :  { %v778_v4 = vpop.f32.mrb[0].mxu0 }
 0x1b5   :  { %v2306_v7 = vadd.f32 %v778_v4, %v3170_v1  ;;  %v780_v11 = vpop.f32.mrb[1].mxu0 }
 0x1b6   :  { %v782_v13 = vpop.f32.mrb[2].mxu0  ;;  %v2307_v32 = vadd.f32 %v780_v11, %v3174_v21  ;;  %v512_v11 = vadd.f32 %v3127_v3, %v3122_v63 }
 0x1b7   :  { %v1956_v15 = vmul.f32 -1.442695, %v2306_v7  ;;  %v2308_v17 = vadd.f32 %v782_v13, %v3170_v1  ;;  %v784_v19 = vpop.f32.mrb[3].mxu0  ;;  %v3178_v7 = vld [vmem:[#allocation11] ss:$0 sm:$0xff] }
 0x1b8   :  { %v2309_v36 = vadd.f32 %v784_v19, %v3174_v21  ;;  %v1958_v49 = vmul.f32 -1.442695, %v2307_v32  ;;  %v856_v62 = vadd.f32 %v3178_v7, %v821_v53  ;;  %v857_v19 = vadd.f32 %v3178_v7, %v824_v58 }
 0x1b9   :  { %2468 = vpow2.f32 %v1956_v15  ;;  %v1957_v27 = vmul.f32 -1.442695, %v2308_v17 }
 0x1ba   :  { %v1959_v59 = vmul.f32 -1.442695, %v2309_v36  ;;  %v515_v36 = vadd.f32 %v3132_v6, %v3122_v63  ;;  %v3590_v6 = vmov 0.0  }
 0x1bb   :  { %2470 = vpow2.f32 %v1957_v27 }
 0x1bc   :  { %2472 = vpow2.f32 %v1958_v49 }
 0x1c3   :  { %v2469_v56 = vpop.eup %2468 }
 0x1c4   :  { %v836_v61 = vadd.f32 1.0, %v2469_v56 }
 0x1c5   :  { %v2471_v60 = vpop.eup %2470 }
 0x1c6   :  { %2474 = vrcp.f32 %v836_v61  ;;  %v837_v4 = vadd.f32 1.0, %v2471_v60  ;;  %v2473_v9 = vpop.eup %2472 }
 0x1c7   :  { %2476 = vpow2.f32 %v1959_v59  ;;  %v850_v32 = vadd.f32 1.0, %v2473_v9 }
 0x1c8   :  { %2478 = vrcp.f32 %v837_v4 }
 0x1d0   :  { %v2475_v13 = vpop.eup %2474 }
 0x1d1   :  { %v2477_v15 = vpop.eup %2476  ;;  %v858_v17 = vmul.f32 %v2475_v13, %v856_v62 }
 0x1d2   :  { %v2479_v27 = vpop.eup %2478  ;;  %v851_v59 = vadd.f32 1.0, %v2477_v15  ;;  %v3591_v15 = vmov 0  }
 0x1d3   :  { %v860_v49 = vadd.f32 %v858_v17, %v512_v11  ;;  %v859_v56 = vmul.f32 %v2479_v27, %v857_v19 }
 0x1d5   :  { %2480 = vtanh.f32 %v860_v49  ;;  %v861_v61 = vadd.f32 %v859_v56, %v515_v36 }
 0x1d6   :  { %2482 = vrcp.f32 %v850_v32 }
 0x1d7   :  { %2484 = vtanh.f32 %v861_v61 }
 0x1d8   :  { %2486 = vrcp.f32 %v851_v59 }
 0x1df   :  { %v2481_v53 = vpop.eup %2480 }
 0x1e0   :  { %v2483_v60 = vpop.eup %2482  ;;  %v864_v4 = vsub.f32 0.0, %v2481_v53 }
 0x1e1   :  { %v2485_v3 = vpop.eup %2484 }
 0x1e2   :  { %v865_v62 = vsub.f32 0.0, %v2485_v3  ;;  %v866_v13 = vmul.f32 %v2483_v60, %v864_v4  ;;  %v2487_v58 = vpop.eup %2486 }
 0x1e4   :  { %v867_v0 = vmul.f32 %v2487_v58, %v865_v62  ;;  %v3186_v9 = vadd.f32 %v2481_v53, %v866_v13 }
 0x1e6   :  { %v3188_v42 = vadd.f32 %v2485_v3, %v867_v0 }
 0x1e8   :  { %v870_v63 = vpack.c.bf16 %v3188_v42, %v3186_v9 }
 0x1ea   :  { %904 = vmatmul.mubr.bf16.vlgmr.msra.gmra.mrb[4].mxu0 %v870_v63  ;;  %2163 = vmatmul.mubr.bf16.vlgmr.msra.gmra.mrb[20].mxu1 %v870_v63 }
 0x1eb   :  { %999 = vmatpush1.bf16.msra.mxu0 %v2997_v23  ;;  %2167 = vmatpush3.bf16.msra.mxu1 %v3028_v39 }
 0x1ec   :  { %1000 = vmatprep.subr.bf16.mxu0 %v2999_v24  ;;  %2168 = vmatprep.subr.bf16.mxu1 %v3590_v6 }
 0x1ed   :  { %1030 = vmatprep.mubr.bf16.mxu0 %v3591_v15  ;;  %2182 = vmatprep.mubr.msk.bf16.mxu1 %vm2852_vm0, %v3590_v6 }
 0x1ef   :  { %1001 = vmatpush1.bf16.msra.mxu0 %v3002_v26  ;;  %2169 = vmatpush3.bf16.msra.mxu1 %v3039_v44 }
 0x1f0   :  { %1002 = vmatprep.subr.bf16.mxu0 %v3007_v28  ;;  %2170 = vmatprep.subr.bf16.mxu1 %v3590_v6 }
 0x1f3   :  { %1003 = vmatpush1.bf16.msra.mxu0 %v3009_v30  ;;  %2171 = vmatpush3.bf16.msra.mxu1 %v3049_v47 }
 0x1f4   :  { %1004 = vmatprep.subr.bf16.mxu0 %v3012_v31  ;;  %2172 = vmatprep.subr.bf16.mxu1 %v3590_v6 }
 0x1f7   :  { %1005 = vmatpush1.bf16.msra.mxu0 %v3015_v33  ;;  %2173 = vmatpush3.bf16.msra.mxu1 %v3058_v50 }
 0x1f8   :  { %1006 = vmatprep.subr.bf16.mxu0 %v3020_v35  ;;  %2174 = vmatprep.subr.bf16.mxu1 %v3590_v6 }
 0x1fb   :  { %1007 = vmatpush1.bf16.msra.mxu0 %v3022_v37  ;;  %2175 = vmatpush3.bf16.msra.mxu1 %v3064_v51 }
 0x1fc   :  { %1008 = vmatprep.subr.bf16.mxu0 %v3024_v38  ;;  %2176 = vmatprep.subr.bf16.mxu1 %v3590_v6 }
 0x1ff   :  { %1009 = vmatpush1.bf16.msra.mxu0 %v3032_v40  ;;  %2177 = vmatpush3.bf16.msra.mxu1 %v3069_v54 }
 0x200   :  { %1010 = vmatprep.subr.bf16.mxu0 %v3035_v41  ;;  %2178 = vmatprep.subr.bf16.mxu1 %v3590_v6 }
 0x203   :  { %1011 = vmatpush1.bf16.msra.mxu0 %v3042_v45  ;;  %2179 = vmatpush3.bf16.msra.mxu1 %v3073_v55 }
 0x204   :  { %1012 = vmatprep.subr.bf16.mxu0 %v3046_v46  ;;  %2180 = vmatprep.subr.bf16.mxu1 %v3590_v6 }
 0x207   :  { %1013 = vmatpush1.bf16.msra.mxu0 %v3053_v48  ;;  %2181 = vmatpush3.bf16.msra.mxu1 %v3078_v57 }
 0x208   :  { %1125 = vmatprep.subr.bf16.mxu0 %v2995_v22  ;;  %2186 = vmatprep.subr.bf16.mxu1 %v3590_v6 }
 0x2bd   :  { %v905_v0 = vpop.f32.mrb[4].mxu0  ;;  %v948_v11 = vpop.f32.mrb[20].mxu1 }
 0x2be   :  { %v2310_v17 = vadd.f32 %v905_v0, %v3170_v1  ;;  %v907_v19 = vpop.f32.mrb[5].mxu0  ;;  %v2164_v27 = vpop.f32.mrb[21].mxu1 }
 0x2bf   :  { %v909_v32 = vpop.f32.mrb[6].mxu0  ;;  %v951_v36 = vpop.f32.mrb[22].mxu1  ;;  %v2311_v60 = vadd.f32 %v907_v19, %v3174_v21  ;;  %v983_v27 = vadd.f32 %v3178_v7, %v948_v11 }
 0x2c0   :  { %v1960_v49 = vmul.f32 -1.442695, %v2310_v17  ;;  %v2312_v56 = vadd.f32 %v909_v32, %v3170_v1  ;;  %v911_v59 = vpop.f32.mrb[7].mxu0  ;;  %v2165_v61 = vpop.f32.mrb[23].mxu1  ;;  %v984_v19 = vadd.f32 %v3178_v7, %v951_v36 }
 0x2c1   :  { %v2313_v4 = vadd.f32 %v911_v59, %v3174_v21  ;;  %v1962_v3 = vmul.f32 -1.442695, %v2311_v60 }
 0x2c2   :  { %2488 = vpow2.f32 %v1960_v49  ;;  %v1961_v53 = vmul.f32 -1.442695, %v2312_v56 }
 0x2c3   :  { %v1963_v13 = vmul.f32 -1.442695, %v2313_v4 }
 0x2c4   :  { %2490 = vpow2.f32 %v1961_v53 }
 0x2c5   :  { %2492 = vpow2.f32 %v1962_v3 }
 0x2cc   :  { %v2489_v62 = vpop.eup %2488 }
 0x2cd   :  { %v963_v58 = vadd.f32 1.0, %v2489_v62 }
 0x2ce   :  { %v2491_v63 = vpop.eup %2490 }
 0x2cf   :  { %2494 = vrcp.f32 %v963_v58  ;;  %v964_v0 = vadd.f32 1.0, %v2491_v63  ;;  %v2493_v17 = vpop.eup %2492 }
 0x2d0   :  { %2496 = vpow2.f32 %v1963_v13  ;;  %v977_v59 = vadd.f32 1.0, %v2493_v17 }
 0x2d1   :  { %2498 = vrcp.f32 %v964_v0 }
 0x2d9   :  { %v2495_v32 = vpop.eup %2494 }
 0x2da   :  { %v2497_v49 = vpop.eup %2496  ;;  %v985_v56 = vmul.f32 %v2495_v32, %v983_v27 }
 0x2db   :  { %v2499_v61 = vpop.eup %2498  ;;  %v978_v3 = vadd.f32 1.0, %v2497_v49 }
 0x2dc   :  { %v987_v53 = vadd.f32 %v985_v56, %v3125_v2  ;;  %v986_v60 = vmul.f32 %v2499_v61, %v984_v19 }
 0x2de   :  { %2500 = vtanh.f32 %v987_v53  ;;  %v988_v4 = vadd.f32 %v986_v60, %v3130_v5 }
 0x2df   :  { %2502 = vrcp.f32 %v977_v59 }
 0x2e0   :  { %2504 = vtanh.f32 %v988_v4 }
 0x2e1   :  { %2506 = vrcp.f32 %v978_v3 }
 0x2e8   :  { %v2501_v62 = vpop.eup %2500 }
 0x2e9   :  { %v2503_v13 = vpop.eup %2502  ;;  %v991_v11 = vsub.f32 %v3186_v9, %v2501_v62 }
 0x2ea   :  { %v2505_v58 = vpop.eup %2504 }
 0x2eb   :  { %v992_v63 = vsub.f32 %v3188_v42, %v2505_v58  ;;  %v993_v36 = vmul.f32 %v2503_v13, %v991_v11  ;;  %v2507_v0 = vpop.eup %2506 }
 0x2ed   :  { %v994_v17 = vmul.f32 %v2507_v0, %v992_v63  ;;  %v3237_v27 = vadd.f32 %v2501_v62, %v993_v36 }
 0x2ef   :  { %v3239_v2 = vadd.f32 %v2505_v58, %v994_v17 }
 0x2f1   :  { %v997_v5 = vpack.c.bf16 %v3239_v2, %v3237_v27 }
 0x2f3   :  { %1031 = vmatmul.mubr.bf16.vlgmr.msra.gmra.mrb[8].mxu0 %v997_v5  ;;  %2183 = vmatmul.mubr.bf16.vlgmr.msra.gmra.mrb[24].mxu1 %v997_v5 }
 0x2f4   :  { %1126 = vmatpush1.bf16.msra.mxu0 %v2997_v23  ;;  %2187 = vmatpush3.bf16.msra.mxu1 %v3028_v39 }
 0x2f5   :  { %1127 = vmatprep.subr.bf16.mxu0 %v2999_v24  ;;  %2188 = vmatprep.subr.bf16.mxu1 %v3590_v6 }
 0x2f6   :  { %1157 = vmatprep.mubr.bf16.mxu0 %v3591_v15  ;;  %2202 = vmatprep.mubr.msk.bf16.mxu1 %vm2852_vm0, %v3590_v6 }
 0x2f8   :  { %1128 = vmatpush1.bf16.msra.mxu0 %v3002_v26  ;;  %2189 = vmatpush3.bf16.msra.mxu1 %v3039_v44 }
 0x2f9   :  { %1129 = vmatprep.subr.bf16.mxu0 %v3007_v28  ;;  %2190 = vmatprep.subr.bf16.mxu1 %v3590_v6 }
 0x2fc   :  { %1130 = vmatpush1.bf16.msra.mxu0 %v3009_v30  ;;  %2191 = vmatpush3.bf16.msra.mxu1 %v3049_v47 }
 0x2fd   :  { %1131 = vmatprep.subr.bf16.mxu0 %v3012_v31  ;;  %2192 = vmatprep.subr.bf16.mxu1 %v3590_v6 }
 0x300   :  { %1132 = vmatpush1.bf16.msra.mxu0 %v3015_v33  ;;  %2193 = vmatpush3.bf16.msra.mxu1 %v3058_v50 }
 0x301   :  { %1133 = vmatprep.subr.bf16.mxu0 %v3020_v35  ;;  %2194 = vmatprep.subr.bf16.mxu1 %v3590_v6 }
 0x304   :  { %1134 = vmatpush1.bf16.msra.mxu0 %v3022_v37  ;;  %2195 = vmatpush3.bf16.msra.mxu1 %v3064_v51 }
 0x305   :  { %1135 = vmatprep.subr.bf16.mxu0 %v3024_v38  ;;  %2196 = vmatprep.subr.bf16.mxu1 %v3590_v6 }
 0x308   :  { %1136 = vmatpush1.bf16.msra.mxu0 %v3032_v40  ;;  %2197 = vmatpush3.bf16.msra.mxu1 %v3069_v54 }
 0x309   :  { %1137 = vmatprep.subr.bf16.mxu0 %v3035_v41  ;;  %2198 = vmatprep.subr.bf16.mxu1 %v3590_v6 }
 0x30c   :  { %1138 = vmatpush1.bf16.msra.mxu0 %v3042_v45  ;;  %2199 = vmatpush3.bf16.msra.mxu1 %v3073_v55 }
 0x30d   :  { %1139 = vmatprep.subr.bf16.mxu0 %v3046_v46  ;;  %2200 = vmatprep.subr.bf16.mxu1 %v3590_v6 }
 0x310   :  { %1140 = vmatpush1.bf16.msra.mxu0 %v3053_v48  ;;  %2201 = vmatpush3.bf16.msra.mxu1 %v3078_v57 }
 0x311   :  { %1252 = vmatprep.subr.bf16.mxu0 %v2995_v22  ;;  %2206 = vmatprep.subr.bf16.mxu1 %v3590_v6 }
 0x3c6   :  { %v1032_v42 = vpop.f32.mrb[8].mxu0  ;;  %v1075_v9 = vpop.f32.mrb[24].mxu1 }
 0x3c7   :  { %v2314_v32 = vadd.f32 %v1032_v42, %v3170_v1  ;;  %v1034_v49 = vpop.f32.mrb[9].mxu0  ;;  %v2184_v56 = vpop.f32.mrb[25].mxu1  ;;  %v1110_v42 = vadd.f32 %v3178_v7, %v1075_v9 }
 0x3c8   :  { %v1036_v19 = vpop.f32.mrb[10].mxu0  ;;  %v1078_v61 = vpop.f32.mrb[26].mxu1  ;;  %v2315_v62 = vadd.f32 %v1034_v49, %v3174_v21 }
 0x3c9   :  { %v1964_v59 = vmul.f32 -1.442695, %v2314_v32  ;;  %v2316_v53 = vadd.f32 %v1036_v19, %v3170_v1  ;;  %v1038_v60 = vpop.f32.mrb[11].mxu0  ;;  %v2185_v4 = vpop.f32.mrb[27].mxu1  ;;  %v1111_v49 = vadd.f32 %v3178_v7, %v1078_v61 }
 0x3ca   :  { %v2317_v13 = vadd.f32 %v1038_v60, %v3174_v21  ;;  %v1966_v11 = vmul.f32 -1.442695, %v2315_v62 }
 0x3cb   :  { %2508 = vpow2.f32 %v1964_v59  ;;  %v1965_v3 = vmul.f32 -1.442695, %v2316_v53 }
 0x3cc   :  { %v1967_v63 = vmul.f32 -1.442695, %v2317_v13 }
 0x3cd   :  { %2510 = vpow2.f32 %v1965_v3 }
 0x3ce   :  { %2512 = vpow2.f32 %v1966_v11 }
 0x3d5   :  { %v2509_v58 = vpop.eup %2508 }
 0x3d6   :  { %v1090_v36 = vadd.f32 1.0, %v2509_v58 }
 0x3d7   :  { %v2511_v0 = vpop.eup %2510 }
 0x3d8   :  { %2514 = vrcp.f32 %v1090_v36  ;;  %v1091_v17 = vadd.f32 1.0, %v2511_v0  ;;  %v2513_v5 = vpop.eup %2512 }
 0x3d9   :  { %2516 = vpow2.f32 %v1967_v63  ;;  %v1104_v53 = vadd.f32 1.0, %v2513_v5 }
 0x3da   :  { %2518 = vrcp.f32 %v1091_v17 }
 0x3e2   :  { %v2515_v32 = vpop.eup %2514 }
 0x3e3   :  { %v2517_v56 = vpop.eup %2516  ;;  %v1112_v19 = vmul.f32 %v2515_v32, %v1110_v42 }
 0x3e4   :  { %v2519_v59 = vpop.eup %2518  ;;  %v1105_v62 = vadd.f32 1.0, %v2517_v56 }
 0x3e5   :  { %v1114_v60 = vadd.f32 %v1112_v19, %v3138_v10  ;;  %v1113_v4 = vmul.f32 %v2519_v59, %v1111_v49 }
 0x3e7   :  { %2520 = vtanh.f32 %v1114_v60  ;;  %v1115_v3 = vadd.f32 %v1113_v4, %v3144_v14 }
 0x3e8   :  { %2522 = vrcp.f32 %v1104_v53 }
 0x3e9   :  { %2524 = vtanh.f32 %v1115_v3 }
 0x3ea   :  { %2526 = vrcp.f32 %v1105_v62 }
 0x3f1   :  { %v2521_v13 = vpop.eup %2520 }
 0x3f2   :  { %v2523_v11 = vpop.eup %2522  ;;  %v1118_v9 = vsub.f32 %v3237_v27, %v2521_v13 }
 0x3f3   :  { %v2525_v58 = vpop.eup %2524 }
 0x3f4   :  { %v1119_v63 = vsub.f32 %v3239_v2, %v2525_v58  ;;  %v1120_v61 = vmul.f32 %v2523_v11, %v1118_v9  ;;  %v2527_v36 = vpop.eup %2526 }
 0x3f6   :  { %v1121_v0 = vmul.f32 %v2527_v36, %v1119_v63  ;;  %v3288_v17 = vadd.f32 %v2521_v13, %v1120_v61 }
 0x3f8   :  { %v3290_v10 = vadd.f32 %v2525_v58, %v1121_v0 }
 0x3fa   :  { %v1124_v14 = vpack.c.bf16 %v3290_v10, %v3288_v17 }
 0x3fc   :  { %1158 = vmatmul.mubr.bf16.vlgmr.msra.gmra.mrb[12].mxu0 %v1124_v14  ;;  %2203 = vmatmul.mubr.bf16.vlgmr.msra.gmra.mrb[28].mxu1 %v1124_v14 }
 0x3fd   :  { %1253 = vmatpush1.bf16.msra.mxu0 %v2997_v23  ;;  %2207 = vmatpush3.bf16.msra.mxu1 %v3028_v39 }
 0x3fe   :  { %1254 = vmatprep.subr.bf16.mxu0 %v2999_v24  ;;  %2208 = vmatprep.subr.bf16.mxu1 %v3590_v6 }
 0x3ff   :  { %1284 = vmatprep.mubr.bf16.mxu0 %v3591_v15  ;;  %2222 = vmatprep.mubr.msk.bf16.mxu1 %vm2852_vm0, %v3590_v6 }
 0x401   :  { %1255 = vmatpush1.bf16.msra.mxu0 %v3002_v26  ;;  %2209 = vmatpush3.bf16.msra.mxu1 %v3039_v44 }
 0x402   :  { %1256 = vmatprep.subr.bf16.mxu0 %v3007_v28  ;;  %2210 = vmatprep.subr.bf16.mxu1 %v3590_v6 }
 0x405   :  { %1257 = vmatpush1.bf16.msra.mxu0 %v3009_v30  ;;  %2211 = vmatpush3.bf16.msra.mxu1 %v3049_v47 }
 0x406   :  { %1258 = vmatprep.subr.bf16.mxu0 %v3012_v31  ;;  %2212 = vmatprep.subr.bf16.mxu1 %v3590_v6 }
 0x409   :  { %1259 = vmatpush1.bf16.msra.mxu0 %v3015_v33  ;;  %2213 = vmatpush3.bf16.msra.mxu1 %v3058_v50 }
 0x40a   :  { %1260 = vmatprep.subr.bf16.mxu0 %v3020_v35  ;;  %2214 = vmatprep.subr.bf16.mxu1 %v3590_v6 }
 0x40d   :  { %1261 = vmatpush1.bf16.msra.mxu0 %v3022_v37  ;;  %2215 = vmatpush3.bf16.msra.mxu1 %v3064_v51 }
 0x40e   :  { %1262 = vmatprep.subr.bf16.mxu0 %v3024_v38  ;;  %2216 = vmatprep.subr.bf16.mxu1 %v3590_v6 }
 0x411   :  { %1263 = vmatpush1.bf16.msra.mxu0 %v3032_v40  ;;  %2217 = vmatpush3.bf16.msra.mxu1 %v3069_v54 }
 0x412   :  { %1264 = vmatprep.subr.bf16.mxu0 %v3035_v41  ;;  %2218 = vmatprep.subr.bf16.mxu1 %v3590_v6 }
 0x415   :  { %1265 = vmatpush1.bf16.msra.mxu0 %v3042_v45  ;;  %2219 = vmatpush3.bf16.msra.mxu1 %v3073_v55 }
 0x416   :  { %1266 = vmatprep.subr.bf16.mxu0 %v3046_v46  ;;  %2220 = vmatprep.subr.bf16.mxu1 %v3590_v6 }
 0x419   :  { %1267 = vmatpush1.bf16.msra.mxu0 %v3053_v48  ;;  %2221 = vmatpush3.bf16.msra.mxu1 %v3078_v57 }
 0x41a   :  { %1379 = vmatprep.subr.bf16.mxu0 %v2995_v22  ;;  %2226 = vmatprep.subr.bf16.mxu1 %v3590_v6 }
 0x4cf   :  { %v1159_v23 = vpop.f32.mrb[12].mxu0  ;;  %v1202_v24 = vpop.f32.mrb[28].mxu1 }
 0x4d0   :  { %v2318_v26 = vadd.f32 %v1159_v23, %v3170_v1  ;;  %v1161_v28 = vpop.f32.mrb[13].mxu0  ;;  %v2204_v30 = vpop.f32.mrb[29].mxu1  ;;  %v1237_v62 = vadd.f32 %v3178_v7, %v1202_v24 }
 0x4d1   :  { %v1163_v31 = vpop.f32.mrb[14].mxu0  ;;  %v1205_v33 = vpop.f32.mrb[30].mxu1  ;;  %v2319_v22 = vadd.f32 %v1161_v28, %v3174_v21 }
 0x4d2   :  { %v1968_v27 = vmul.f32 -1.442695, %v2318_v26  ;;  %v2320_v2 = vadd.f32 %v1163_v31, %v3170_v1  ;;  %v1165_v5 = vpop.f32.mrb[15].mxu0  ;;  %v2205_v42 = vpop.f32.mrb[31].mxu1  ;;  %v1238_v58 = vadd.f32 %v3178_v7, %v1205_v33 }
 0x4d3   :  { %v2321_v56 = vadd.f32 %v1165_v5, %v3174_v21  ;;  %v1970_v19 = vmul.f32 -1.442695, %v2319_v22  ;;  %v3345_v42 = vld [vmem:[#allocation8] ss:$12 sps:$4 sm:$0xff]  }
 0x4d4   :  { %2528 = vpow2.f32 %v1968_v27  ;;  %v1969_v32 = vmul.f32 -1.442695, %v2320_v2  ;;  %v3368_v22 = vld [vmem:[#allocation8 + $0x4c] ss:$12 sps:$4 sm:$0xff]  }
 0x4d5   :  { %v1971_v59 = vmul.f32 -1.442695, %v2321_v56  ;;  %v3372_v56 = vld [vmem:[#allocation8 + $0x48] ss:$12 sps:$4 sm:$0xff]  }
 0x4d6   :  { %2530 = vpow2.f32 %v1969_v32  ;;  %v3360_v32 = vld [vmem:[#allocation8 + $0x34] ss:$12 sps:$4 sm:$0xff]  }
 0x4d7   :  { %2532 = vpow2.f32 %v1970_v19 }
 0x4de   :  { %v2529_v49 = vpop.eup %2528 }
 0x4df   :  { %v1217_v53 = vadd.f32 1.0, %v2529_v49 }
 0x4e0   :  { %v2531_v60 = vpop.eup %2530 }
 0x4e1   :  { %2534 = vrcp.f32 %v1217_v53  ;;  %v1218_v4 = vadd.f32 1.0, %v2531_v60  ;;  %v2533_v3 = vpop.eup %2532 }
 0x4e2   :  { %2536 = vpow2.f32 %v1971_v59  ;;  %v1231_v61 = vadd.f32 1.0, %v2533_v3 }
 0x4e3   :  { %2538 = vrcp.f32 %v1218_v4 }
 0x4eb   :  { %v2535_v13 = vpop.eup %2534 }
 0x4ec   :  { %v2537_v11 = vpop.eup %2536  ;;  %v1239_v9 = vmul.f32 %v2535_v13, %v1237_v62 }
 0x4ed   :  { %v2539_v63 = vpop.eup %2538  ;;  %v1232_v23 = vadd.f32 1.0, %v2537_v11 }
 0x4ee   :  { %v1241_v36 = vadd.f32 %v1239_v9, %v3135_v8  ;;  %v1240_v0 = vmul.f32 %v2539_v63, %v1238_v58 }
 0x4f0   :  { %2540 = vtanh.f32 %v1241_v36  ;;  %v1242_v14 = vadd.f32 %v1240_v0, %v3141_v12 }
 0x4f1   :  { %2542 = vrcp.f32 %v1231_v61 }
 0x4f2   :  { %2544 = vtanh.f32 %v1242_v14 }
 0x4f3   :  { %2546 = vrcp.f32 %v1232_v23 }
 0x4fa   :  { %v2541_v26 = vpop.eup %2540 }
 0x4fb   :  { %v2543_v28 = vpop.eup %2542  ;;  %v1245_v24 = vsub.f32 %v3288_v17, %v2541_v26  ;;  %v3349_v17 = vld [vmem:[#allocation8 + $0x1c] ss:$12 sps:$4 sm:$0xff]  }
 0x4fc   :  { %v2545_v30 = vpop.eup %2544 }
 0x4fd   :  { %v1246_v31 = vsub.f32 %v3290_v10, %v2545_v30  ;;  %v1247_v33 = vmul.f32 %v2543_v28, %v1245_v24  ;;  %v2547_v27 = vpop.eup %2546  ;;  %v3356_v10 = vld [vmem:[#allocation8 + $0x18] ss:$12 sps:$4 sm:$0xff]  }
 0x4ff   :  { %v1248_v2 = vmul.f32 %v2547_v27, %v1246_v31  ;;  %v3339_v5 = vadd.f32 %v2541_v26, %v1247_v33 }
 0x501   :  { %v3341_v8 = vadd.f32 %v2545_v30, %v1248_v2 }
 0x503   :  { %v1251_v12 = vpack.c.bf16 %v3341_v8, %v3339_v5 }
 0x505   :  { %1285 = vmatmul.mubr.bf16.vlgmr.msra.gmra.mrb[16].mxu0 %v1251_v12  ;;  %2223 = vmatmul.mubr.bf16.vlgmr.msra.gmra.mrb[32].mxu1 %v1251_v12 }
 0x506   :  { %1380 = vmatpush1.bf16.msra.mxu0 %v3345_v42  ;;  %2227 = vmatpush3.bf16.msra.mxu1 %v3028_v39  ;;  %v3364_v39 = vld [vmem:[#allocation8 + $0x30] ss:$12 sps:$4 sm:$0xff]  }
 0x507   :  { %1381 = vmatprep.subr.bf16.mxu0 %v3349_v17  ;;  %2228 = vmatprep.subr.bf16.mxu1 %v3590_v6 }
 0x508   :  { %1411 = vmatprep.mubr.bf16.mxu0 %v3591_v15  ;;  %2242 = vmatprep.mubr.msk.bf16.mxu1 %vm2852_vm0, %v3590_v6 }
 0x50a   :  { %1382 = vmatpush1.bf16.msra.mxu0 %v3356_v10  ;;  %2229 = vmatpush3.bf16.msra.mxu1 %v3039_v44 }
 0x50b   :  { %1383 = vmatprep.subr.bf16.mxu0 %v3360_v32  ;;  %2230 = vmatprep.subr.bf16.mxu1 %v3590_v6 }
 0x50e   :  { %1384 = vmatpush1.bf16.msra.mxu0 %v3364_v39  ;;  %2231 = vmatpush3.bf16.msra.mxu1 %v3049_v47 }
 0x50f   :  { %1385 = vmatprep.subr.bf16.mxu0 %v3368_v22  ;;  %2232 = vmatprep.subr.bf16.mxu1 %v3590_v6 }
 0x512   :  { %1386 = vmatpush1.bf16.msra.mxu0 %v3372_v56  ;;  %2233 = vmatpush3.bf16.msra.mxu1 %v3058_v50 }
 0x513   :  { %1387 = vmatprep.subr.bf16.mxu0 %v3020_v35  ;;  %2234 = vmatprep.subr.bf16.mxu1 %v3590_v6  ;;  %v3392_v35 = vld [vmem:[#allocation8 + $0x4] ss:$12 sps:$4 sm:$0xff]  }
 0x516   :  { %1388 = vmatpush1.bf16.msra.mxu0 %v3022_v37  ;;  %2235 = vmatpush3.bf16.msra.mxu1 %v3064_v51 }
 0x517   :  { %1389 = vmatprep.subr.bf16.mxu0 %v3024_v38  ;;  %2236 = vmatprep.subr.bf16.mxu1 %v3590_v6 }
 0x51a   :  { %1390 = vmatpush1.bf16.msra.mxu0 %v3032_v40  ;;  %2237 = vmatpush3.bf16.msra.mxu1 %v3069_v54 }
 0x51b   :  { %1391 = vmatprep.subr.bf16.mxu0 %v3035_v41  ;;  %2238 = vmatprep.subr.bf16.mxu1 %v3590_v6 }
 0x51e   :  { %1392 = vmatpush1.bf16.msra.mxu0 %v3042_v45  ;;  %2239 = vmatpush3.bf16.msra.mxu1 %v3073_v55 }
 0x51f   :  { %1393 = vmatprep.subr.bf16.mxu0 %v3046_v46  ;;  %2240 = vmatprep.subr.bf16.mxu1 %v3590_v6 }
 0x522   :  { %1394 = vmatpush1.bf16.msra.mxu0 %v3053_v48  ;;  %2241 = vmatpush3.bf16.msra.mxu1 %v3078_v57 }
 0x523   :  { %1506 = vmatprep.subr.bf16.mxu0 %v3392_v35  ;;  %2246 = vmatprep.subr.bf16.mxu1 %v3590_v6 }
 0x5d8   :  { %v1286_v37 = vpop.f32.mrb[16].mxu0  ;;  %v1329_v38 = vpop.f32.mrb[32].mxu1 }
 0x5d9   :  { %v2322_v40 = vadd.f32 %v1286_v37, %v3170_v1  ;;  %v1288_v41 = vpop.f32.mrb[17].mxu0  ;;  %v2224_v44 = vpop.f32.mrb[33].mxu1  ;;  %v1364_v62 = vadd.f32 %v3178_v7, %v1329_v38  ;;  %v3413_v37 = vld [vmem:[#allocation8 + $0x8] ss:$12 sps:$4 sm:$0xff]   ;;  %v3434_v38 = vld [vmem:[#allocation8 + $0x50] ss:$12 sps:$4 sm:$0xff]  }
 0x5da   :  { %v1290_v45 = vpop.f32.mrb[18].mxu0  ;;  %v1332_v46 = vpop.f32.mrb[34].mxu1  ;;  %v2323_v55 = vadd.f32 %v1288_v41, %v3174_v21  ;;  %v3441_v41 = vld [vmem:[#allocation8 + $0x60] ss:$12 sps:$4 sm:$0xff]   ;;  %v3444_v44 = vld [vmem:[#allocation8 + $0x68] ss:$12 sps:$4 sm:$0xff]  }
 0x5db   :  { %v1972_v47 = vmul.f32 -1.442695, %v2322_v40  ;;  %v2324_v50 = vadd.f32 %v1290_v45, %v3170_v1  ;;  %v1292_v48 = vpop.f32.mrb[19].mxu0  ;;  %v2225_v51 = vpop.f32.mrb[35].mxu1  ;;  %v1365_v58 = vadd.f32 %v3178_v7, %v1332_v46  ;;  %v3437_v40 = vld [vmem:[#allocation8 + $0x64] ss:$12 sps:$4 sm:$0xff]  }
 0x5dc   :  { %v2325_v57 = vadd.f32 %v1292_v48, %v3174_v21  ;;  %v1974_v19 = vmul.f32 -1.442695, %v2323_v55  ;;  %v3447_v45 = vld [vmem:[#allocation8 + $0x7c] ss:$12 sps:$4 sm:$0xff]   ;;  %v3451_v46 = vld [vmem:[#allocation8 + $0x78] ss:$12 sps:$4 sm:$0xff]  }
 0x5dd   :  { %2548 = vpow2.f32 %v1972_v47  ;;  %v1973_v54 = vmul.f32 -1.442695, %v2324_v50  ;;  %v3454_v47 = vld [vmem:[#allocation8 + $0x80] ss:$12 sps:$4 sm:$0xff]   ;;  %v3461_v48 = vld [vmem:[#allocation8 + $0x90] ss:$12 sps:$4 sm:$0xff]  }
 0x5de   :  { %v1975_v59 = vmul.f32 -1.442695, %v2325_v57  ;;  %v3457_v50 = vld [vmem:[#allocation8 + $0x94] ss:$12 sps:$4 sm:$0xff]   ;;  %v3464_v51 = vld [vmem:[#allocation8 + $0x98] ss:$12 sps:$4 sm:$0xff]  }
 0x5df   :  { %2550 = vpow2.f32 %v1973_v54  ;;  %v3467_v54 = vld [vmem:[#allocation8 + $0xac] ss:$12 sps:$4 sm:$0xff]   ;;  %v3471_v55 = vld [vmem:[#allocation8 + $0xa8] ss:$12 sps:$4 sm:$0xff]   ;;  %v3474_v57 = vld [vmem:[#allocation8 + $0xb0] ss:$12 sps:$4 sm:$0xff]  }
 0x5e0   :  { %2552 = vpow2.f32 %v1974_v19 }
 0x5e7   :  { %v2549_v49 = vpop.eup %2548 }
 0x5e8   :  { %v1344_v53 = vadd.f32 1.0, %v2549_v49 }
 0x5e9   :  { %v2551_v60 = vpop.eup %2550 }
 0x5ea   :  { %2554 = vrcp.f32 %v1344_v53  ;;  %v1345_v4 = vadd.f32 1.0, %v2551_v60  ;;  %v2553_v3 = vpop.eup %2552 }
 0x5eb   :  { %2556 = vpow2.f32 %v1975_v59  ;;  %v1358_v61 = vadd.f32 1.0, %v2553_v3 }
 0x5ec   :  { %2558 = vrcp.f32 %v1345_v4 }
 0x5f4   :  { %v2555_v13 = vpop.eup %2554 }
 0x5f5   :  { %v2557_v11 = vpop.eup %2556  ;;  %v1366_v9 = vmul.f32 %v2555_v13, %v1364_v62 }
 0x5f6   :  { %v2559_v63 = vpop.eup %2558  ;;  %v1359_v23 = vadd.f32 1.0, %v2557_v11 }
 0x5f7   :  { %v1368_v36 = vadd.f32 %v1366_v9, %v3150_v18  ;;  %v1367_v0 = vmul.f32 %v2559_v63, %v1365_v58 }
 0x5f9   :  { %2560 = vtanh.f32 %v1368_v36  ;;  %v1369_v14 = vadd.f32 %v1367_v0, %v3156_v25 }
 0x5fa   :  { %2562 = vrcp.f32 %v1358_v61 }
 0x5fb   :  { %2564 = vtanh.f32 %v1369_v14 }
 0x5fc   :  { %2566 = vrcp.f32 %v1359_v23 }
 0x603   :  { %v2561_v26 = vpop.eup %2560 }
 0x604   :  { %v2563_v28 = vpop.eup %2562  ;;  %v1372_v24 = vsub.f32 %v3339_v5, %v2561_v26  ;;  %v3422_v5 = vld [vmem:[#allocation8 + $0x20] ss:$12 sps:$4 sm:$0xff]  }
 0x605   :  { %v2565_v30 = vpop.eup %2564 }
 0x606   :  { %v1373_v31 = vsub.f32 %v3341_v8, %v2565_v30  ;;  %v1374_v33 = vmul.f32 %v2563_v28, %v1372_v24  ;;  %v2567_v27 = vpop.eup %2566  ;;  %v3428_v8 = vld [vmem:[#allocation8 + $0x38] ss:$12 sps:$4 sm:$0xff]  }
 0x608   :  { %v1375_v2 = vmul.f32 %v2567_v27, %v1373_v31  ;;  %v3406_v12 = vadd.f32 %v2561_v26, %v1374_v33 }
 0x60a   :  { %v3408_v18 = vadd.f32 %v2565_v30, %v1375_v2 }
 0x60c   :  { %v1378_v25 = vpack.c.bf16 %v3408_v18, %v3406_v12 }
 0x60e   :  { %1412 = vmatmul.mubr.bf16.vlgmr.msra.gmra.mrb[20].mxu0 %v1378_v25  ;;  %2243 = vmatmul.mubr.bf16.vlgmr.msra.gmra.mrb[36].mxu1 %v1378_v25 }
 0x60f   :  { %1507 = vmatpush1.bf16.msra.mxu0 %v3345_v42  ;;  %2247 = vmatpush3.bf16.msra.mxu1 %v3413_v37 }
 0x610   :  { %1508 = vmatprep.subr.bf16.mxu0 %v3349_v17  ;;  %2248 = vmatprep.subr.bf16.mxu1 %v3590_v6 }
 0x611   :  { %1538 = vmatprep.mubr.bf16.mxu0 %v3591_v15  ;;  %2262 = vmatprep.mubr.msk.bf16.mxu1 %vm2852_vm0, %v3590_v6 }
 0x613   :  { %1509 = vmatpush1.bf16.msra.mxu0 %v3356_v10  ;;  %2249 = vmatpush3.bf16.msra.mxu1 %v3422_v5 }
 0x614   :  { %1510 = vmatprep.subr.bf16.mxu0 %v3360_v32  ;;  %2250 = vmatprep.subr.bf16.mxu1 %v3590_v6 }
 0x617   :  { %1511 = vmatpush1.bf16.msra.mxu0 %v3364_v39  ;;  %2251 = vmatpush3.bf16.msra.mxu1 %v3428_v8 }
 0x618   :  { %1512 = vmatprep.subr.bf16.mxu0 %v3368_v22  ;;  %2252 = vmatprep.subr.bf16.mxu1 %v3590_v6 }
 0x61b   :  { %1513 = vmatpush1.bf16.msra.mxu0 %v3372_v56  ;;  %2253 = vmatpush3.bf16.msra.mxu1 %v3434_v38 }
 0x61c   :  { %1514 = vmatprep.subr.bf16.mxu0 %v3437_v40  ;;  %2254 = vmatprep.subr.bf16.mxu1 %v3590_v6 }
 0x61f   :  { %1515 = vmatpush1.bf16.msra.mxu0 %v3441_v41  ;;  %2255 = vmatpush3.bf16.msra.mxu1 %v3444_v44 }
 0x620   :  { %1516 = vmatprep.subr.bf16.mxu0 %v3447_v45  ;;  %2256 = vmatprep.subr.bf16.mxu1 %v3590_v6 }
 0x623   :  { %1517 = vmatpush1.bf16.msra.mxu0 %v3451_v46  ;;  %2257 = vmatpush3.bf16.msra.mxu1 %v3454_v47 }
 0x624   :  { %1518 = vmatprep.subr.bf16.mxu0 %v3457_v50  ;;  %2258 = vmatprep.subr.bf16.mxu1 %v3590_v6 }
 0x627   :  { %1519 = vmatpush1.bf16.msra.mxu0 %v3461_v48  ;;  %2259 = vmatpush3.bf16.msra.mxu1 %v3464_v51 }
 0x628   :  { %1520 = vmatprep.subr.bf16.mxu0 %v3467_v54  ;;  %2260 = vmatprep.subr.bf16.mxu1 %v3590_v6 }
 0x62b   :  { %1521 = vmatpush1.bf16.msra.mxu0 %v3471_v55  ;;  %2261 = vmatpush3.bf16.msra.mxu1 %v3474_v57 }
 0x62c   :  { %1633 = vmatprep.subr.bf16.mxu0 %v3392_v35  ;;  %2266 = vmatprep.subr.bf16.mxu1 %v3590_v6 }
 0x6e1   :  { %v1413_v19 = vpop.f32.mrb[20].mxu0  ;;  %v1456_v49 = vpop.f32.mrb[36].mxu1 }
 0x6e2   :  { %v2326_v59 = vadd.f32 %v1413_v19, %v3170_v1  ;;  %v1415_v53 = vpop.f32.mrb[21].mxu0  ;;  %v2244_v60 = vpop.f32.mrb[37].mxu1  ;;  %v1491_v24 = vadd.f32 %v3178_v7, %v1456_v49 }
 0x6e3   :  { %v1417_v4 = vpop.f32.mrb[22].mxu0  ;;  %v1459_v3 = vpop.f32.mrb[38].mxu1  ;;  %v2327_v35 = vadd.f32 %v1415_v53, %v3174_v21 }
 0x6e4   :  { %v1976_v62 = vmul.f32 -1.442695, %v2326_v59  ;;  %v2328_v13 = vadd.f32 %v1417_v4, %v3170_v1  ;;  %v1419_v11 = vpop.f32.mrb[23].mxu0  ;;  %v2245_v9 = vpop.f32.mrb[39].mxu1  ;;  %v1492_v27 = vadd.f32 %v3178_v7, %v1459_v3 }
 0x6e5   :  { %v2329_v63 = vadd.f32 %v1419_v11, %v3174_v21  ;;  %v1978_v61 = vmul.f32 -1.442695, %v2327_v35 }
 0x6e6   :  { %2568 = vpow2.f32 %v1976_v62  ;;  %v1977_v58 = vmul.f32 -1.442695, %v2328_v13 }
 0x6e7   :  { %v1979_v0 = vmul.f32 -1.442695, %v2329_v63 }
 0x6e8   :  { %2570 = vpow2.f32 %v1977_v58 }
 0x6e9   :  { %2572 = vpow2.f32 %v1978_v61 }
 0x6f0   :  { %v2569_v36 = vpop.eup %2568 }
 0x6f1   :  { %v1471_v14 = vadd.f32 1.0, %v2569_v36 }
 0x6f2   :  { %v2571_v23 = vpop.eup %2570 }
 0x6f3   :  { %2574 = vrcp.f32 %v1471_v14  ;;  %v1472_v26 = vadd.f32 1.0, %v2571_v23  ;;  %v2573_v28 = vpop.eup %2572 }
 0x6f4   :  { %2576 = vpow2.f32 %v1979_v0  ;;  %v1485_v25 = vadd.f32 1.0, %v2573_v28 }
 0x6f5   :  { %2578 = vrcp.f32 %v1472_v26 }
 0x6fd   :  { %v2575_v30 = vpop.eup %2574 }
 0x6fe   :  { %v2577_v31 = vpop.eup %2576  ;;  %v1493_v33 = vmul.f32 %v2575_v30, %v1491_v24 }
 0x6ff   :  { %v2579_v2 = vpop.eup %2578  ;;  %v1486_v60 = vadd.f32 1.0, %v2577_v31 }
 0x700   :  { %v1495_v19 = vadd.f32 %v1493_v33, %v3147_v16  ;;  %v1494_v59 = vmul.f32 %v2579_v2, %v1492_v27 }
 0x702   :  { %2580 = vtanh.f32 %v1495_v19  ;;  %v1496_v53 = vadd.f32 %v1494_v59, %v3153_v20  ;;  %v2460_v19 = vld [vmem:[#allocation12] sm:$0xff]   ;;  %v2461_v59 = vld [vmem:[#allocation12 + $0x8] sm:$0xff]  }
 0x703   :  { %2582 = vrcp.f32 %v1485_v25 }
 0x704   :  { %2584 = vtanh.f32 %v1496_v53  ;;  %v2462_v53 = vld [vmem:[#allocation12 + $0x10] sm:$0xff]  }
 0x705   :  { %2586 = vrcp.f32 %v1486_v60  ;;  %v2463_v60 = vld [vmem:[#allocation12 + $0x18] sm:$0xff]  }
 0x70c   :  { %v2581_v4 = vpop.eup %2580 }
 0x70d   :  { %v2583_v62 = vpop.eup %2582  ;;  %v1499_v49 = vsub.f32 %v3406_v12, %v2581_v4 }
 0x70e   :  { %v2585_v13 = vpop.eup %2584 }
 0x70f   :  { %v1500_v11 = vsub.f32 %v3408_v18, %v2585_v13  ;;  %v1501_v7 = vmul.f32 %v2583_v62, %v1499_v49  ;;  %v2587_v3 = vpop.eup %2586  ;;  %v2465_v62 = vld [vmem:[#allocation12 + $0x28] sm:$0xff]   ;;  %v2466_v49 = vld [vmem:[#allocation12 + $0x30] sm:$0xff]  }
 0x711   :  { %v1502_v9 = vmul.f32 %v2587_v3, %v1500_v11  ;;  %v3489_v58 = vadd.f32 %v2581_v4, %v1501_v7  ;;  %v2464_v4 = vld [vmem:[#allocation12 + $0x20] sm:$0xff]  }
 0x713   :  { %v3491_v16 = vadd.f32 %v2585_v13, %v1502_v9  ;;  %v2467_v13 = vld [vmem:[#allocation12 + $0x38] sm:$0xff]  }
 0x715   :  { %v1505_v20 = vpack.c.bf16 %v3491_v16, %v3489_v58 }
 0x717   :  { %1539 = vmatmul.mubr.bf16.vlgmr.msra.gmra.mrb[24].mxu0 %v1505_v20  ;;  %2263 = vmatmul.mubr.bf16.vlgmr.msra.gmra.mrb[40].mxu1 %v1505_v20 }
 0x718   :  { %1634 = vmatpush1.bf16.msra.mxu0 %v3345_v42  ;;  %2267 = vmatpush3.bf16.msra.mxu1 %v3413_v37 }
 0x719   :  { %1635 = vmatprep.subr.bf16.mxu0 %v3349_v17  ;;  %2268 = vmatprep.subr.bf16.mxu1 %v3590_v6 }
 0x71a   :  { %1665 = vmatprep.mubr.bf16.mxu0 %v3591_v15  ;;  %2282 = vmatprep.mubr.msk.bf16.mxu1 %vm2852_vm0, %v3590_v6 }
 0x71c   :  { %1636 = vmatpush1.bf16.msra.mxu0 %v3356_v10  ;;  %2269 = vmatpush3.bf16.msra.mxu1 %v3422_v5 }
 0x71d   :  { %1637 = vmatprep.subr.bf16.mxu0 %v3360_v32  ;;  %2270 = vmatprep.subr.bf16.mxu1 %v3590_v6 }
 0x720   :  { %1638 = vmatpush1.bf16.msra.mxu0 %v3364_v39  ;;  %2271 = vmatpush3.bf16.msra.mxu1 %v3428_v8 }
 0x721   :  { %1639 = vmatprep.subr.bf16.mxu0 %v3368_v22  ;;  %2272 = vmatprep.subr.bf16.mxu1 %v3590_v6 }
 0x724   :  { %1640 = vmatpush1.bf16.msra.mxu0 %v3372_v56  ;;  %2273 = vmatpush3.bf16.msra.mxu1 %v3434_v38 }
 0x725   :  { %1641 = vmatprep.subr.bf16.mxu0 %v3437_v40  ;;  %2274 = vmatprep.subr.bf16.mxu1 %v3590_v6 }
 0x728   :  { %1642 = vmatpush1.bf16.msra.mxu0 %v3441_v41  ;;  %2275 = vmatpush3.bf16.msra.mxu1 %v3444_v44 }
 0x729   :  { %1643 = vmatprep.subr.bf16.mxu0 %v3447_v45  ;;  %2276 = vmatprep.subr.bf16.mxu1 %v3590_v6 }
 0x72c   :  { %1644 = vmatpush1.bf16.msra.mxu0 %v3451_v46  ;;  %2277 = vmatpush3.bf16.msra.mxu1 %v3454_v47 }
 0x72d   :  { %1645 = vmatprep.subr.bf16.mxu0 %v3457_v50  ;;  %2278 = vmatprep.subr.bf16.mxu1 %v3590_v6 }
 0x730   :  { %1646 = vmatpush1.bf16.msra.mxu0 %v3461_v48  ;;  %2279 = vmatpush3.bf16.msra.mxu1 %v3464_v51  ;;  %v3533_v48 = vld [vmem:[#allocation11] ss:$0 sm:$0xff] }
 0x731   :  { %1647 = vmatprep.subr.bf16.mxu0 %v3467_v54  ;;  %2280 = vmatprep.subr.bf16.mxu1 %v3590_v6 }
 0x734   :  { %1648 = vmatpush1.bf16.msra.mxu0 %v3471_v55  ;;  %2281 = vmatpush3.bf16.msra.mxu1 %v3474_v57 }
 0x735   :  { %2286 = vmatprep.subr.bf16.mxu1 %v3590_v6 }
 0x7ea   :  { %v1540_v15 = vpop.f32.mrb[24].mxu0  ;;  %v1583_v42 = vpop.f32.mrb[40].mxu1 }
 0x7eb   :  { %v2330_v17 = vadd.f32 %v1540_v15, %v3170_v1  ;;  %v1542_v10 = vpop.f32.mrb[25].mxu0  ;;  %v2264_v32 = vpop.f32.mrb[41].mxu1  ;;  %v1618_v51 = vadd.f32 %v3533_v48, %v1583_v42 }
 0x7ec   :  { %v1544_v39 = vpop.f32.mrb[26].mxu0  ;;  %v1586_v22 = vpop.f32.mrb[42].mxu1  ;;  %v2331_v8 = vadd.f32 %v1542_v10, %v3174_v21 }
 0x7ed   :  { %v1980_v56 = vmul.f32 -1.442695, %v2330_v17  ;;  %v2332_v12 = vadd.f32 %v1544_v39, %v3170_v1  ;;  %v1546_v18 = vpop.f32.mrb[27].mxu0  ;;  %v2265_v37 = vpop.f32.mrb[43].mxu1  ;;  %v1619_v35 = vadd.f32 %v3533_v48, %v1586_v22 }
 0x7ee   :  { %v2333_v38 = vadd.f32 %v1546_v18, %v3174_v21  ;;  %v1982_v40 = vmul.f32 -1.442695, %v2331_v8 }
 0x7ef   :  { %2588 = vpow2.f32 %v1980_v56  ;;  %v1981_v5 = vmul.f32 -1.442695, %v2332_v12 }
 0x7f0   :  { %v1983_v44 = vmul.f32 -1.442695, %v2333_v38 }
 0x7f1   :  { %2590 = vpow2.f32 %v1981_v5 }
 0x7f2   :  { %2592 = vpow2.f32 %v1982_v40 }
 0x7f9   :  { %v2589_v41 = vpop.eup %2588 }
 0x7fa   :  { %v1598_v45 = vadd.f32 1.0, %v2589_v41 }
 0x7fb   :  { %v2591_v46 = vpop.eup %2590 }
 0x7fc   :  { %2594 = vrcp.f32 %v1598_v45  ;;  %v1599_v47 = vadd.f32 1.0, %v2591_v46  ;;  %v2593_v50 = vpop.eup %2592 }
 0x7fd   :  { %2596 = vpow2.f32 %v1983_v44  ;;  %v1612_v61 = vadd.f32 1.0, %v2593_v50 }
 0x7fe   :  { %2598 = vrcp.f32 %v1599_v47 }
 0x806   :  { %v2595_v54 = vpop.eup %2594 }
 0x807   :  { %v2597_v55 = vpop.eup %2596  ;;  %v1620_v57 = vmul.f32 %v2595_v54, %v1618_v51 }
 0x808   :  { %v2599_v63 = vpop.eup %2598  ;;  %v1613_v23 = vadd.f32 1.0, %v2597_v55 }
 0x809   :  { %v1622_v36 = vadd.f32 %v1620_v57, %v3162_v34  ;;  %v1621_v0 = vmul.f32 %v2599_v63, %v1619_v35 }
 0x80b   :  { %2600 = vtanh.f32 %v1622_v36  ;;  %v1623_v14 = vadd.f32 %v1621_v0, %v3168_v52 }
 0x80c   :  { %2602 = vrcp.f32 %v1612_v61 }
 0x80d   :  { %2604 = vtanh.f32 %v1623_v14 }
 0x80e   :  { %2606 = vrcp.f32 %v1613_v23  ;;  %v1988_v23 = vld [vmem:[#allocation14] ss:$0 sm:$0xff] }
 0x815   :  { %v2601_v26 = vpop.eup %2600 }
 0x816   :  { %v2603_v28 = vpop.eup %2602  ;;  %v1626_v24 = vsub.f32 %v3489_v58, %v2601_v26 }
 0x817   :  { %v2605_v30 = vpop.eup %2604 }
 0x818   :  { %v1627_v31 = vsub.f32 %v3491_v16, %v2605_v30  ;;  %v1628_v33 = vmul.f32 %v2603_v28, %v1626_v24  ;;  %v2607_v27 = vpop.eup %2606 }
 0x81a   :  { %v1629_v2 = vmul.f32 %v2607_v27, %v1627_v31  ;;  %v3541_v25 = vadd.f32 %v2601_v26, %v1628_v33 }
 0x81c   :  { %v3543_v34 = vadd.f32 %v2605_v30, %v1629_v2 }
 0x81e   :  { %v1632_v52 = vpack.c.bf16 %v3543_v34, %v3541_v25 }
 0x820   :  { %1666 = vmatmul.mubr.bf16.vlgmr.msra.gmra.mrb[28].mxu0 %v1632_v52  ;;  %2283 = vmatmul.mubr.bf16.vlgmr.msra.gmra.mrb[44].mxu1 %v1632_v52 }
 0x821   :  { %2302 = vmatprep.mubr.msk.bf16.mxu1 %vm2852_vm0, %v3590_v6  ;;  %2287 = vmatpush3.bf16.msra.mxu1 %v2460_v19 }
 0x822   :  { %2288 = vmatprep.subr.bf16.mxu1 %v3590_v6 }
 0x825   :  { %2289 = vmatpush3.bf16.msra.mxu1 %v2461_v59 }
 0x826   :  { %2290 = vmatprep.subr.bf16.mxu1 %v3590_v6 }
 0x829   :  { %2291 = vmatpush3.bf16.msra.mxu1 %v2462_v53 }
 0x82a   :  { %2292 = vmatprep.subr.bf16.mxu1 %v3590_v6 }
 0x82d   :  { %2293 = vmatpush3.bf16.msra.mxu1 %v2463_v60 }
 0x82e   :  { %2294 = vmatprep.subr.bf16.mxu1 %v3590_v6 }
 0x831   :  { %2295 = vmatpush3.bf16.msra.mxu1 %v2464_v4 }
 0x832   :  { %2296 = vmatprep.subr.bf16.mxu1 %v3590_v6 }
 0x835   :  { %2297 = vmatpush3.bf16.msra.mxu1 %v2465_v62 }
 0x836   :  { %2298 = vmatprep.subr.bf16.mxu1 %v3590_v6 }
 0x839   :  { %2299 = vmatpush3.bf16.msra.mxu1 %v2466_v49 }
 0x83a   :  { %2300 = vmatprep.subr.bf16.mxu1 %v3590_v6 }
 0x83d   :  { %2301 = vmatpush3.bf16.msra.mxu1 %v2467_v13 }
 0x8f3   :  { %v1667_v11 = vpop.f32.mrb[28].mxu0  ;;  %v1710_v7 = vpop.f32.mrb[44].mxu1 }
 0x8f4   :  { %v2334_v3 = vadd.f32 %v1667_v11, %v3170_v1  ;;  %v1669_v9 = vpop.f32.mrb[29].mxu0  ;;  %v2284_v58 = vpop.f32.mrb[45].mxu1  ;;  %v1745_v8 = vadd.f32 %v3533_v48, %v1710_v7 }
 0x8f5   :  { %v1671_v16 = vpop.f32.mrb[30].mxu0  ;;  %v1713_v20 = vpop.f32.mrb[46].mxu1  ;;  %v2335_v39 = vadd.f32 %v1669_v9, %v3174_v21 }
 0x8f6   :  { %v1984_v15 = vmul.f32 -1.442695, %v2334_v3  ;;  %v2336_v42 = vadd.f32 %v1671_v16, %v3170_v1  ;;  %v1673_v17 = vpop.f32.mrb[31].mxu0  ;;  %v2285_v10 = vpop.f32.mrb[47].mxu1  ;;  %v1746_v44 = vadd.f32 %v3533_v48, %v1713_v20 }
 0x8f7   :  { %v2337_v6 = vadd.f32 %v1673_v17, %v3174_v21  ;;  %v1986_v22 = vmul.f32 -1.442695, %v2335_v39 }
 0x8f8   :  { %2608 = vpow2.f32 %v1984_v15  ;;  %v1985_v32 = vmul.f32 -1.442695, %v2336_v42 }
 0x8f9   :  { %v1987_v12 = vmul.f32 -1.442695, %v2337_v6 }
 0x8fa   :  { %2610 = vpow2.f32 %v1985_v32 }
 0x8fb   :  { %2612 = vpow2.f32 %v1986_v22 }
 0x902   :  { %v2609_v56 = vpop.eup %2608 }
 0x903   :  { %v1725_v18 = vadd.f32 1.0, %v2609_v56 }
 0x904   :  { %v2611_v37 = vpop.eup %2610 }
 0x905   :  { %2614 = vrcp.f32 %v1725_v18  ;;  %v1726_v5 = vadd.f32 1.0, %v2611_v37  ;;  %v2613_v1 = vpop.eup %2612 }
 0x906   :  { %2616 = vpow2.f32 %v1987_v12  ;;  %v1739_v21 = vadd.f32 1.0, %v2613_v1 }
 0x907   :  { %2618 = vrcp.f32 %v1726_v5 }
 0x90f   :  { %v2615_v38 = vpop.eup %2614 }
 0x910   :  { %v2617_v40 = vpop.eup %2616  ;;  %v1747_v41 = vmul.f32 %v2615_v38, %v1745_v8 }
 0x911   :  { %v2619_v45 = vpop.eup %2618  ;;  %v1740_v51 = vadd.f32 1.0, %v2617_v40 }
 0x912   :  { %v1749_v46 = vadd.f32 %v1747_v41, %v3159_v29  ;;  %v1748_v47 = vmul.f32 %v2619_v45, %v1746_v44 }
 0x914   :  { %2620 = vtanh.f32 %v1749_v46  ;;  %v1750_v50 = vadd.f32 %v1748_v47, %v3165_v43 }
 0x915   :  { %2622 = vrcp.f32 %v1739_v21 }
 0x916   :  { %2624 = vtanh.f32 %v1750_v50 }
 0x917   :  { %2626 = vrcp.f32 %v1740_v51 }
 0x91e   :  { %v2621_v54 = vpop.eup %2620 }
 0x91f   :  { %v2623_v55 = vpop.eup %2622  ;;  %v1753_v57 = vsub.f32 %v3541_v25, %v2621_v54 }
 0x920   :  { %v2625_v35 = vpop.eup %2624 }
 0x921   :  { %v1754_v63 = vsub.f32 %v3543_v34, %v2625_v35  ;;  %v1755_v48 = vmul.f32 %v2623_v55, %v1753_v57  ;;  %v2627_v61 = vpop.eup %2626 }
 0x923   :  { %v1756_v36 = vmul.f32 %v2627_v61, %v1754_v63  ;;  %v1757_v0 = vadd.f32 %v2621_v54, %v1755_v48 }
 0x925   :  { %v1758_v29 = vadd.f32 %v2625_v35, %v1756_v36 }
 0x927   :  { %v1764_v14 = vpack.c.bf16 %v1758_v29, %v1757_v0 }
 0x929   :  { %2303 = vmatmul.mubr.bf16.vlgmr.msra.gmra.mrb[48].mxu1 %v1764_v14 }
 0x9fc   :  { %v1870_v43 = vpop.f32.mrb[48].mxu1 }
 0x9fd   :  { %v1871_v26 = vadd.f32 %v1988_v23, %v1870_v43  ;;  %v2304_v28 = vpop.f32.mrb[49].mxu1 }
 0x9fe   :  { %v1873_v24 = vpop.f32.mrb[50].mxu1 }
 0x9ff   :  { %1877 = vst [vmem:[#allocation15] sm:$0xff] %v1871_v26  ;;  %v1874_v30 = vadd.f32 %v1988_v23, %v1873_v24  ;;  %v2305_v31 = vpop.f32.mrb[51].mxu1 }
 0xa01   :  { %1878 = vst [vmem:[#allocation15 + $0x8] sm:$0xff] %v1874_v30 }
 0xa02   :  { %2818 = shalt.err (!%p2815_p4)
}
 0xa03   :  { %s2819_s16 = scalar_lea.hbm %s3585_s7, 256 }
 0xa04   :  { %p2820_p5 = scmp.ne.s32.totalorder %s3585_s7, %s2819_s16  ;;  %p2823_p6 = scmp.lt.u32.totalorder %s2819_s16, %s3585_s7 }
 0xa06   :  { %p2825_p7 = pnand %p2823_p6, %p2820_p5 }
 0xa08   :  { %2828 = shalt.err (!%p2825_p7)
}
 0xa09   :  { %s2855_s24 = smov 128   ;;  %s2856_s1 = smov 8  }
 0xa0a   :  { %1890 = dma.vmem_to_hbm [thread:$0]  %s1885_s19, 256, %s3585_s7, [#allocation5], %s2855_s24, %s2855_s24, %s2856_s1  }
 0xa0b   :  { %2837 = dma.done.wait [#allocation5], 256  }
 0xa0c   :  { %2838 = vsyncadd [#allocation5], 4294967040 }
 0xa0d   :  { %1894 = vsyncpa [#allocation4], 1 }
 0xa0e   :  { %1895 = vsyncpa [#allocation7], 1 }
 0xa0f   :  { %1896 = vsyncpa [#allocation10], 1 }
 0xa10   :  { %1897 = vsyncpa [#allocation13], 1 }
 0xa11   :  { %1898 = vsyncpa [#allocation5], 1 }

// kernel: gru_model_forward.2
= control target key start
LH: loop header
LB: loop body
LE: loop exit
PB: predicated region body
PF: predicated region fallthrough
CT: control target
= control target key end

     0   :  { %10 = vsyncpa [#allocation4], 0  ;;  %s4547_s0 = inlined_call_operand.hbm [shape: bf16[128,16], index: 0, kind: input, shape index: {}]   ;;  %s4548_s1 = inlined_call_operand.hbm [shape: bf16[16,384], index: 1, kind: input, shape index: {}]   ;;  %s4549_s2 = inlined_call_operand.hbm [shape: bf16[128,384], index: 2, kind: input, shape index: {}]   ;;  %s4550_s3 = inlined_call_operand.hbm [shape: f32[1,384], index: 3, kind: input, shape index: {}]   ;;  %s4551_s4 = inlined_call_operand.hbm [shape: f32[1,128], index: 4, kind: input, shape index: {}]   ;;  %s4552_s5 = inlined_call_operand.hbm [shape: bf16[128,128], index: 5, kind: output, shape index: {}]  }
   0x1   :  { %11 = vsyncpa [#allocation7], 0 }
   0x2   :  { %12 = vsyncpa [#allocation10], 0 }
   0x3   :  { %13 = vsyncpa [#allocation5], 0  ;;  %s3924_s18 = smov [#allocation6]   ;;  %s3784_s22 = scalar_lea.hbm %s4548_s1, 384 }
   0x4   :  { %s31_s19 = sshll.u32 %s3924_s18, 4  ;;  %p3785_p0 = scmp.ne.s32.totalorder %s4548_s1, %s3784_s22  ;;  %s32_s19 = int_to_ptr.vmem [resolvable:$true] %s31_s19 }
   0x5   :  { %p3788_p1 = scmp.lt.u32.totalorder %s3784_s22, %s4548_s1 }
   0x7   :  { %p3790_p2 = pnand %p3788_p1, %p3785_p0 }
   0x9   :  { %3793 = shalt.err (!%p3790_p2)
}
   0xa   :  { %s3794_s27 = scalar_lea.vmem %s32_s19, 384  ;;  %p3799_p4 = scmp.lt.s32.totalorder %s32_s19, %s32_s19 }
   0xb   :  { %p3795_p3 = scmp.ne.s32.totalorder %s32_s19, %s3794_s27  ;;  %p3800_p5 = scmp.lt.s32.totalorder %s3794_s27, %s3794_s27 }
   0xd   :  { %p3801_p6 = por %p3800_p5, %p3799_p4 }
   0xf   :  { %p3802_p7 = pnand %p3801_p6, %p3795_p3 }
  0x11   :  { %3805 = shalt.err (!%p3802_p7)
}
  0x12   :  { %s3925_s28 = smov 192   ;;  %s3926_s29 = smov 12  }
  0x13   :  { %37 = dma.hbm_to_vmem [thread:$0]  %s4548_s1, 384, %s32_s19, [#allocation7], %s3925_s28, %s3925_s28, %s3926_s29  }
  0x14   :  { %s3927_s7 = smov [#allocation9]   ;;  %s3928_s9 = smov [#allocation3]  }
  0x15   :  { %s56_s8 = sshll.u32 %s3927_s7, 4  ;;  %s19_s10 = sshll.u32 %s3928_s9, 4  ;;  %s57_s8 = int_to_ptr.vmem [resolvable:$true] %s56_s8  ;;  %s20_s10 = int_to_ptr.vmem [resolvable:$true] %s19_s10 }
  0x16   :  { %s3806_s13 = scalar_lea.hbm %s4550_s3, 48 }
  0x17   :  { %p3807_p8 = scmp.ne.s32.totalorder %s4550_s3, %s3806_s13  ;;  %p3810_p9 = scmp.lt.u32.totalorder %s3806_s13, %s4550_s3 }
  0x19   :  { %p3812_p10 = pnand %p3810_p9, %p3807_p8 }
  0x1b   :  { %3815 = shalt.err (!%p3812_p10)
}
  0x1c   :  { %s3816_s1 = scalar_lea.vmem %s57_s8, 48  ;;  %s3820_s18 = scalar_lea.vmem %s57_s8, 64 }
  0x1d   :  { %p3817_p11 = scmp.ne.s32.totalorder %s57_s8, %s3816_s1  ;;  %p3821_p12 = scmp.lt.s32.totalorder %s57_s8, %s57_s8 }
  0x1e   :  { %p3822_p13 = scmp.lt.s32.totalorder %s3820_s18, %s3816_s1 }
  0x20   :  { %p3823_p0 = por %p3822_p13, %p3821_p12 }
  0x22   :  { %p3824_p1 = pnand %p3823_p0, %p3817_p11 }
  0x24   :  { %3827 = shalt.err (!%p3824_p1)
}
  0x25   :  { %59 = dma.hbm_to_vmem [thread:$0]  %s4550_s3, 48, %s57_s8, [#allocation10]  }
  0x26   :  { %s3828_s23 = scalar_lea.hbm %s4547_s0, 1024 }
  0x27   :  { %p3829_p2 = scmp.ne.s32.totalorder %s4547_s0, %s3828_s23  ;;  %p3832_p3 = scmp.lt.u32.totalorder %s3828_s23, %s4547_s0 }
  0x29   :  { %p3834_p4 = pnand %p3832_p3, %p3829_p2 }
  0x2b   :  { %3837 = shalt.err (!%p3834_p4)
}
  0x2c   :  { %s3838_s30 = scalar_lea.vmem %s20_s10, 1024  ;;  %p3843_p6 = scmp.lt.s32.totalorder %s20_s10, %s20_s10 }
  0x2d   :  { %p3839_p5 = scmp.ne.s32.totalorder %s20_s10, %s3838_s30  ;;  %p3844_p7 = scmp.lt.s32.totalorder %s3838_s30, %s3838_s30 }
  0x2f   :  { %p3845_p8 = por %p3844_p7, %p3843_p6 }
  0x31   :  { %p3846_p9 = pnand %p3845_p8, %p3839_p5 }
  0x33   :  { %3849 = shalt.err (!%p3846_p9)
}
  0x34   :  { %s3929_s3 = smov 64   ;;  %s3930_s6 = smov 4  }
  0x35   :  { %25 = dma.hbm_to_vmem [thread:$0]  %s4547_s0, 1024, %s20_s10, [#allocation4], %s3929_s3, %s3929_s3, %s3930_s6  }
  0x36   :  { %s3931_s9 = smov [#allocation8]   ;;  %s3932_s12 = smov [#allocation11]  }
  0x37   :  { %s43_s11 = sshll.u32 %s3931_s9, 4  ;;  %s66_s13 = sshll.u32 %s3932_s12, 4  ;;  %s44_s11 = int_to_ptr.vmem [resolvable:$true] %s43_s11  ;;  %s67_s13 = int_to_ptr.vmem [resolvable:$true] %s66_s13 }
  0x38   :  { %s3850_s16 = scalar_lea.hbm %s4549_s2, 3072 }
  0x39   :  { %p3851_p10 = scmp.ne.s32.totalorder %s4549_s2, %s3850_s16  ;;  %p3854_p11 = scmp.lt.u32.totalorder %s3850_s16, %s4549_s2 }
  0x3b   :  { %p3856_p12 = pnand %p3854_p11, %p3851_p10 }
  0x3d   :  { %3859 = shalt.err (!%p3856_p12)
}
  0x3e   :  { %s3860_s0 = scalar_lea.vmem %s44_s11, 3072  ;;  %p3865_p0 = scmp.lt.s32.totalorder %s44_s11, %s44_s11 }
  0x3f   :  { %p3861_p13 = scmp.ne.s32.totalorder %s44_s11, %s3860_s0  ;;  %p3866_p1 = scmp.lt.s32.totalorder %s3860_s0, %s3860_s0 }
  0x41   :  { %p3867_p2 = por %p3866_p1, %p3865_p0 }
  0x43   :  { %p3868_p3 = pnand %p3867_p2, %p3861_p13 }
  0x45   :  { %3871 = shalt.err (!%p3868_p3)
}
  0x46   :  { %49 = dma.hbm_to_vmem [thread:$0]  %s4549_s2, 3072, %s44_s11, [#allocation7], %s3925_s28, %s3925_s28, %s3926_s29  }
  0x47   :  { %s3872_s23 = scalar_lea.hbm %s4551_s4, 16 }
  0x48   :  { %p3873_p4 = scmp.ne.s32.totalorder %s4551_s4, %s3872_s23  ;;  %p3876_p5 = scmp.lt.u32.totalorder %s3872_s23, %s4551_s4 }
  0x4a   :  { %p3878_p6 = pnand %p3876_p5, %p3873_p4 }
  0x4c   :  { %3881 = shalt.err (!%p3878_p6)
}
  0x4d   :  { %s3882_s30 = scalar_lea.vmem %s67_s13, 16  ;;  %s3886_s7 = scalar_lea.vmem %s67_s13, 32 }
  0x4e   :  { %p3883_p7 = scmp.ne.s32.totalorder %s67_s13, %s3882_s30  ;;  %p3887_p8 = scmp.lt.s32.totalorder %s67_s13, %s67_s13 }
  0x4f   :  { %p3888_p9 = scmp.lt.s32.totalorder %s3886_s7, %s3882_s30 }
  0x51   :  { %p3889_p10 = por %p3888_p9, %p3887_p8 }
  0x53   :  { %p3890_p11 = pnand %p3889_p10, %p3883_p7 }
  0x55   :  { %3893 = shalt.err (!%p3890_p11)
}
  0x56   :  { %69 = dma.hbm_to_vmem [thread:$0]  %s4551_s4, 16, %s67_s13, [#allocation10]  }
  0x57   :  { %3916 = dma.done.wait [#allocation4], 1024  }
  0x58   :  { %3917 = vsyncadd [#allocation4], 4294966272 }
  0x59   :  { %3918 = dma.done.wait [#allocation7], 3456  }
  0x5a   :  { %3919 = vsyncadd [#allocation7], 4294963840 }
  0x5b   :  { %3920 = dma.done.wait [#allocation10], 64  }
  0x5c   :  { %3921 = vsyncadd [#allocation10], 4294967232  ;;  %v4555_v0 = vmov 0   ;;  %v3489_v1 = vld [vmem:[#allocation6 + $0x4] ss:$12 sps:$4 sm:$0xff]   ;;  %vm185_vm0 = vcmask 130048   ;;  %v114_v49 = vlaneseq }
  0x5d   :  { %242 = vmatprep.mubr.bf16.mxu0 %v4555_v0  ;;  %302 = vmatprep.mubr.bf16.mxu1 %v4555_v0  ;;  %v3491_v2 = vld [vmem:[#allocation6] ss:$12 sps:$4 sm:$0xff]   ;;  %v4039_v4 = vld [vmem:[#allocation8] ss:$12 sps:$4 sm:$0xff]   ;;  %v4041_v5 = vld [vmem:[#allocation8 + $0x4] ss:$12 sps:$4 sm:$0xff]  }
  0x5e   :  { %210 = vmatprep.subr.bf16.mxu0 %v3489_v1  ;;  %v3492_v3 = vld [vmem:[#allocation3] sm:$0xff]   ;;  %3409 = vmatprep.subr.bf16.mxu1 %v3489_v1  ;;  %v4048_v7 = vld [vmem:[#allocation8 + $0x18] ss:$12 sps:$4 sm:$0xff]   ;;  %v4052_v8 = vld [vmem:[#allocation8 + $0x34] ss:$12 sps:$4 sm:$0xff]   ;;  %v4553_v18 = vmov 0.0  }
  0x5f   :  { %211 = vmatpush1.bf16.msra.mxu0 %v3491_v2  ;;  %3410 = vmatpush1.bf16.msra.mxu1 %v3491_v2  ;;  %v4043_v6 = vld [vmem:[#allocation8 + $0x1c] ss:$12 sps:$4 sm:$0xff]   ;;  %v3499_v9 = vld [vmem:[#allocation3 + $0x8] sm:$0xff]   ;;  %v4060_v12 = vld [vmem:[#allocation8 + $0x4c] ss:$12 sps:$4 sm:$0xff]   ;;  %v3935_v37 = vmov 0.0|0.0  }
  0x60   :  { %590 = vmatprep.subr.bf16.mxu0 %v4041_v5  ;;  %v4054_v10 = vld [vmem:[#allocation8 + $0x30] ss:$12 sps:$4 sm:$0xff]   ;;  %v4068_v14 = vld [vmem:[#allocation8 + $0x48] ss:$12 sps:$4 sm:$0xff]   ;;  %v3517_v16 = vld [vmem:[#allocation3 + $0x38] sm:$0xff]   ;;  %vm3936_vm1 = vmmov 0  }
  0x61   :  { %v4057_v11 = vld [vmem:[#allocation3 + $0x30] sm:$0xff]   ;;  %v4071_v15 = vld [vmem:[#allocation8 + $0x64] ss:$12 sps:$4 sm:$0xff]   ;;  %v4075_v19 = vld [vmem:[#allocation8 + $0x60] ss:$12 sps:$4 sm:$0xff]   ;;  %v115_v51 = vshrl.u32 %v114_v49, 7 }
  0x62   :  { %2830 = vmatmul.mubr.msk.bf16.vlgmr.msra.gmra.mrb[0].mxu0 %vm185_vm0, %v3492_v3  ;;  %2836 = vmatmul.mubr.msk.bf16.vlgmr.msra.gmra.mrb[0].mxu1 %vm185_vm0, %v4057_v11  ;;  %v3512_v13 = vld [vmem:[#allocation6 + $0x8] ss:$12 sps:$4 sm:$0xff]   ;;  %v4085_v21 = vld [vmem:[#allocation8 + $0x78] ss:$12 sps:$4 sm:$0xff]   ;;  %v4088_v22 = vld [vmem:[#allocation8 + $0x94] ss:$12 sps:$4 sm:$0xff]  }
  0x63   :  { %591 = vmatpush1.bf16.msra.mxu0 %v4039_v4  ;;  %252 = vmatprep.mubr.bf16.mxu0 %v4555_v0  ;;  %v3503_v17 = vld [vmem:[#allocation3 + $0x10] sm:$0xff]   ;;  %v3507_v23 = vld [vmem:[#allocation3 + $0x18] sm:$0xff]   ;;  %v3522_v24 = vld [vmem:[#allocation8 + $0x8] ss:$12 sps:$4 sm:$0xff]   ;;  %v124_v54 = vsub.s32 2, %v115_v51  ;;  %s3937_s4 = smov [#allocation12]  }
  0x64   :  { %592 = vmatprep.subr.bf16.mxu0 %v4043_v6  ;;  %312 = vmatprep.mubr.bf16.mxu1 %v4555_v0  ;;  %v4078_v20 = vld [vmem:[#allocation8 + $0x7c] ss:$12 sps:$4 sm:$0xff]   ;;  %v4094_v26 = vld [vmem:[#allocation8 + $0xac] ss:$12 sps:$4 sm:$0xff]   ;;  %v3521_v32 = vld [vmem:[#allocation3 + $0x28] sm:$0xff]   ;;  %s2805_s29 = sshll.u32 %s3937_s4, 4  ;;  %s2806_s29 = int_to_ptr.vmem [resolvable:$true] %s2805_s29 }
  0x65   :  { %3231 = vmatprep.subr.bf16.mxu1 %v3512_v13  ;;  %v4091_v25 = vld [vmem:[#allocation8 + $0x90] ss:$12 sps:$4 sm:$0xff]   ;;  %v4097_v27 = vld [vmem:[#allocation8 + $0xa8] ss:$12 sps:$4 sm:$0xff]   ;;  %v3526_v28 = vld [vmem:[#allocation8 + $0x20] ss:$12 sps:$4 sm:$0xff]   ;;  %p3899_p13 = scmp.lt.s32.totalorder %s2806_s29, %s2806_s29 }
  0x66   :  { %3232 = vmatpush3.bf16.msra.mxu1 %v3512_v13  ;;  %v3516_v29 = vld [vmem:[#allocation3 + $0x20] sm:$0xff]   ;;  %v3527_v30 = vld [vmem:[#allocation8 + $0x38] ss:$12 sps:$4 sm:$0xff]   ;;  %v3528_v31 = vld [vmem:[#allocation8 + $0x50] ss:$12 sps:$4 sm:$0xff]   ;;  %s3894_s8 = scalar_lea.vmem %s2806_s29, 1024 }
  0x67   :  { %593 = vmatpush1.bf16.msra.mxu0 %v4048_v7  ;;  %3249 = vmatprep.subr.bf16.mxu1 %v4553_v18  ;;  %v3529_v33 = vld [vmem:[#allocation8 + $0x68] ss:$12 sps:$4 sm:$0xff]   ;;  %v3530_v34 = vld [vmem:[#allocation8 + $0x80] ss:$12 sps:$4 sm:$0xff]   ;;  %v3531_v35 = vld [vmem:[#allocation8 + $0x98] ss:$12 sps:$4 sm:$0xff]   ;;  %p3895_p12 = scmp.ne.s32.totalorder %s2806_s29, %s3894_s8  ;;  %p3900_p0 = scmp.lt.s32.totalorder %s3894_s8, %s3894_s8 }
  0x68   :  { %594 = vmatprep.subr.bf16.mxu0 %v4052_v8  ;;  %v3532_v36 = vld [vmem:[#allocation8 + $0xb0] ss:$12 sps:$4 sm:$0xff]   ;;  %v3533_v38 = vld [vmem:[#allocation8 + $0x8] ss:$12 sps:$4 sm:$0xff]   ;;  %v3534_v39 = vld [vmem:[#allocation8 + $0x20] ss:$12 sps:$4 sm:$0xff]  }
  0x69   :  { %v3535_v40 = vld [vmem:[#allocation8 + $0x38] ss:$12 sps:$4 sm:$0xff]   ;;  %v3536_v41 = vld [vmem:[#allocation8 + $0x50] ss:$12 sps:$4 sm:$0xff]   ;;  %v3537_v42 = vld [vmem:[#allocation8 + $0x68] ss:$12 sps:$4 sm:$0xff]   ;;  %p3901_p1 = por %p3900_p0, %p3899_p13 }
  0x6a   :  { %2831 = vmatmul.mubr.msk.bf16.gmra.mrb[4].mxu0 %vm185_vm0, %v3499_v9  ;;  %2837 = vmatmul.mubr.msk.bf16.gmra.mrb[4].mxu1 %vm185_vm0, %v3517_v16  ;;  %v3538_v43 = vld [vmem:[#allocation8 + $0x80] ss:$12 sps:$4 sm:$0xff]   ;;  %v3539_v44 = vld [vmem:[#allocation8 + $0x98] ss:$12 sps:$4 sm:$0xff]   ;;  %v3540_v45 = vld [vmem:[#allocation8 + $0xb0] ss:$12 sps:$4 sm:$0xff]  }
  0x6b   :  { %595 = vmatpush1.bf16.msra.mxu0 %v4054_v10  ;;  %262 = vmatprep.mubr.bf16.mxu0 %v4555_v0  ;;  %v112_v57 = vld [vmem:[#allocation9] sm:$0x7]  ;;  %p3902_p2 = pnand %p3901_p1, %p3895_p12 }
  0x6c   :  { %596 = vmatprep.subr.bf16.mxu0 %v4060_v12  ;;  %3233 = vmatprep.mubr.msk.bf16.mxu1 %vm185_vm0, %v3492_v3  ;;  %v4169_v58 = vrot.slane %v112_v57, %v124_v54 }
  0x6f   :  { %597 = vmatpush1.bf16.msra.mxu0 %v4068_v14 }
  0x70   :  { %598 = vmatprep.subr.bf16.mxu0 %v4071_v15 }
  0x72   :  { %2832 = vmatmul.mubr.msk.bf16.gmra.mrb[8].mxu0 %vm185_vm0, %v3503_v17  ;;  %3234 = vmatmul.mubr.msk.bf16.vlgmr.msra.gmra.mrb[8].mxu1 %vm185_vm0, %v3499_v9 }
  0x73   :  { %272 = vmatprep.mubr.bf16.mxu0 %v4555_v0  ;;  %599 = vmatpush1.bf16.msra.mxu0 %v4075_v19 }
  0x74   :  { %600 = vmatprep.subr.bf16.mxu0 %v4078_v20  ;;  %3250 = vmatpush3.bf16.msra.mxu1 %v3522_v24 }
  0x75   :  { %3251 = vmatprep.subr.bf16.mxu1 %v4553_v18  ;;  %3237 = vmatprep.mubr.msk.bf16.mxu1 %vm185_vm0, %v3503_v17 }
  0x77   :  { %601 = vmatpush1.bf16.msra.mxu0 %v4085_v21 }
  0x78   :  { %602 = vmatprep.subr.bf16.mxu0 %v4088_v22  ;;  %3252 = vmatpush3.bf16.msra.mxu1 %v3526_v28 }
  0x79   :  { %3253 = vmatprep.subr.bf16.mxu1 %v4553_v18 }
  0x7a   :  { %2833 = vmatmul.mubr.msk.bf16.gmra.mrb[12].mxu0 %vm185_vm0, %v3507_v23  ;;  %3238 = vmatmul.mubr.msk.bf16.gmra.mrb[12].mxu1 %vm185_vm0, %v3507_v23 }
  0x7b   :  { %282 = vmatprep.mubr.bf16.mxu0 %v4555_v0  ;;  %603 = vmatpush1.bf16.msra.mxu0 %v4091_v25 }
  0x7c   :  { %604 = vmatprep.subr.bf16.mxu0 %v4094_v26  ;;  %3254 = vmatpush3.bf16.msra.mxu1 %v3527_v30 }
  0x7d   :  { %3255 = vmatprep.subr.bf16.mxu1 %v4553_v18  ;;  %3241 = vmatprep.mubr.msk.bf16.mxu1 %vm185_vm0, %v3516_v29 }
  0x7f   :  { %605 = vmatpush1.bf16.msra.mxu0 %v4097_v27 }
  0x80   :  { %886 = vmatprep.subr.bf16.mxu0 %v4041_v5  ;;  %3256 = vmatpush3.bf16.msra.mxu1 %v3528_v31 }
  0x81   :  { %3257 = vmatprep.subr.bf16.mxu1 %v4553_v18 }
  0x82   :  { %2834 = vmatmul.mubr.msk.bf16.gmra.mrb[16].mxu0 %vm185_vm0, %v3516_v29  ;;  %3242 = vmatmul.mubr.msk.bf16.gmra.mrb[16].mxu1 %vm185_vm0, %v3521_v32 }
  0x83   :  { %292 = vmatprep.mubr.bf16.mxu0 %v4555_v0  ;;  %3245 = vmatprep.mubr.msk.bf16.mxu1 %vm185_vm0, %v4057_v11 }
  0x84   :  { %3258 = vmatpush3.bf16.msra.mxu1 %v3529_v33 }
  0x85   :  { %3259 = vmatprep.subr.bf16.mxu1 %v4553_v18 }
  0x88   :  { %3260 = vmatpush3.bf16.msra.mxu1 %v3530_v34  ;;  %v116_v34 = vsub.s32 0, %v115_v51 }
  0x89   :  { %3261 = vmatprep.subr.bf16.mxu1 %v4553_v18 }
  0x8a   :  { %2835 = vmatmul.mubr.msk.bf16.gmra.mrb[20].mxu0 %vm185_vm0, %v3521_v32  ;;  %3246 = vmatmul.mubr.msk.bf16.gmra.mrb[20].mxu1 %vm185_vm0, %v3517_v16 }
  0x8b   :  { %622 = vmatprep.mubr.bf16.mxu0 %v4555_v0  ;;  %3265 = vmatprep.mubr.msk.bf16.mxu1 %vm3936_vm1, %v4553_v18 }
  0x8c   :  { %3262 = vmatpush3.bf16.msra.mxu1 %v3531_v35 }
  0x8d   :  { %3263 = vmatprep.subr.bf16.mxu1 %v4553_v18 }
  0x90   :  { %3264 = vmatpush3.bf16.msra.mxu1 %v3532_v36  ;;  %v4205_v36 = vrot.slane %v112_v57, %v116_v34 }
  0x91   :  { %3269 = vmatprep.subr.bf16.mxu1 %v4553_v18 }
  0x92   :  { %623 = vmatmul.mubr.bf16.vlgmr.msra.gmra.mrb[0].mxu0 %v3935_v37 }
  0x93   :  { %887 = vmatpush1.bf16.msra.mxu0 %v4039_v4  ;;  %918 = vmatprep.mubr.bf16.mxu0 %v4555_v0 }
  0x94   :  { %888 = vmatprep.subr.bf16.mxu0 %v4043_v6  ;;  %3266 = vmatmul.mubr.bf16.vlgmr.msra.gmra.mrb[24].mxu1 %v3935_v37 }
  0x95   :  { %3285 = vmatprep.mubr.msk.bf16.mxu1 %vm3936_vm1, %v4553_v18  ;;  %3270 = vmatpush3.bf16.msra.mxu1 %v3533_v38 }
  0x96   :  { %3271 = vmatprep.subr.bf16.mxu1 %v4553_v18 }
  0x97   :  { %889 = vmatpush1.bf16.msra.mxu0 %v4048_v7 }
  0x98   :  { %890 = vmatprep.subr.bf16.mxu0 %v4052_v8 }
  0x99   :  { %3272 = vmatpush3.bf16.msra.mxu1 %v3534_v39 }
  0x9a   :  { %3273 = vmatprep.subr.bf16.mxu1 %v4553_v18 }
  0x9b   :  { %891 = vmatpush1.bf16.msra.mxu0 %v4054_v10 }
  0x9c   :  { %892 = vmatprep.subr.bf16.mxu0 %v4060_v12 }
  0x9d   :  { %3274 = vmatpush3.bf16.msra.mxu1 %v3535_v40 }
  0x9e   :  { %3275 = vmatprep.subr.bf16.mxu1 %v4553_v18 }
  0x9f   :  { %893 = vmatpush1.bf16.msra.mxu0 %v4068_v14 }
  0xa0   :  { %894 = vmatprep.subr.bf16.mxu0 %v4071_v15 }
  0xa1   :  { %3276 = vmatpush3.bf16.msra.mxu1 %v3536_v41 }
  0xa2   :  { %3277 = vmatprep.subr.bf16.mxu1 %v4553_v18 }
  0xa3   :  { %895 = vmatpush1.bf16.msra.mxu0 %v4075_v19 }
  0xa4   :  { %896 = vmatprep.subr.bf16.mxu0 %v4078_v20 }
  0xa5   :  { %3278 = vmatpush3.bf16.msra.mxu1 %v3537_v42 }
  0xa6   :  { %3279 = vmatprep.subr.bf16.mxu1 %v4553_v18 }
  0xa7   :  { %897 = vmatpush1.bf16.msra.mxu0 %v4085_v21 }
  0xa8   :  { %898 = vmatprep.subr.bf16.mxu0 %v4088_v22 }
  0xa9   :  { %3280 = vmatpush3.bf16.msra.mxu1 %v3538_v43 }
  0xaa   :  { %3281 = vmatprep.subr.bf16.mxu1 %v4553_v18 }
  0xab   :  { %899 = vmatpush1.bf16.msra.mxu0 %v4091_v25 }
  0xac   :  { %900 = vmatprep.subr.bf16.mxu0 %v4094_v26 }
  0xad   :  { %3282 = vmatpush3.bf16.msra.mxu1 %v3539_v44 }
  0xae   :  { %3283 = vmatprep.subr.bf16.mxu1 %v4553_v18 }
  0xaf   :  { %901 = vmatpush1.bf16.msra.mxu0 %v4097_v27 }
  0xb0   :  { %1182 = vmatprep.subr.bf16.mxu0 %v4041_v5 }
  0xb1   :  { %3284 = vmatpush3.bf16.msra.mxu1 %v3540_v45 }
  0xb2   :  { %3289 = vmatprep.subr.bf16.mxu1 %v4553_v18 }
 0x135   :  { %v4153_v46 = vpop.f32.mrb[0].mxu1 }
 0x136   :  { %v4155_v47 = vpop.f32.mrb[1].mxu1 }
 0x137   :  { %v4157_v48 = vpop.f32.mrb[2].mxu1 }
 0x138   :  { %v4159_v50 = vpop.f32.mrb[3].mxu1 }
 0x13d   :  { %v4161_v52 = vpop.f32.mrb[4].mxu1 }
 0x13e   :  { %v4163_v53 = vpop.f32.mrb[5].mxu1 }
 0x13f   :  { %v4165_v55 = vpop.f32.mrb[6].mxu1 }
 0x140   :  { %v4167_v56 = vpop.f32.mrb[7].mxu1 }
 0x145   :  { %v3235_v59 = vpop.f32.mrb[8].mxu1 }
 0x146   :  { %v4172_v60 = vadd.f32 %v3235_v59, %v4169_v58  ;;  %v4174_v61 = vpop.f32.mrb[9].mxu1  ;;  %v120_v59 = vsub.s32 1, %v115_v51 }
 0x147   :  { %v3236_v62 = vpop.f32.mrb[10].mxu1 }
 0x148   :  { %v4177_v63 = vadd.f32 %v3236_v62, %v4169_v58  ;;  %v4179_v1 = vpop.f32.mrb[11].mxu1 }
 0x14d   :  { %v3239_v2 = vpop.f32.mrb[12].mxu1 }
 0x14e   :  { %v4182_v3 = vadd.f32 %v3239_v2, %v4169_v58  ;;  %v373_v9 = vpop.f32.mrb[13].mxu1 }
 0x14f   :  { %v4185_v11 = vadd.f32 %v373_v9, %v4169_v58  ;;  %v3240_v13 = vpop.f32.mrb[14].mxu1 }
 0x150   :  { %v4188_v16 = vadd.f32 %v3240_v13, %v4169_v58  ;;  %v376_v17 = vpop.f32.mrb[15].mxu1 }
 0x151   :  { %v4191_v23 = vadd.f32 %v376_v17, %v4169_v58 }
 0x155   :  { %v3243_v24 = vpop.f32.mrb[16].mxu1 }
 0x156   :  { %v4194_v28 = vadd.f32 %v3243_v24, %v4169_v58  ;;  %v389_v29 = vpop.f32.mrb[17].mxu1  ;;  %v4221_v24 = vrot.slane %v112_v57, %v120_v59  ;;  %v4225_v57 = vld [vmem:[#allocation11] ss:$0 sm:$0xff] }
 0x157   :  { %v4197_v30 = vadd.f32 %v389_v29, %v4169_v58  ;;  %v3244_v31 = vpop.f32.mrb[18].mxu1 }
 0x158   :  { %v4200_v32 = vadd.f32 %v3244_v31, %v4169_v58  ;;  %v392_v33 = vpop.f32.mrb[19].mxu1 }
 0x159   :  { %v4203_v35 = vadd.f32 %v392_v33, %v4169_v58 }
 0x15d   :  { %v3247_v37 = vpop.f32.mrb[20].mxu1 }
 0x15e   :  { %v4208_v39 = vadd.f32 %v3247_v37, %v4169_v58  ;;  %v405_v40 = vpop.f32.mrb[21].mxu1 }
 0x15f   :  { %v4212_v43 = vadd.f32 %v405_v40, %v4169_v58  ;;  %v3248_v44 = vpop.f32.mrb[22].mxu1 }
 0x160   :  { %v4215_v49 = vadd.f32 %v3248_v44, %v4169_v58  ;;  %v408_v54 = vpop.f32.mrb[23].mxu1 }
 0x161   :  { %v4219_v13 = vadd.f32 %v408_v54, %v4169_v58 }
 0x165   :  { %v624_v38 = vpop.f32.mrb[0].mxu0 }
 0x166   :  { %v3411_v41 = vadd.f32 %v624_v38, %v4205_v36  ;;  %v626_v42 = vpop.f32.mrb[1].mxu0 }
 0x167   :  { %v628_v45 = vpop.f32.mrb[2].mxu0  ;;  %v667_v29 = vpop.f32.mrb[24].mxu1  ;;  %v3412_v33 = vadd.f32 %v626_v42, %v4221_v24 }
 0x168   :  { %v2871_v62 = vmul.f32 -1.442695, %v3411_v41  ;;  %v3413_v2 = vadd.f32 %v628_v45, %v4205_v36  ;;  %v630_v9 = vpop.f32.mrb[3].mxu0  ;;  %v3267_v31 = vpop.f32.mrb[25].mxu1  ;;  %v702_v59 = vadd.f32 %v4225_v57, %v667_v29 }
 0x169   :  { %v670_v34 = vpop.f32.mrb[26].mxu1  ;;  %v3414_v51 = vadd.f32 %v630_v9, %v4221_v24  ;;  %v2873_v38 = vmul.f32 -1.442695, %v3412_v33  ;;  %v358_v9 = vadd.f32 %v4174_v61, %v4169_v58 }
 0x16a   :  { %3622 = vpow2.f32 %v2871_v62  ;;  %v2872_v17 = vmul.f32 -1.442695, %v3413_v2  ;;  %v3268_v37 = vpop.f32.mrb[27].mxu1  ;;  %v703_v31 = vadd.f32 %v4225_v57, %v670_v34 }
 0x16b   :  { %v2874_v41 = vmul.f32 -1.442695, %v3414_v51  ;;  %v361_v51 = vadd.f32 %v4179_v1, %v4169_v58  ;;  %v4557_v1 = vmov 0  }
 0x16c   :  { %3624 = vpow2.f32 %v2872_v17 }
 0x16d   :  { %3626 = vpow2.f32 %v2873_v38 }
 0x174   :  { %v3623_v40 = vpop.eup %3622 }
 0x175   :  { %v682_v44 = vadd.f32 1.0, %v3623_v40 }
 0x176   :  { %v3625_v45 = vpop.eup %3624 }
 0x177   :  { %3628 = vrcp.f32 %v682_v44  ;;  %v683_v54 = vadd.f32 1.0, %v3625_v45  ;;  %v3627_v62 = vpop.eup %3626 }
 0x178   :  { %3630 = vpow2.f32 %v2874_v41  ;;  %v696_v37 = vadd.f32 1.0, %v3627_v62 }
 0x179   :  { %3632 = vrcp.f32 %v683_v54 }
 0x181   :  { %v3629_v42 = vpop.eup %3628 }
 0x182   :  { %v3631_v2 = vpop.eup %3630  ;;  %v704_v17 = vmul.f32 %v3629_v42, %v702_v59 }
 0x183   :  { %v3633_v33 = vpop.eup %3632  ;;  %v697_v41 = vadd.f32 1.0, %v3631_v2  ;;  %v4558_v2 = vmov 0.0  }
 0x184   :  { %v706_v38 = vadd.f32 %v704_v17, %v358_v9  ;;  %v705_v40 = vmul.f32 %v3633_v33, %v703_v31 }
 0x186   :  { %3634 = vtanh.f32 %v706_v38  ;;  %v707_v44 = vadd.f32 %v705_v40, %v361_v51 }
 0x187   :  { %3636 = vrcp.f32 %v696_v37 }
 0x188   :  { %3638 = vtanh.f32 %v707_v44 }
 0x189   :  { %3640 = vrcp.f32 %v697_v41 }
 0x190   :  { %v3635_v29 = vpop.eup %3634 }
 0x191   :  { %v3637_v45 = vpop.eup %3636  ;;  %v710_v54 = vsub.f32 0.0, %v3635_v29 }
 0x192   :  { %v3639_v61 = vpop.eup %3638 }
 0x193   :  { %v711_v59 = vsub.f32 0.0, %v3639_v61  ;;  %v712_v42 = vmul.f32 %v3637_v45, %v710_v54  ;;  %v3641_v34 = vpop.eup %3640 }
 0x195   :  { %v713_v18 = vmul.f32 %v3641_v34, %v711_v59  ;;  %v4233_v62 = vadd.f32 %v3635_v29, %v712_v42 }
 0x197   :  { %v4235_v0 = vadd.f32 %v3639_v61, %v713_v18 }
 0x199   :  { %v716_v58 = vpack.c.bf16 %v4235_v0, %v4233_v62 }
 0x19b   :  { %3107 = vst [vmem:[#allocation12] sm:$0xff] %v716_v58   ;;  %919 = vmatmul.mubr.bf16.vlgmr.msra.gmra.mrb[4].mxu0 %v716_v58  ;;  %3286 = vmatmul.mubr.bf16.vlgmr.msra.gmra.mrb[28].mxu1 %v716_v58 }
 0x19c   :  { %1183 = vmatpush1.bf16.msra.mxu0 %v4039_v4  ;;  %1214 = vmatprep.mubr.bf16.mxu0 %v4557_v1  ;;  %v3541_v4 = vld [vmem:[#allocation8 + $0x8] ss:$12 sps:$4 sm:$0xff]  }
 0x19d   :  { %1184 = vmatprep.subr.bf16.mxu0 %v4043_v6  ;;  %3305 = vmatprep.mubr.msk.bf16.mxu1 %vm3936_vm1, %v4558_v2  ;;  %v3542_v6 = vld [vmem:[#allocation8 + $0x20] ss:$12 sps:$4 sm:$0xff]  }
 0x19e   :  { %3290 = vmatpush3.bf16.msra.mxu1 %v3541_v4 }
 0x19f   :  { %3291 = vmatprep.subr.bf16.mxu1 %v4558_v2 }
 0x1a0   :  { %1185 = vmatpush1.bf16.msra.mxu0 %v4048_v7  ;;  %v3543_v7 = vld [vmem:[#allocation8 + $0x38] ss:$12 sps:$4 sm:$0xff]  }
 0x1a1   :  { %1186 = vmatprep.subr.bf16.mxu0 %v4052_v8  ;;  %v3544_v8 = vld [vmem:[#allocation8 + $0x50] ss:$12 sps:$4 sm:$0xff]  }
 0x1a2   :  { %3292 = vmatpush3.bf16.msra.mxu1 %v3542_v6 }
 0x1a3   :  { %3293 = vmatprep.subr.bf16.mxu1 %v4558_v2 }
 0x1a4   :  { %1187 = vmatpush1.bf16.msra.mxu0 %v4054_v10  ;;  %v3545_v10 = vld [vmem:[#allocation8 + $0x68] ss:$12 sps:$4 sm:$0xff]  }
 0x1a5   :  { %1188 = vmatprep.subr.bf16.mxu0 %v4060_v12  ;;  %v3546_v12 = vld [vmem:[#allocation8 + $0x80] ss:$12 sps:$4 sm:$0xff]  }
 0x1a6   :  { %3294 = vmatpush3.bf16.msra.mxu1 %v3543_v7 }
 0x1a7   :  { %3295 = vmatprep.subr.bf16.mxu1 %v4558_v2 }
 0x1a8   :  { %1189 = vmatpush1.bf16.msra.mxu0 %v4068_v14  ;;  %v3548_v14 = vld [vmem:[#allocation8 + $0xb0] ss:$12 sps:$4 sm:$0xff]  }
 0x1a9   :  { %1190 = vmatprep.subr.bf16.mxu0 %v4071_v15 }
 0x1aa   :  { %3296 = vmatpush3.bf16.msra.mxu1 %v3544_v8 }
 0x1ab   :  { %3297 = vmatprep.subr.bf16.mxu1 %v4558_v2 }
 0x1ac   :  { %1191 = vmatpush1.bf16.msra.mxu0 %v4075_v19 }
 0x1ad   :  { %1192 = vmatprep.subr.bf16.mxu0 %v4078_v20 }
 0x1ae   :  { %3298 = vmatpush3.bf16.msra.mxu1 %v3545_v10 }
 0x1af   :  { %3299 = vmatprep.subr.bf16.mxu1 %v4558_v2 }
 0x1b0   :  { %1193 = vmatpush1.bf16.msra.mxu0 %v4085_v21 }
 0x1b1   :  { %1194 = vmatprep.subr.bf16.mxu0 %v4088_v22 }
 0x1b2   :  { %3300 = vmatpush3.bf16.msra.mxu1 %v3546_v12 }
 0x1b3   :  { %3301 = vmatprep.subr.bf16.mxu1 %v4558_v2 }
 0x1b4   :  { %1195 = vmatpush1.bf16.msra.mxu0 %v4091_v25 }
 0x1b5   :  { %1196 = vmatprep.subr.bf16.mxu0 %v4094_v26 }
 0x1b8   :  { %1197 = vmatpush1.bf16.msra.mxu0 %v4097_v27 }
 0x1b9   :  { %1478 = vmatprep.subr.bf16.mxu0 %v4041_v5  ;;  %v3547_v5 = vld [vmem:[#allocation8 + $0x98] ss:$12 sps:$4 sm:$0xff]  }
 0x1ba   :  { %3302 = vmatpush3.bf16.msra.mxu1 %v3547_v5 }
 0x1bb   :  { %3303 = vmatprep.subr.bf16.mxu1 %v4558_v2 }
 0x1be   :  { %3304 = vmatpush3.bf16.msra.mxu1 %v3548_v14 }
 0x1bf   :  { %3309 = vmatprep.subr.bf16.mxu1 %v4558_v2 }
 0x26e   :  { %v920_v18 = vpop.f32.mrb[4].mxu0  ;;  %v963_v9 = vpop.f32.mrb[28].mxu1 }
 0x26f   :  { %v3415_v17 = vadd.f32 %v920_v18, %v4205_v36  ;;  %v922_v31 = vpop.f32.mrb[5].mxu0  ;;  %v3287_v33 = vpop.f32.mrb[29].mxu1  ;;  %v998_v7 = vadd.f32 %v4225_v57, %v963_v9 }
 0x270   :  { %v924_v37 = vpop.f32.mrb[6].mxu0  ;;  %v966_v51 = vpop.f32.mrb[30].mxu1  ;;  %v3416_v45 = vadd.f32 %v922_v31, %v4221_v24 }
 0x271   :  { %v2901_v38 = vmul.f32 -1.442695, %v3415_v17  ;;  %v3417_v40 = vadd.f32 %v924_v37, %v4205_v36  ;;  %v926_v41 = vpop.f32.mrb[7].mxu0  ;;  %v3288_v44 = vpop.f32.mrb[31].mxu1  ;;  %v999_v5 = vadd.f32 %v4225_v57, %v966_v51 }
 0x272   :  { %v3418_v54 = vadd.f32 %v926_v41, %v4221_v24  ;;  %v2903_v61 = vmul.f32 -1.442695, %v3416_v45 }
 0x273   :  { %3642 = vpow2.f32 %v2901_v38  ;;  %v2902_v29 = vmul.f32 -1.442695, %v3417_v40 }
 0x274   :  { %v2904_v42 = vmul.f32 -1.442695, %v3418_v54 }
 0x275   :  { %3644 = vpow2.f32 %v2902_v29 }
 0x276   :  { %3646 = vpow2.f32 %v2903_v61  ;;  %v3782_v61 = vld [vmem:[#allocation8] ss:$12 sps:$4 sm:$0xff]  }
 0x27d   :  { %v3643_v59 = vpop.eup %3642 }
 0x27e   :  { %v978_v34 = vadd.f32 1.0, %v3643_v59  ;;  %v4288_v59 = vld [vmem:[#allocation8 + $0x18] ss:$12 sps:$4 sm:$0xff]  }
 0x27f   :  { %v3645_v58 = vpop.eup %3644 }
 0x280   :  { %3648 = vrcp.f32 %v978_v34  ;;  %v979_v4 = vadd.f32 1.0, %v3645_v58  ;;  %v3647_v6 = vpop.eup %3646  ;;  %v4292_v34 = vld [vmem:[#allocation8 + $0x34] ss:$12 sps:$4 sm:$0xff]   ;;  %v4295_v58 = vld [vmem:[#allocation8 + $0x30] ss:$12 sps:$4 sm:$0xff]  }
 0x281   :  { %3650 = vpow2.f32 %v2904_v42  ;;  %v992_v18 = vadd.f32 1.0, %v3647_v6  ;;  %v3553_v42 = vld [vmem:[#allocation8 + $0x20] ss:$12 sps:$4 sm:$0xff]  }
 0x282   :  { %3652 = vrcp.f32 %v979_v4  ;;  %v3557_v4 = vld [vmem:[#allocation8 + $0x38] ss:$12 sps:$4 sm:$0xff]  }
 0x283   :  { %v4299_v6 = vld [vmem:[#allocation8 + $0x4c] ss:$12 sps:$4 sm:$0xff]  }
 0x28a   :  { %v3649_v8 = vpop.eup %3648 }
 0x28b   :  { %v3651_v10 = vpop.eup %3650  ;;  %v1000_v12 = vmul.f32 %v3649_v8, %v998_v7  ;;  %v4302_v7 = vld [vmem:[#allocation8 + $0x48] ss:$12 sps:$4 sm:$0xff]   ;;  %v3561_v8 = vld [vmem:[#allocation8 + $0x50] ss:$12 sps:$4 sm:$0xff]  }
 0x28c   :  { %v3653_v14 = vpop.eup %3652  ;;  %v993_v37 = vadd.f32 1.0, %v3651_v10  ;;  %v3562_v10 = vld [vmem:[#allocation8 + $0x68] ss:$12 sps:$4 sm:$0xff]  }
 0x28d   :  { %v1002_v17 = vadd.f32 %v1000_v12, %v4172_v60  ;;  %v1001_v31 = vmul.f32 %v3653_v14, %v999_v5  ;;  %v3563_v12 = vld [vmem:[#allocation8 + $0x80] ss:$12 sps:$4 sm:$0xff]   ;;  %v3564_v5 = vld [vmem:[#allocation8 + $0x98] ss:$12 sps:$4 sm:$0xff]  }
 0x28f   :  { %3654 = vtanh.f32 %v1002_v17  ;;  %v1003_v33 = vadd.f32 %v1001_v31, %v4177_v63 }
 0x290   :  { %3656 = vrcp.f32 %v992_v18 }
 0x291   :  { %3658 = vtanh.f32 %v1003_v33 }
 0x292   :  { %3660 = vrcp.f32 %v993_v37 }
 0x299   :  { %v3655_v38 = vpop.eup %3654 }
 0x29a   :  { %v3657_v40 = vpop.eup %3656  ;;  %v1006_v9 = vsub.f32 %v4233_v62, %v3655_v38  ;;  %v4285_v62 = vld [vmem:[#allocation8 + $0x1c] ss:$12 sps:$4 sm:$0xff]  }
 0x29b   :  { %v3659_v41 = vpop.eup %3658 }
 0x29c   :  { %v1007_v44 = vsub.f32 %v4235_v0, %v3659_v41  ;;  %v1008_v51 = vmul.f32 %v3657_v40, %v1006_v9  ;;  %v3661_v29 = vpop.eup %3660  ;;  %v3549_v0 = vld [vmem:[#allocation8 + $0x8] ss:$12 sps:$4 sm:$0xff]  }
 0x29e   :  { %v1009_v45 = vmul.f32 %v3661_v29, %v1007_v44  ;;  %v4276_v54 = vadd.f32 %v3655_v38, %v1008_v51 }
 0x2a0   :  { %v4278_v60 = vadd.f32 %v3659_v41, %v1009_v45 }
 0x2a2   :  { %v1012_v63 = vpack.c.bf16 %v4278_v60, %v4276_v54 }
 0x2a4   :  { %3143 = vst [vmem:[#allocation12 + $0x8] sm:$0xff] %v1012_v63   ;;  %1215 = vmatmul.mubr.bf16.vlgmr.msra.gmra.mrb[8].mxu0 %v1012_v63  ;;  %3306 = vmatmul.mubr.bf16.vlgmr.msra.gmra.mrb[32].mxu1 %v1012_v63 }
 0x2a5   :  { %1479 = vmatpush1.bf16.msra.mxu0 %v3782_v61  ;;  %1510 = vmatprep.mubr.bf16.mxu0 %v4557_v1 }
 0x2a6   :  { %3325 = vmatprep.mubr.msk.bf16.mxu1 %vm3936_vm1, %v4558_v2  ;;  %3310 = vmatpush3.bf16.msra.mxu1 %v3549_v0 }
 0x2a7   :  { %3311 = vmatprep.subr.bf16.mxu1 %v4558_v2  ;;  %1480 = vmatprep.subr.bf16.mxu0 %v4285_v62 }
 0x2a9   :  { %1481 = vmatpush1.bf16.msra.mxu0 %v4288_v59 }
 0x2aa   :  { %3312 = vmatpush3.bf16.msra.mxu1 %v3553_v42  ;;  %1482 = vmatprep.subr.bf16.mxu0 %v4292_v34 }
 0x2ab   :  { %3313 = vmatprep.subr.bf16.mxu1 %v4558_v2 }
 0x2ad   :  { %1483 = vmatpush1.bf16.msra.mxu0 %v4295_v58 }
 0x2ae   :  { %3314 = vmatpush3.bf16.msra.mxu1 %v3557_v4  ;;  %1484 = vmatprep.subr.bf16.mxu0 %v4299_v6 }
 0x2af   :  { %3315 = vmatprep.subr.bf16.mxu1 %v4558_v2 }
 0x2b1   :  { %1485 = vmatpush1.bf16.msra.mxu0 %v4302_v7 }
 0x2b2   :  { %3316 = vmatpush3.bf16.msra.mxu1 %v3561_v8  ;;  %1486 = vmatprep.subr.bf16.mxu0 %v4071_v15  ;;  %v3565_v15 = vld [vmem:[#allocation8 + $0xb0] ss:$12 sps:$4 sm:$0xff]  }
 0x2b3   :  { %3317 = vmatprep.subr.bf16.mxu1 %v4558_v2 }
 0x2b5   :  { %1487 = vmatpush1.bf16.msra.mxu0 %v4075_v19 }
 0x2b6   :  { %3318 = vmatpush3.bf16.msra.mxu1 %v3562_v10  ;;  %1488 = vmatprep.subr.bf16.mxu0 %v4078_v20 }
 0x2b7   :  { %3319 = vmatprep.subr.bf16.mxu1 %v4558_v2 }
 0x2b9   :  { %1489 = vmatpush1.bf16.msra.mxu0 %v4085_v21 }
 0x2ba   :  { %3320 = vmatpush3.bf16.msra.mxu1 %v3563_v12  ;;  %1490 = vmatprep.subr.bf16.mxu0 %v4088_v22 }
 0x2bb   :  { %3321 = vmatprep.subr.bf16.mxu1 %v4558_v2 }
 0x2bd   :  { %1491 = vmatpush1.bf16.msra.mxu0 %v4091_v25 }
 0x2be   :  { %3322 = vmatpush3.bf16.msra.mxu1 %v3564_v5  ;;  %1492 = vmatprep.subr.bf16.mxu0 %v4094_v26 }
 0x2bf   :  { %3323 = vmatprep.subr.bf16.mxu1 %v4558_v2 }
 0x2c1   :  { %1493 = vmatpush1.bf16.msra.mxu0 %v4097_v27 }
 0x2c2   :  { %3324 = vmatpush3.bf16.msra.mxu1 %v3565_v15 }
 0x2c3   :  { %3329 = vmatprep.subr.bf16.mxu1 %v4558_v2 }
 0x377   :  { %v1216_v19 = vpop.f32.mrb[8].mxu0  ;;  %v1259_v20 = vpop.f32.mrb[32].mxu1 }
 0x378   :  { %v3419_v21 = vadd.f32 %v1216_v19, %v4205_v36  ;;  %v1218_v22 = vpop.f32.mrb[9].mxu0  ;;  %v3307_v14 = vpop.f32.mrb[33].mxu1  ;;  %v1294_v63 = vadd.f32 %v4225_v57, %v1259_v20 }
 0x379   :  { %v1220_v18 = vpop.f32.mrb[10].mxu0  ;;  %v1262_v17 = vpop.f32.mrb[34].mxu1  ;;  %v3420_v27 = vadd.f32 %v1218_v22, %v4221_v24 }
 0x37a   :  { %v2931_v25 = vmul.f32 -1.442695, %v3419_v21  ;;  %v3421_v31 = vadd.f32 %v1220_v18, %v4205_v36  ;;  %v1222_v33 = vpop.f32.mrb[11].mxu0  ;;  %v3308_v26 = vpop.f32.mrb[35].mxu1  ;;  %v1295_v4 = vadd.f32 %v4225_v57, %v1262_v17 }
 0x37b   :  { %v3422_v38 = vadd.f32 %v1222_v33, %v4221_v24  ;;  %v2933_v40 = vmul.f32 -1.442695, %v3420_v27  ;;  %v3569_v26 = vld [vmem:[#allocation8 + $0x8] ss:$12 sps:$4 sm:$0xff]   ;;  %v3571_v27 = vld [vmem:[#allocation8 + $0x38] ss:$12 sps:$4 sm:$0xff]  }
 0x37c   :  { %3662 = vpow2.f32 %v2931_v25  ;;  %v2932_v37 = vmul.f32 -1.442695, %v3421_v31 }
 0x37d   :  { %v2934_v41 = vmul.f32 -1.442695, %v3422_v38  ;;  %v3572_v38 = vld [vmem:[#allocation8 + $0x50] ss:$12 sps:$4 sm:$0xff]  }
 0x37e   :  { %3664 = vpow2.f32 %v2932_v37  ;;  %v3570_v37 = vld [vmem:[#allocation8 + $0x20] ss:$12 sps:$4 sm:$0xff]  }
 0x37f   :  { %3666 = vpow2.f32 %v2933_v40  ;;  %v4353_v40 = vld [vmem:[#allocation8 + $0x60] ss:$12 sps:$4 sm:$0xff]  }
 0x386   :  { %v3663_v9 = vpop.eup %3662 }
 0x387   :  { %v1274_v44 = vadd.f32 1.0, %v3663_v9  ;;  %v4355_v9 = vld [vmem:[#allocation8 + $0x64] ss:$12 sps:$4 sm:$0xff]  }
 0x388   :  { %v3665_v51 = vpop.eup %3664 }
 0x389   :  { %3668 = vrcp.f32 %v1274_v44  ;;  %v1275_v29 = vadd.f32 1.0, %v3665_v51  ;;  %v3667_v45 = vpop.eup %3666  ;;  %v4358_v44 = vld [vmem:[#allocation8 + $0x7c] ss:$12 sps:$4 sm:$0xff]   ;;  %v4362_v51 = vld [vmem:[#allocation8 + $0x78] ss:$12 sps:$4 sm:$0xff]  }
 0x38a   :  { %3670 = vpow2.f32 %v2934_v41  ;;  %v1288_v10 = vadd.f32 1.0, %v3667_v45  ;;  %v3576_v41 = vld [vmem:[#allocation8 + $0x68] ss:$12 sps:$4 sm:$0xff]  }
 0x38b   :  { %3672 = vrcp.f32 %v1275_v29  ;;  %v3580_v29 = vld [vmem:[#allocation8 + $0x80] ss:$12 sps:$4 sm:$0xff]  }
 0x38c   :  { %v4366_v45 = vld [vmem:[#allocation8 + $0x94] ss:$12 sps:$4 sm:$0xff]  }
 0x393   :  { %v3669_v61 = vpop.eup %3668 }
 0x394   :  { %v3671_v0 = vpop.eup %3670  ;;  %v1296_v42 = vmul.f32 %v3669_v61, %v1294_v63  ;;  %v4369_v63 = vld [vmem:[#allocation8 + $0x90] ss:$12 sps:$4 sm:$0xff]   ;;  %v3584_v61 = vld [vmem:[#allocation8 + $0x98] ss:$12 sps:$4 sm:$0xff]  }
 0x395   :  { %v3673_v8 = vpop.eup %3672  ;;  %v1289_v19 = vadd.f32 1.0, %v3671_v0  ;;  %v4373_v0 = vld [vmem:[#allocation8 + $0xac] ss:$12 sps:$4 sm:$0xff]  }
 0x396   :  { %v1298_v12 = vadd.f32 %v1296_v42, %v4185_v11  ;;  %v1297_v5 = vmul.f32 %v3673_v8, %v1295_v4  ;;  %v4376_v42 = vld [vmem:[#allocation8 + $0xa8] ss:$12 sps:$4 sm:$0xff]   ;;  %v3588_v4 = vld [vmem:[#allocation8 + $0xb0] ss:$12 sps:$4 sm:$0xff]  }
 0x398   :  { %3674 = vtanh.f32 %v1298_v12  ;;  %v1299_v15 = vadd.f32 %v1297_v5, %v4191_v23 }
 0x399   :  { %3676 = vrcp.f32 %v1288_v10 }
 0x39a   :  { %3678 = vtanh.f32 %v1299_v15 }
 0x39b   :  { %3680 = vrcp.f32 %v1289_v19 }
 0x3a2   :  { %v3675_v21 = vpop.eup %3674 }
 0x3a3   :  { %v3677_v22 = vpop.eup %3676  ;;  %v1302_v20 = vsub.f32 %v4276_v54, %v3675_v21  ;;  %v4338_v54 = vld [vmem:[#allocation8 + $0x4] ss:$12 sps:$4 sm:$0xff]  }
 0x3a4   :  { %v3679_v14 = vpop.eup %3678  ;;  %1774 = vmatprep.subr.bf16.mxu0 %v4338_v54 }
 0x3a5   :  { %v1303_v18 = vsub.f32 %v4278_v60, %v3679_v14  ;;  %v1304_v17 = vmul.f32 %v3677_v22, %v1302_v20  ;;  %v3681_v25 = vpop.eup %3680  ;;  %v4340_v60 = vld [vmem:[#allocation8] ss:$12 sps:$4 sm:$0xff]  }
 0x3a7   :  { %v1305_v31 = vmul.f32 %v3681_v25, %v1303_v18  ;;  %v4329_v33 = vadd.f32 %v3675_v21, %v1304_v17 }
 0x3a9   :  { %v4331_v11 = vadd.f32 %v3679_v14, %v1305_v31 }
 0x3ab   :  { %v1308_v23 = vpack.c.bf16 %v4331_v11, %v4329_v33 }
 0x3ad   :  { %3144 = vst [vmem:[#allocation12 + $0x10] sm:$0xff] %v1308_v23   ;;  %1511 = vmatmul.mubr.bf16.vlgmr.msra.gmra.mrb[12].mxu0 %v1308_v23  ;;  %3326 = vmatmul.mubr.bf16.vlgmr.msra.gmra.mrb[36].mxu1 %v1308_v23 }
 0x3ae   :  { %1806 = vmatprep.mubr.bf16.mxu0 %v4557_v1  ;;  %3345 = vmatprep.mubr.msk.bf16.mxu1 %vm3936_vm1, %v4558_v2 }
 0x3af   :  { %1775 = vmatpush1.bf16.msra.mxu0 %v4340_v60  ;;  %3330 = vmatpush3.bf16.msra.mxu1 %v3569_v26 }
 0x3b0   :  { %1776 = vmatprep.subr.bf16.mxu0 %v4285_v62  ;;  %3331 = vmatprep.subr.bf16.mxu1 %v4558_v2 }
 0x3b3   :  { %1777 = vmatpush1.bf16.msra.mxu0 %v4288_v59  ;;  %3332 = vmatpush3.bf16.msra.mxu1 %v3570_v37 }
 0x3b4   :  { %1778 = vmatprep.subr.bf16.mxu0 %v4292_v34  ;;  %3333 = vmatprep.subr.bf16.mxu1 %v4558_v2 }
 0x3b7   :  { %1779 = vmatpush1.bf16.msra.mxu0 %v4295_v58  ;;  %3334 = vmatpush3.bf16.msra.mxu1 %v3571_v27 }
 0x3b8   :  { %1780 = vmatprep.subr.bf16.mxu0 %v4299_v6  ;;  %3335 = vmatprep.subr.bf16.mxu1 %v4558_v2 }
 0x3bb   :  { %1781 = vmatpush1.bf16.msra.mxu0 %v4302_v7  ;;  %3336 = vmatpush3.bf16.msra.mxu1 %v3572_v38 }
 0x3bc   :  { %3337 = vmatprep.subr.bf16.mxu1 %v4558_v2  ;;  %1782 = vmatprep.subr.bf16.mxu0 %v4355_v9 }
 0x3bf   :  { %1783 = vmatpush1.bf16.msra.mxu0 %v4353_v40  ;;  %3338 = vmatpush3.bf16.msra.mxu1 %v3576_v41 }
 0x3c0   :  { %1784 = vmatprep.subr.bf16.mxu0 %v4358_v44  ;;  %3339 = vmatprep.subr.bf16.mxu1 %v4558_v2 }
 0x3c3   :  { %1785 = vmatpush1.bf16.msra.mxu0 %v4362_v51  ;;  %3340 = vmatpush3.bf16.msra.mxu1 %v3580_v29 }
 0x3c4   :  { %1786 = vmatprep.subr.bf16.mxu0 %v4366_v45  ;;  %3341 = vmatprep.subr.bf16.mxu1 %v4558_v2 }
 0x3c7   :  { %1787 = vmatpush1.bf16.msra.mxu0 %v4369_v63  ;;  %3342 = vmatpush3.bf16.msra.mxu1 %v3584_v61 }
 0x3c8   :  { %1788 = vmatprep.subr.bf16.mxu0 %v4373_v0  ;;  %3343 = vmatprep.subr.bf16.mxu1 %v4558_v2 }
 0x3cb   :  { %1789 = vmatpush1.bf16.msra.mxu0 %v4376_v42  ;;  %3344 = vmatpush3.bf16.msra.mxu1 %v3588_v4 }
 0x3cc   :  { %2070 = vmatprep.subr.bf16.mxu0 %v4338_v54  ;;  %3349 = vmatprep.subr.bf16.mxu1 %v4558_v2 }
 0x480   :  { %v1512_v8 = vpop.f32.mrb[12].mxu0  ;;  %v1555_v10 = vpop.f32.mrb[36].mxu1 }
 0x481   :  { %v3423_v12 = vadd.f32 %v1512_v8, %v4205_v36  ;;  %v1514_v5 = vpop.f32.mrb[13].mxu0  ;;  %v3327_v15 = vpop.f32.mrb[37].mxu1  ;;  %v1590_v61 = vadd.f32 %v4225_v57, %v1555_v10 }
 0x482   :  { %v1516_v19 = vpop.f32.mrb[14].mxu0  ;;  %v1558_v21 = vpop.f32.mrb[38].mxu1  ;;  %v3424_v25 = vadd.f32 %v1514_v5, %v4221_v24 }
 0x483   :  { %v2961_v22 = vmul.f32 -1.442695, %v3423_v12  ;;  %v3425_v20 = vadd.f32 %v1516_v19, %v4205_v36  ;;  %v1518_v14 = vpop.f32.mrb[15].mxu0  ;;  %v3328_v18 = vpop.f32.mrb[39].mxu1  ;;  %v1591_v5 = vadd.f32 %v4225_v57, %v1558_v21 }
 0x484   :  { %v3426_v31 = vadd.f32 %v1518_v14, %v4221_v24  ;;  %v2963_v23 = vmul.f32 -1.442695, %v3424_v25 }
 0x485   :  { %3682 = vpow2.f32 %v2961_v22  ;;  %v2962_v17 = vmul.f32 -1.442695, %v3425_v20 }
 0x486   :  { %v2964_v37 = vmul.f32 -1.442695, %v3426_v31 }
 0x487   :  { %3684 = vpow2.f32 %v2962_v17 }
 0x488   :  { %3686 = vpow2.f32 %v2963_v23 }
 0x48f   :  { %v3683_v26 = vpop.eup %3682 }
 0x490   :  { %v1570_v27 = vadd.f32 1.0, %v3683_v26 }
 0x491   :  { %v3685_v38 = vpop.eup %3684 }
 0x492   :  { %3688 = vrcp.f32 %v1570_v27  ;;  %v1571_v41 = vadd.f32 1.0, %v3685_v38  ;;  %v3687_v29 = vpop.eup %3686  ;;  %v3591_v38 = vld [vmem:[#allocation8 + $0x38] ss:$12 sps:$4 sm:$0xff]  }
 0x493   :  { %3690 = vpow2.f32 %v2964_v37  ;;  %v1584_v19 = vadd.f32 1.0, %v3687_v29  ;;  %v3593_v29 = vld [vmem:[#allocation8 + $0x68] ss:$12 sps:$4 sm:$0xff]  }
 0x494   :  { %3692 = vrcp.f32 %v1571_v41  ;;  %v3592_v41 = vld [vmem:[#allocation8 + $0x50] ss:$12 sps:$4 sm:$0xff]  }
 0x49c   :  { %v3689_v4 = vpop.eup %3688 }
 0x49d   :  { %v3691_v8 = vpop.eup %3690  ;;  %v1592_v12 = vmul.f32 %v3689_v4, %v1590_v61  ;;  %v3594_v61 = vld [vmem:[#allocation8 + $0x80] ss:$12 sps:$4 sm:$0xff]   ;;  %v3595_v4 = vld [vmem:[#allocation8 + $0x98] ss:$12 sps:$4 sm:$0xff]  }
 0x49e   :  { %v3693_v15 = vpop.eup %3692  ;;  %v1585_v18 = vadd.f32 1.0, %v3691_v8  ;;  %v3596_v8 = vld [vmem:[#allocation8 + $0xb0] ss:$12 sps:$4 sm:$0xff]  }
 0x49f   :  { %v1594_v22 = vadd.f32 %v1592_v12, %v4182_v3  ;;  %v1593_v20 = vmul.f32 %v3693_v15, %v1591_v5 }
 0x4a1   :  { %3694 = vtanh.f32 %v1594_v22  ;;  %v1595_v14 = vadd.f32 %v1593_v20, %v4188_v16 }
 0x4a2   :  { %3696 = vrcp.f32 %v1584_v19 }
 0x4a3   :  { %3698 = vtanh.f32 %v1595_v14 }
 0x4a4   :  { %3700 = vrcp.f32 %v1585_v18 }
 0x4ab   :  { %v3695_v17 = vpop.eup %3694 }
 0x4ac   :  { %v3697_v25 = vpop.eup %3696  ;;  %v1598_v10 = vsub.f32 %v4329_v33, %v3695_v17  ;;  %v3589_v33 = vld [vmem:[#allocation8 + $0x8] ss:$12 sps:$4 sm:$0xff]  }
 0x4ad   :  { %v3699_v31 = vpop.eup %3698 }
 0x4ae   :  { %v1599_v23 = vsub.f32 %v4331_v11, %v3699_v31  ;;  %v1600_v21 = vmul.f32 %v3697_v25, %v1598_v10  ;;  %v3701_v26 = vpop.eup %3700  ;;  %v3590_v11 = vld [vmem:[#allocation8 + $0x20] ss:$12 sps:$4 sm:$0xff]  }
 0x4b0   :  { %v1601_v37 = vmul.f32 %v3701_v26, %v1599_v23  ;;  %v4393_v27 = vadd.f32 %v3695_v17, %v1600_v21 }
 0x4b2   :  { %v4395_v3 = vadd.f32 %v3699_v31, %v1601_v37 }
 0x4b4   :  { %v1604_v16 = vpack.c.bf16 %v4395_v3, %v4393_v27 }
 0x4b6   :  { %3145 = vst [vmem:[#allocation12 + $0x18] sm:$0xff] %v1604_v16   ;;  %1807 = vmatmul.mubr.bf16.vlgmr.msra.gmra.mrb[16].mxu0 %v1604_v16  ;;  %3346 = vmatmul.mubr.bf16.vlgmr.msra.gmra.mrb[40].mxu1 %v1604_v16 }
 0x4b7   :  { %2071 = vmatpush1.bf16.msra.mxu0 %v4340_v60  ;;  %2102 = vmatprep.mubr.bf16.mxu0 %v4557_v1 }
 0x4b8   :  { %2072 = vmatprep.subr.bf16.mxu0 %v4285_v62  ;;  %3365 = vmatprep.mubr.msk.bf16.mxu1 %vm3936_vm1, %v4558_v2 }
 0x4b9   :  { %3350 = vmatpush3.bf16.msra.mxu1 %v3589_v33 }
 0x4ba   :  { %3351 = vmatprep.subr.bf16.mxu1 %v4558_v2 }
 0x4bb   :  { %2073 = vmatpush1.bf16.msra.mxu0 %v4288_v59 }
 0x4bc   :  { %2074 = vmatprep.subr.bf16.mxu0 %v4292_v34 }
 0x4bd   :  { %3352 = vmatpush3.bf16.msra.mxu1 %v3590_v11 }
 0x4be   :  { %3353 = vmatprep.subr.bf16.mxu1 %v4558_v2 }
 0x4bf   :  { %2075 = vmatpush1.bf16.msra.mxu0 %v4295_v58 }
 0x4c0   :  { %2076 = vmatprep.subr.bf16.mxu0 %v4299_v6 }
 0x4c1   :  { %3354 = vmatpush3.bf16.msra.mxu1 %v3591_v38 }
 0x4c2   :  { %3355 = vmatprep.subr.bf16.mxu1 %v4558_v2 }
 0x4c3   :  { %2077 = vmatpush1.bf16.msra.mxu0 %v4302_v7 }
 0x4c4   :  { %2078 = vmatprep.subr.bf16.mxu0 %v4355_v9 }
 0x4c5   :  { %3356 = vmatpush3.bf16.msra.mxu1 %v3592_v41 }
 0x4c6   :  { %3357 = vmatprep.subr.bf16.mxu1 %v4558_v2 }
 0x4c7   :  { %2079 = vmatpush1.bf16.msra.mxu0 %v4353_v40 }
 0x4c8   :  { %2080 = vmatprep.subr.bf16.mxu0 %v4358_v44 }
 0x4c9   :  { %3358 = vmatpush3.bf16.msra.mxu1 %v3593_v29 }
 0x4ca   :  { %3359 = vmatprep.subr.bf16.mxu1 %v4558_v2 }
 0x4cb   :  { %2081 = vmatpush1.bf16.msra.mxu0 %v4362_v51 }
 0x4cc   :  { %2082 = vmatprep.subr.bf16.mxu0 %v4366_v45 }
 0x4cd   :  { %3360 = vmatpush3.bf16.msra.mxu1 %v3594_v61 }
 0x4ce   :  { %3361 = vmatprep.subr.bf16.mxu1 %v4558_v2 }
 0x4cf   :  { %2083 = vmatpush1.bf16.msra.mxu0 %v4369_v63 }
 0x4d0   :  { %2084 = vmatprep.subr.bf16.mxu0 %v4373_v0 }
 0x4d1   :  { %3362 = vmatpush3.bf16.msra.mxu1 %v3595_v4 }
 0x4d2   :  { %3363 = vmatprep.subr.bf16.mxu1 %v4558_v2 }
 0x4d3   :  { %2085 = vmatpush1.bf16.msra.mxu0 %v4376_v42 }
 0x4d4   :  { %2366 = vmatprep.subr.bf16.mxu0 %v4338_v54 }
 0x4d5   :  { %3364 = vmatpush3.bf16.msra.mxu1 %v3596_v8 }
 0x4d6   :  { %3369 = vmatprep.subr.bf16.mxu1 %v4558_v2 }
 0x589   :  { %v1808_v12 = vpop.f32.mrb[16].mxu0  ;;  %v1851_v5 = vpop.f32.mrb[40].mxu1 }
 0x58a   :  { %v3427_v15 = vadd.f32 %v1808_v12, %v4205_v36  ;;  %v1810_v19 = vpop.f32.mrb[17].mxu0  ;;  %v3347_v22 = vpop.f32.mrb[41].mxu1  ;;  %v1886_v29 = vadd.f32 %v4225_v57, %v1851_v5 }
 0x58b   :  { %v1812_v20 = vpop.f32.mrb[18].mxu0  ;;  %v1854_v14 = vpop.f32.mrb[42].mxu1  ;;  %v3428_v23 = vadd.f32 %v1810_v19, %v4221_v24 }
 0x58c   :  { %v2991_v18 = vmul.f32 -1.442695, %v3427_v15  ;;  %v3429_v17 = vadd.f32 %v1812_v20, %v4205_v36  ;;  %v1814_v25 = vpop.f32.mrb[19].mxu0  ;;  %v3348_v10 = vpop.f32.mrb[43].mxu1  ;;  %v1887_v12 = vadd.f32 %v4225_v57, %v1854_v14 }
 0x58d   :  { %v3430_v21 = vadd.f32 %v1814_v25, %v4221_v24  ;;  %v2993_v26 = vmul.f32 -1.442695, %v3428_v23 }
 0x58e   :  { %3702 = vpow2.f32 %v2991_v18  ;;  %v2992_v31 = vmul.f32 -1.442695, %v3429_v17 }
 0x58f   :  { %v2994_v16 = vmul.f32 -1.442695, %v3430_v21 }
 0x590   :  { %3704 = vpow2.f32 %v2992_v31 }
 0x591   :  { %3706 = vpow2.f32 %v2993_v26 }
 0x598   :  { %v3703_v37 = vpop.eup %3702 }
 0x599   :  { %v1866_v33 = vadd.f32 1.0, %v3703_v37 }
 0x59a   :  { %v3705_v11 = vpop.eup %3704 }
 0x59b   :  { %3708 = vrcp.f32 %v1866_v33  ;;  %v1867_v38 = vadd.f32 1.0, %v3705_v11  ;;  %v3707_v41 = vpop.eup %3706 }
 0x59c   :  { %3710 = vpow2.f32 %v2994_v16  ;;  %v1880_v19 = vadd.f32 1.0, %v3707_v41 }
 0x59d   :  { %3712 = vrcp.f32 %v1867_v38 }
 0x5a5   :  { %v3709_v61 = vpop.eup %3708 }
 0x5a6   :  { %v3711_v4 = vpop.eup %3710  ;;  %v1888_v8 = vmul.f32 %v3709_v61, %v1886_v29 }
 0x5a7   :  { %v3713_v15 = vpop.eup %3712  ;;  %v1881_v17 = vadd.f32 1.0, %v3711_v4 }
 0x5a8   :  { %v1890_v22 = vadd.f32 %v1888_v8, %v4197_v30  ;;  %v1889_v20 = vmul.f32 %v3713_v15, %v1887_v12 }
 0x5aa   :  { %3714 = vtanh.f32 %v1890_v22  ;;  %v1891_v18 = vadd.f32 %v1889_v20, %v4203_v35 }
 0x5ab   :  { %3716 = vrcp.f32 %v1880_v19 }
 0x5ac   :  { %3718 = vtanh.f32 %v1891_v18 }
 0x5ad   :  { %3720 = vrcp.f32 %v1881_v17 }
 0x5b4   :  { %v3715_v25 = vpop.eup %3714 }
 0x5b5   :  { %v3717_v10 = vpop.eup %3716  ;;  %v1894_v5 = vsub.f32 %v4393_v27, %v3715_v25  ;;  %v3604_v27 = vld [vmem:[#allocation8 + $0xb0] ss:$12 sps:$4 sm:$0xff]  }
 0x5b6   :  { %v3719_v31 = vpop.eup %3718 }
 0x5b7   :  { %v1895_v23 = vsub.f32 %v4395_v3, %v3719_v31  ;;  %v1896_v14 = vmul.f32 %v3717_v10, %v1894_v5  ;;  %v3721_v21 = vpop.eup %3720 }
 0x5b9   :  { %v1897_v26 = vmul.f32 %v3721_v21, %v1895_v23  ;;  %v4436_v37 = vadd.f32 %v3715_v25, %v1896_v14 }
 0x5bb   :  { %v4438_v30 = vadd.f32 %v3719_v31, %v1897_v26 }
 0x5bd   :  { %v1900_v35 = vpack.c.bf16 %v4438_v30, %v4436_v37 }
 0x5bf   :  { %3146 = vst [vmem:[#allocation12 + $0x20] sm:$0xff] %v1900_v35   ;;  %2103 = vmatmul.mubr.bf16.vlgmr.msra.gmra.mrb[20].mxu0 %v1900_v35  ;;  %3366 = vmatmul.mubr.bf16.vlgmr.msra.gmra.mrb[44].mxu1 %v1900_v35  ;;  %v4474_v35 = vld [vmem:[#allocation11] ss:$0 sm:$0xff] }
 0x5c0   :  { %2367 = vmatpush1.bf16.msra.mxu0 %v4340_v60  ;;  %2398 = vmatprep.mubr.bf16.mxu0 %v4557_v1 }
 0x5c1   :  { %2368 = vmatprep.subr.bf16.mxu0 %v4285_v62  ;;  %3385 = vmatprep.mubr.msk.bf16.mxu1 %vm3936_vm1, %v4558_v2  ;;  %v3597_v62 = vld [vmem:[#allocation8 + $0x8] ss:$12 sps:$4 sm:$0xff]  }
 0x5c2   :  { %3370 = vmatpush3.bf16.msra.mxu1 %v3597_v62 }
 0x5c3   :  { %3371 = vmatprep.subr.bf16.mxu1 %v4558_v2 }
 0x5c4   :  { %2369 = vmatpush1.bf16.msra.mxu0 %v4288_v59  ;;  %v3598_v59 = vld [vmem:[#allocation8 + $0x20] ss:$12 sps:$4 sm:$0xff]  }
 0x5c5   :  { %2370 = vmatprep.subr.bf16.mxu0 %v4292_v34  ;;  %v3599_v34 = vld [vmem:[#allocation8 + $0x38] ss:$12 sps:$4 sm:$0xff]  }
 0x5c6   :  { %3372 = vmatpush3.bf16.msra.mxu1 %v3598_v59 }
 0x5c7   :  { %3373 = vmatprep.subr.bf16.mxu1 %v4558_v2 }
 0x5c8   :  { %2371 = vmatpush1.bf16.msra.mxu0 %v4295_v58  ;;  %v3600_v58 = vld [vmem:[#allocation8 + $0x50] ss:$12 sps:$4 sm:$0xff]  }
 0x5c9   :  { %2372 = vmatprep.subr.bf16.mxu0 %v4299_v6  ;;  %v3601_v6 = vld [vmem:[#allocation8 + $0x68] ss:$12 sps:$4 sm:$0xff]  }
 0x5ca   :  { %3374 = vmatpush3.bf16.msra.mxu1 %v3599_v34 }
 0x5cb   :  { %3375 = vmatprep.subr.bf16.mxu1 %v4558_v2 }
 0x5cc   :  { %2373 = vmatpush1.bf16.msra.mxu0 %v4302_v7  ;;  %v3602_v7 = vld [vmem:[#allocation8 + $0x80] ss:$12 sps:$4 sm:$0xff]  }
 0x5cd   :  { %2374 = vmatprep.subr.bf16.mxu0 %v4355_v9 }
 0x5ce   :  { %3376 = vmatpush3.bf16.msra.mxu1 %v3600_v58 }
 0x5cf   :  { %3377 = vmatprep.subr.bf16.mxu1 %v4558_v2 }
 0x5d0   :  { %2375 = vmatpush1.bf16.msra.mxu0 %v4353_v40 }
 0x5d1   :  { %2376 = vmatprep.subr.bf16.mxu0 %v4358_v44 }
 0x5d2   :  { %3378 = vmatpush3.bf16.msra.mxu1 %v3601_v6 }
 0x5d3   :  { %3379 = vmatprep.subr.bf16.mxu1 %v4558_v2 }
 0x5d4   :  { %2377 = vmatpush1.bf16.msra.mxu0 %v4362_v51 }
 0x5d5   :  { %2378 = vmatprep.subr.bf16.mxu0 %v4366_v45 }
 0x5d6   :  { %3380 = vmatpush3.bf16.msra.mxu1 %v3602_v7 }
 0x5d7   :  { %3381 = vmatprep.subr.bf16.mxu1 %v4558_v2 }
 0x5d8   :  { %2379 = vmatpush1.bf16.msra.mxu0 %v4369_v63 }
 0x5d9   :  { %2380 = vmatprep.subr.bf16.mxu0 %v4373_v0 }
 0x5dc   :  { %2381 = vmatpush1.bf16.msra.mxu0 %v4376_v42 }
 0x5dd   :  { %2662 = vmatprep.subr.bf16.mxu0 %v4338_v54  ;;  %v3603_v54 = vld [vmem:[#allocation8 + $0x98] ss:$12 sps:$4 sm:$0xff]  }
 0x5de   :  { %3382 = vmatpush3.bf16.msra.mxu1 %v3603_v54 }
 0x5df   :  { %3383 = vmatprep.subr.bf16.mxu1 %v4558_v2 }
 0x5e2   :  { %3384 = vmatpush3.bf16.msra.mxu1 %v3604_v27 }
 0x5e3   :  { %3389 = vmatprep.subr.bf16.mxu1 %v4558_v2 }
 0x692   :  { %v2104_v3 = vpop.f32.mrb[20].mxu0  ;;  %v2147_v16 = vpop.f32.mrb[44].mxu1 }
 0x693   :  { %v3431_v33 = vadd.f32 %v2104_v3, %v4205_v36  ;;  %v2106_v11 = vpop.f32.mrb[21].mxu0  ;;  %v3367_v38 = vpop.f32.mrb[45].mxu1  ;;  %v2182_v23 = vadd.f32 %v4225_v57, %v2147_v16 }
 0x694   :  { %v2108_v41 = vpop.f32.mrb[22].mxu0  ;;  %v2150_v29 = vpop.f32.mrb[46].mxu1  ;;  %v3432_v19 = vadd.f32 %v2106_v11, %v4221_v24 }
 0x695   :  { %v3021_v61 = vmul.f32 -1.442695, %v3431_v33  ;;  %v3433_v4 = vadd.f32 %v2108_v41, %v4205_v36  ;;  %v2110_v8 = vpop.f32.mrb[23].mxu0  ;;  %v3368_v12 = vpop.f32.mrb[47].mxu1  ;;  %v2183_v62 = vadd.f32 %v4474_v35, %v2150_v29 }
 0x696   :  { %v3434_v22 = vadd.f32 %v2110_v8, %v4221_v24  ;;  %v3023_v20 = vmul.f32 -1.442695, %v3432_v19  ;;  %v3612_v8 = vld [vmem:[#allocation8 + $0x34] ss:$12 sps:$4 sm:$0xff]   ;;  %v3610_v12 = vld [vmem:[#allocation8 + $0x30] ss:$12 sps:$4 sm:$0xff]  }
 0x697   :  { %3722 = vpow2.f32 %v3021_v61  ;;  %v3022_v15 = vmul.f32 -1.442695, %v3433_v4  ;;  %v3606_v61 = vld [vmem:[#allocation8 + $0x18] ss:$12 sps:$4 sm:$0xff]   ;;  %v3609_v4 = vld [vmem:[#allocation8 + $0x20] ss:$12 sps:$4 sm:$0xff]  }
 0x698   :  { %v3024_v17 = vmul.f32 -1.442695, %v3434_v22  ;;  %v3617_v19 = vld [vmem:[#allocation8 + $0x50] ss:$12 sps:$4 sm:$0xff]   ;;  %v3618_v22 = vld [vmem:[#allocation8 + $0x68] ss:$12 sps:$4 sm:$0xff]  }
 0x699   :  { %3724 = vpow2.f32 %v3022_v15  ;;  %v3614_v15 = vld [vmem:[#allocation8 + $0x48] ss:$12 sps:$4 sm:$0xff]  }
 0x69a   :  { %3726 = vpow2.f32 %v3023_v20  ;;  %v3619_v20 = vld [vmem:[#allocation8 + $0x80] ss:$12 sps:$4 sm:$0xff]  }
 0x6a1   :  { %v3723_v18 = vpop.eup %3722 }
 0x6a2   :  { %v2162_v25 = vadd.f32 1.0, %v3723_v18  ;;  %v3620_v18 = vld [vmem:[#allocation8 + $0x98] ss:$12 sps:$4 sm:$0xff]  }
 0x6a3   :  { %v3725_v10 = vpop.eup %3724 }
 0x6a4   :  { %3728 = vrcp.f32 %v2162_v25  ;;  %v2163_v5 = vadd.f32 1.0, %v3725_v10  ;;  %v3727_v31 = vpop.eup %3726 }
 0x6a5   :  { %3730 = vpow2.f32 %v3024_v17  ;;  %v2176_v34 = vadd.f32 1.0, %v3727_v31 }
 0x6a6   :  { %3732 = vrcp.f32 %v2163_v5 }
 0x6ae   :  { %v3729_v14 = vpop.eup %3728 }
 0x6af   :  { %v3731_v21 = vpop.eup %3730  ;;  %v2184_v26 = vmul.f32 %v3729_v14, %v2182_v23 }
 0x6b0   :  { %v3733_v59 = vpop.eup %3732  ;;  %v2177_v54 = vadd.f32 1.0, %v3731_v21 }
 0x6b1   :  { %v2186_v58 = vadd.f32 %v2184_v26, %v4194_v28  ;;  %v2185_v6 = vmul.f32 %v3733_v59, %v2183_v62 }
 0x6b3   :  { %3734 = vtanh.f32 %v2186_v58  ;;  %v2187_v7 = vadd.f32 %v2185_v6, %v4200_v32 }
 0x6b4   :  { %3736 = vrcp.f32 %v2176_v34 }
 0x6b5   :  { %3738 = vtanh.f32 %v2187_v7 }
 0x6b6   :  { %3740 = vrcp.f32 %v2177_v54 }
 0x6bd   :  { %v3735_v57 = vpop.eup %3734 }
 0x6be   :  { %v3737_v27 = vpop.eup %3736  ;;  %v2190_v3 = vsub.f32 %v4436_v37, %v3735_v57  ;;  %v3605_v37 = vld [vmem:[#allocation8 + $0x8] ss:$12 sps:$4 sm:$0xff]  }
 0x6bf   :  { %v3739_v16 = vpop.eup %3738 }
 0x6c0   :  { %v2191_v33 = vsub.f32 %v4438_v30, %v3739_v16  ;;  %v2192_v11 = vmul.f32 %v3737_v27, %v2190_v3  ;;  %v3741_v38 = vpop.eup %3740  ;;  %v3608_v30 = vld [vmem:[#allocation8 + $0x1c] ss:$12 sps:$4 sm:$0xff]  }
 0x6c2   :  { %v2193_v41 = vmul.f32 %v3741_v38, %v2191_v33  ;;  %v4481_v29 = vadd.f32 %v3735_v57, %v2192_v11 }
 0x6c4   :  { %v4483_v28 = vadd.f32 %v3739_v16, %v2193_v41 }
 0x6c6   :  { %v2196_v32 = vpack.c.bf16 %v4483_v28, %v4481_v29 }
 0x6c8   :  { %3147 = vst [vmem:[#allocation12 + $0x28] sm:$0xff] %v2196_v32   ;;  %2399 = vmatmul.mubr.bf16.vlgmr.msra.gmra.mrb[24].mxu0 %v2196_v32  ;;  %3386 = vmatmul.mubr.bf16.vlgmr.msra.gmra.mrb[48].mxu1 %v2196_v32 }
 0x6c9   :  { %2663 = vmatpush1.bf16.msra.mxu0 %v4340_v60  ;;  %2694 = vmatprep.mubr.bf16.mxu0 %v4557_v1  ;;  %v3613_v60 = vld [vmem:[#allocation8 + $0x38] ss:$12 sps:$4 sm:$0xff]  }
 0x6ca   :  { %3405 = vmatprep.mubr.msk.bf16.mxu1 %vm3936_vm1, %v4558_v2  ;;  %3390 = vmatpush3.bf16.msra.mxu1 %v3605_v37  ;;  %v3616_v1 = vld [vmem:[#allocation8 + $0x4c] ss:$12 sps:$4 sm:$0xff]  }
 0x6cb   :  { %3391 = vmatprep.subr.bf16.mxu1 %v4558_v2  ;;  %2664 = vmatprep.subr.bf16.mxu0 %v3608_v30 }
 0x6cd   :  { %2665 = vmatpush1.bf16.msra.mxu0 %v3606_v61 }
 0x6ce   :  { %3392 = vmatpush3.bf16.msra.mxu1 %v3609_v4  ;;  %2666 = vmatprep.subr.bf16.mxu0 %v3612_v8 }
 0x6cf   :  { %3393 = vmatprep.subr.bf16.mxu1 %v4558_v2 }
 0x6d1   :  { %2667 = vmatpush1.bf16.msra.mxu0 %v3610_v12 }
 0x6d2   :  { %3394 = vmatpush3.bf16.msra.mxu1 %v3613_v60  ;;  %2668 = vmatprep.subr.bf16.mxu0 %v3616_v1 }
 0x6d3   :  { %3395 = vmatprep.subr.bf16.mxu1 %v4558_v2 }
 0x6d5   :  { %2669 = vmatpush1.bf16.msra.mxu0 %v3614_v15 }
 0x6d6   :  { %3396 = vmatpush3.bf16.msra.mxu1 %v3617_v19  ;;  %2670 = vmatprep.subr.bf16.mxu0 %v4355_v9  ;;  %v3621_v9 = vld [vmem:[#allocation8 + $0xb0] ss:$12 sps:$4 sm:$0xff]   ;;  %v317_v19 = vadd.f32 %v4163_v53, %v4221_v24 }
 0x6d7   :  { %3397 = vmatprep.subr.bf16.mxu1 %v4558_v2 }
 0x6d9   :  { %2671 = vmatpush1.bf16.msra.mxu0 %v4353_v40  ;;  %v305_v40 = vadd.f32 %v4153_v46, %v4205_v36 }
 0x6da   :  { %3398 = vmatpush3.bf16.msra.mxu1 %v3618_v22  ;;  %2672 = vmatprep.subr.bf16.mxu0 %v4358_v44  ;;  %v307_v44 = vadd.f32 %v4155_v47, %v4221_v24 }
 0x6db   :  { %3399 = vmatprep.subr.bf16.mxu1 %v4558_v2 }
 0x6dd   :  { %2673 = vmatpush1.bf16.msra.mxu0 %v4362_v51 }
 0x6de   :  { %3400 = vmatpush3.bf16.msra.mxu1 %v3619_v20  ;;  %2674 = vmatprep.subr.bf16.mxu0 %v4366_v45 }
 0x6df   :  { %3401 = vmatprep.subr.bf16.mxu1 %v4558_v2 }
 0x6e1   :  { %2675 = vmatpush1.bf16.msra.mxu0 %v4369_v63  ;;  %v309_v63 = vadd.f32 %v4157_v48, %v4205_v36 }
 0x6e2   :  { %3402 = vmatpush3.bf16.msra.mxu1 %v3620_v18  ;;  %2676 = vmatprep.subr.bf16.mxu0 %v4373_v0 }
 0x6e3   :  { %3403 = vmatprep.subr.bf16.mxu1 %v4558_v2  ;;  %v311_v2 = vadd.f32 %v4159_v50, %v4221_v24 }
 0x6e5   :  { %2677 = vmatpush1.bf16.msra.mxu0 %v4376_v42 }
 0x6e6   :  { %3404 = vmatpush3.bf16.msra.mxu1 %v3621_v9 }
 0x79b   :  { %v2400_v51 = vpop.f32.mrb[24].mxu0  ;;  %v2443_v45 = vpop.f32.mrb[48].mxu1 }
 0x79c   :  { %v2450_v17 = vadd.f32 %v2400_v51, %v305_v40  ;;  %v2402_v25 = vpop.f32.mrb[25].mxu0  ;;  %v3387_v10 = vpop.f32.mrb[49].mxu1  ;;  %v2478_v6 = vadd.f32 %v4474_v35, %v2443_v45  ;;  %v321_v40 = vadd.f32 %v4167_v56, %v4221_v24 }
 0x79d   :  { %v2464_v0 = vadd.f32 %v2402_v25, %v307_v44  ;;  %v2404_v42 = vpop.f32.mrb[26].mxu0  ;;  %v2446_v5 = vpop.f32.mrb[50].mxu1 }
 0x79e   :  { %v3051_v31 = vmul.f32 -1.442695, %v2450_v17  ;;  %v2451_v23 = vadd.f32 %v2404_v42, %v309_v63  ;;  %v2406_v46 = vpop.f32.mrb[27].mxu0  ;;  %v3388_v14 = vpop.f32.mrb[51].mxu1  ;;  %v2479_v27 = vadd.f32 %v4474_v35, %v2446_v5 }
 0x79f   :  { %v2465_v21 = vadd.f32 %v2406_v46, %v311_v2  ;;  %v3053_v26 = vmul.f32 -1.442695, %v2464_v0 }
 0x7a0   :  { %3742 = vpow2.f32 %v3051_v31  ;;  %v3052_v47 = vmul.f32 -1.442695, %v2451_v23 }
 0x7a1   :  { %v3054_v48 = vmul.f32 -1.442695, %v2465_v21 }
 0x7a2   :  { %3744 = vpow2.f32 %v3052_v47 }
 0x7a3   :  { %3746 = vpow2.f32 %v3053_v26 }
 0x7aa   :  { %v3743_v62 = vpop.eup %3742 }
 0x7ab   :  { %v2458_v59 = vadd.f32 1.0, %v3743_v62 }
 0x7ac   :  { %v3745_v34 = vpop.eup %3744 }
 0x7ad   :  { %3748 = vrcp.f32 %v2458_v59  ;;  %v2459_v58 = vadd.f32 1.0, %v3745_v34  ;;  %v3747_v50 = vpop.eup %3746 }
 0x7ae   :  { %3750 = vpow2.f32 %v3054_v48  ;;  %v2472_v16 = vadd.f32 1.0, %v3747_v50 }
 0x7af   :  { %3752 = vrcp.f32 %v2459_v58 }
 0x7b7   :  { %v3749_v7 = vpop.eup %3748 }
 0x7b8   :  { %v3751_v54 = vpop.eup %3750  ;;  %v2480_v57 = vmul.f32 %v3749_v7, %v2478_v6 }
 0x7b9   :  { %v3753_v3 = vpop.eup %3752  ;;  %v2473_v41 = vadd.f32 1.0, %v3751_v54 }
 0x7ba   :  { %v2482_v33 = vadd.f32 %v2480_v57, %v4212_v43  ;;  %v2481_v11 = vmul.f32 %v3753_v3, %v2479_v27 }
 0x7bc   :  { %3754 = vtanh.f32 %v2482_v33  ;;  %v2483_v38 = vadd.f32 %v2481_v11, %v4219_v13  ;;  %v315_v13 = vadd.f32 %v4161_v52, %v4205_v36 }
 0x7bd   :  { %3756 = vrcp.f32 %v2472_v16 }
 0x7be   :  { %3758 = vtanh.f32 %v2483_v38 }
 0x7bf   :  { %3760 = vrcp.f32 %v2473_v41 }
 0x7c6   :  { %v3755_v32 = vpop.eup %3754 }
 0x7c7   :  { %v3757_v37 = vpop.eup %3756  ;;  %v2486_v30 = vsub.f32 %v4481_v29, %v3755_v32 }
 0x7c8   :  { %v3759_v61 = vpop.eup %3758 }
 0x7c9   :  { %v2487_v4 = vsub.f32 %v4483_v28, %v3759_v61  ;;  %v2488_v8 = vmul.f32 %v3757_v37, %v2486_v30  ;;  %v3761_v12 = vpop.eup %3760  ;;  %v319_v28 = vadd.f32 %v4165_v55, %v4205_v36 }
 0x7cb   :  { %v2489_v60 = vmul.f32 %v3761_v12, %v2487_v4  ;;  %v2490_v1 = vadd.f32 %v3755_v32, %v2488_v8 }
 0x7cd   :  { %v2491_v43 = vadd.f32 %v3759_v61, %v2489_v60 }
 0x7cf   :  { %v2492_v15 = vpack.c.bf16 %v2491_v43, %v2490_v1 }
 0x7d1   :  { %3148 = vst [vmem:[#allocation12 + $0x30] sm:$0xff] %v2492_v15   ;;  %2695 = vmatmul.mubr.bf16.vlgmr.msra.gmra.mrb[28].mxu0 %v2492_v15  ;;  %3406 = vmatmul.mubr.bf16.vlgmr.msra.gmra.mrb[52].mxu1 %v2492_v15 }
 0x8a4   :  { %v2696_v22 = vpop.f32.mrb[28].mxu0  ;;  %v2739_v29 = vpop.f32.mrb[52].mxu1 }
 0x8a5   :  { %v2746_v20 = vadd.f32 %v2696_v22, %v315_v13  ;;  %v2698_v18 = vpop.f32.mrb[29].mxu0  ;;  %v3407_v9 = vpop.f32.mrb[53].mxu1  ;;  %v2774_v24 = vadd.f32 %v4474_v35, %v2739_v29 }
 0x8a6   :  { %v2760_v44 = vadd.f32 %v2698_v18, %v317_v19  ;;  %v2700_v51 = vpop.f32.mrb[30].mxu0  ;;  %v2742_v45 = vpop.f32.mrb[54].mxu1 }
 0x8a7   :  { %v3081_v63 = vmul.f32 -1.442695, %v2746_v20  ;;  %v2747_v17 = vadd.f32 %v2700_v51, %v319_v28  ;;  %v2702_v52 = vpop.f32.mrb[31].mxu0  ;;  %v3408_v25 = vpop.f32.mrb[55].mxu1  ;;  %v2775_v14 = vadd.f32 %v4474_v35, %v2742_v45 }
 0x8a8   :  { %v2761_v10 = vadd.f32 %v2702_v52, %v321_v40  ;;  %v3083_v2 = vmul.f32 -1.442695, %v2760_v44 }
 0x8a9   :  { %3762 = vpow2.f32 %v3081_v63  ;;  %v3082_v53 = vmul.f32 -1.442695, %v2747_v17 }
 0x8aa   :  { %v3084_v55 = vmul.f32 -1.442695, %v2761_v10 }
 0x8ab   :  { %3764 = vpow2.f32 %v3082_v53 }
 0x8ac   :  { %3766 = vpow2.f32 %v3083_v2 }
 0x8b3   :  { %v3763_v0 = vpop.eup %3762 }
 0x8b4   :  { %v2754_v36 = vadd.f32 1.0, %v3763_v0 }
 0x8b5   :  { %v3765_v42 = vpop.eup %3764 }
 0x8b6   :  { %3768 = vrcp.f32 %v2754_v36  ;;  %v2755_v5 = vadd.f32 1.0, %v3765_v42  ;;  %v3767_v56 = vpop.eup %3766 }
 0x8b7   :  { %3770 = vpow2.f32 %v3084_v55  ;;  %v2768_v47 = vadd.f32 1.0, %v3767_v56 }
 0x8b8   :  { %3772 = vrcp.f32 %v2755_v5 }
 0x8c0   :  { %v3769_v31 = vpop.eup %3768 }
 0x8c1   :  { %v3771_v23 = vpop.eup %3770  ;;  %v2776_v46 = vmul.f32 %v3769_v31, %v2774_v24 }
 0x8c2   :  { %v3773_v21 = vpop.eup %3772  ;;  %v2769_v59 = vadd.f32 1.0, %v3771_v23 }
 0x8c3   :  { %v2778_v26 = vadd.f32 %v2776_v46, %v4208_v39  ;;  %v2777_v62 = vmul.f32 %v3773_v21, %v2775_v14 }
 0x8c5   :  { %3774 = vtanh.f32 %v2778_v26  ;;  %v2779_v48 = vadd.f32 %v2777_v62, %v4215_v49 }
 0x8c6   :  { %3776 = vrcp.f32 %v2768_v47 }
 0x8c7   :  { %3778 = vtanh.f32 %v2779_v48 }
 0x8c8   :  { %3780 = vrcp.f32 %v2769_v59 }
 0x8cf   :  { %v3775_v34 = vpop.eup %3774 }
 0x8d0   :  { %v3777_v58 = vpop.eup %3776  ;;  %v2782_v50 = vsub.f32 %v2490_v1, %v3775_v34 }
 0x8d1   :  { %v3779_v6 = vpop.eup %3778 }
 0x8d2   :  { %v2784_v7 = vmul.f32 %v3777_v58, %v2782_v50  ;;  %v2783_v54 = vsub.f32 %v2491_v43, %v3779_v6  ;;  %v3781_v57 = vpop.eup %3780 }
 0x8d4   :  { %v2786_v35 = vadd.f32 %v3775_v34, %v2784_v7  ;;  %v2785_v27 = vmul.f32 %v3781_v57, %v2783_v54 }
 0x8d6   :  { %v2787_v39 = vadd.f32 %v3779_v6, %v2785_v27 }
 0x8d8   :  { %v3141_v3 = vpack.c.bf16 %v2787_v39, %v2786_v35 }
 0x8da   :  { %3149 = vst [vmem:[#allocation12 + $0x38] sm:$0xff] %v3141_v3  }
 0x8db   :  { %3905 = shalt.err (!%p3902_p2)
}
 0x8dc   :  { %s3906_s12 = scalar_lea.hbm %s4552_s5, 1024 }
 0x8dd   :  { %p3907_p3 = scmp.ne.s32.totalorder %s4552_s5, %s3906_s12  ;;  %p3910_p4 = scmp.lt.u32.totalorder %s3906_s12, %s4552_s5 }
 0x8df   :  { %p3912_p5 = pnand %p3910_p4, %p3907_p3 }
 0x8e1   :  { %3915 = shalt.err (!%p3912_p5)
}
 0x8e2   :  { %2811 = dma.vmem_to_hbm [thread:$0]  %s2806_s29, 1024, %s4552_s5, [#allocation5], %s3929_s3, %s3929_s3, %s3930_s6  }
 0x8e3   :  { %3922 = dma.done.wait [#allocation5], 1024  }
 0x8e4   :  { %3923 = vsyncadd [#allocation5], 4294966272 }
 0x8e5   :  { %2815 = vsyncpa [#allocation4], 1 }
 0x8e6   :  { %2816 = vsyncpa [#allocation7], 1 }
 0x8e7   :  { %2817 = vsyncpa [#allocation10], 1 }
 0x8e8   :  { %2818 = vsyncpa [#allocation5], 1 }

</bundles_post_ra>
